<compile_context>
chip_gen: v5e
topology: v5e:2x2
jax: 0.10.0
libtpu: 0.0.40
codegen_flags: <defaults>
</compile_context>

<pallas_src>
import functools
import math

import jax
import jax.numpy as jnp
from jax.experimental import pallas as pl
from jax.experimental.pallas import tpu as pltpu


# ----------------------------------------------------------------------------- helpers
def _erf(z):
    # Abramowitz-Stegun 7.1.26 polynomial (|err| < 1.5e-7); avoids relying on a
    # lax.erf Mosaic lowering.
    a1, a2, a3, a4, a5 = 0.254829592, -0.284496736, 1.421413741, -1.453152027, 1.061405429
    p = 0.3275911
    za = jnp.abs(z)
    t = 1.0 / (1.0 + p * za)
    poly = ((((a5 * t + a4) * t + a3) * t + a2) * t + a1) * t
    y = 1.0 - poly * jnp.exp(-za * za)
    return jnp.where(z >= 0, y, -y)


def _gelu(x):
    # matches nn.GELU() (erf-based, approximate='none') up to the polynomial error
    return 0.5 * x * (1.0 + _erf(x * (1.0 / math.sqrt(2.0))))


def _layernorm(x, gamma, beta, eps=1e-5):
    mean = jnp.mean(x, axis=-1, keepdims=True)
    d = x - mean
    var = jnp.mean(d * d, axis=-1, keepdims=True)
    return d * jax.lax.rsqrt(var + eps) * gamma + beta


def _shift_time(x, direction):
    # direction=+1: out[t] = x[t-1] (zero at t=0); -1: out[t] = x[t+1] (zero at t=T-1).
    # XLU roll + one cheap select instead of misaligned sublane slices + concat.
    T = x.shape[0]
    shift = 1 if direction == 1 else T - 1
    rolled = pltpu.roll(x, shift=shift, axis=0)
    t_idx = jax.lax.broadcasted_iota(jnp.int32, x.shape, 0)
    keep = (t_idx >= 1) if direction == 1 else (t_idx < T - 1)
    return jnp.where(keep, rolled, jnp.zeros_like(rolled))


# --------------------------------------------- ConvG: conv1 + GELU + conv2 + GELU (fused)
def _conv3(x, w, b):
    # x: (T, C) f32.  The 3 taps are built from XLU rolls and fused into ONE K=3C
    # im2col matmul (bf16 operands, f32 accumulation).
    xm = _shift_time(x, +1)                                     # x[t-1]
    xp = _shift_time(x, -1)                                     # x[t+1]
    xcat = jnp.concatenate([xm.astype(jnp.bfloat16),
                            x.astype(jnp.bfloat16),
                            xp.astype(jnp.bfloat16)], axis=1)   # (T, 3C) lane-aligned
    return jnp.dot(xcat, w, preferred_element_type=jnp.float32) + b


def convg_kernel(x_ref, w1_ref, b1_ref, w2_ref, b2_ref, out_ref):
    # One batch element per grid step; weights hoisted (loaded once per step).
    x = x_ref[0]                                                # (T, C) f32
    w1, b1 = w1_ref[...], b1_ref[...]
    w2, b2 = w2_ref[...], b2_ref[...]
    h1 = _gelu(_conv3(x, w1, b1))
    h2 = _gelu(_conv3(h1, w2, b2))
    out_ref[0] = h2.astype(jnp.bfloat16)                        # bf16 handoff to encoder


def convg_apply(x, p):
    # x: (B, T, C) float32 -> (B, T, C) bfloat16 (BatchNorm is fused into the encoder)
    B, T, C = x.shape
    wspec = lambda shape: pl.BlockSpec(shape, lambda b: (0, 0))
    return pl.pallas_call(
        convg_kernel,
        out_shape=jax.ShapeDtypeStruct((B, T, C), jnp.bfloat16),
        grid=(B,),
        in_specs=[pl.BlockSpec((1, T, C), lambda b: (b, 0, 0)),
                  wspec((3 * C, C)), wspec((1, C)),
                  wspec((3 * C, C)), wspec((1, C))],
        out_specs=pl.BlockSpec((1, T, C), lambda b: (b, 0, 0)),
        compiler_params=pltpu.CompilerParams(dimension_semantics=("parallel",)),
    )(x, p["w1"], p["b1"], p["w2"], p["b2"])


# ------------------------------- encoder stack (BN + input proj + L layers + mean pool)
def _split_heads(x2d, n_heads, mode):
    # (T, n_heads*hd) -> (n_heads, T, hd)
    T, d_tot = x2d.shape
    hd = d_tot // n_heads
    if mode == "einshape":
        return pltpu.einshape("t(hd)->htd", x2d, h=n_heads)     # one lane-aware relayout
    return jnp.stack([x2d[:, i * hd:(i + 1) * hd] for i in range(n_heads)], axis=0)


def _merge_heads(x3d, mode):
    # (H, T, hd) -> (T, H*hd)
    H = x3d.shape[0]
    if mode == "einshape":
        return pltpu.einshape("htd->t(hd)", x3d)
    return jnp.concatenate([x3d[i] for i in range(H)], axis=1)


def encoder_kernel(xc_ref, bng_ref, bnb_ref, wp_ref, bp_ref, pos_ref,
                   wqkv_ref, bqkv_ref, wo_ref, bo_ref, g1_ref, be1_ref,
                   w1_ref, bb1_ref, w2_ref, bb2_ref, g2_ref, be2_ref,
                   pooled_ref, xres, *, num_heads, head_mode):
    l = pl.program_id(0)
    B, T, C = xc_ref.shape
    D = wp_ref.shape[1]
    H = num_heads

    @pl.when(l == 0)
    def _():
        # BatchNorm1d (train-mode batch stats, two-pass variance) fused with the
        # 128->D input projection + sinusoidal positional encoding.
        h = xc_ref[...].astype(jnp.float32).reshape(B * T, C)
        mean = jnp.mean(h, axis=0, keepdims=True)
        d = h - mean
        var = jnp.mean(d * d, axis=0, keepdims=True)
        hn = (d * jax.lax.rsqrt(var + 1e-5) * bng_ref[...]
              + bnb_ref[...]).astype(jnp.bfloat16)
        proj = (jnp.dot(hn, wp_ref[...], preferred_element_type=jnp.float32)
                + bp_ref[...])                                   # (B*T, D)
        pos = jnp.concatenate([pos_ref[...]] * B, axis=0)        # (B*T, D)
        xres[...] = proj + pos

    x = xres[...]                                                # (B*T, D) f32
    xb = x.astype(jnp.bfloat16)

    # fused QKV: one M=B*T, N=3D matmul (1/sqrt(hd) folded into Wq/bq at init)
    qkv = (jnp.dot(xb, wqkv_ref[0], preferred_element_type=jnp.float32)
           + bqkv_ref[0]).astype(jnp.bfloat16)                   # (B*T, 3D)

    ctx_rows = []
    for b in range(B):                                           # static unroll, small B
        heads = _split_heads(qkv[b * T:(b + 1) * T], 3 * H, head_mode)   # (3H, T, hd)
        qh, kh, vh = heads[:H], heads[H:2 * H], heads[2 * H:]
        # TODO(synk): at real Whisper T=1500 this (H, T, T) f32 score tensor should be
        #             replaced by flash-attention-style online softmax over K/V tiles.
        s = jnp.einsum("htd,hsd->hts", qh, kh, preferred_element_type=jnp.float32)
        s = s - jnp.max(s, axis=-1, keepdims=True)
        e = jnp.exp(s)
        pattn = (e * pl.reciprocal(jnp.sum(e, axis=-1, keepdims=True), approx=True)
                 ).astype(jnp.bfloat16)
        ctx = jnp.einsum("hts,hsd->htd", pattn, vh, preferred_element_type=jnp.float32)
        ctx_rows.append(_merge_heads(ctx.astype(jnp.bfloat16), head_mode))
    ctx_all = jnp.concatenate(ctx_rows, axis=0)                  # (B*T, D) bf16

    attn = (jnp.dot(ctx_all, wo_ref[0], preferred_element_type=jnp.float32)
            + bo_ref[0])

    # -------------------------------------------------------------- post-LN + FFN block
    x = _layernorm(x + attn, g1_ref[0], be1_ref[0])
    hf = _gelu(jnp.dot(x.astype(jnp.bfloat16), w1_ref[0],
                       preferred_element_type=jnp.float32) + bb1_ref[0])
    ff = (jnp.dot(hf.astype(jnp.bfloat16), w2_ref[0],
                  preferred_element_type=jnp.float32) + bb2_ref[0])
    x = _layernorm(x + ff, g2_ref[0], be2_ref[0])
    xres[...] = x                                                # carry to next layer

    # ----------------------------------------------------- final layer: mean-pool output
    @pl.when(l == pl.num_programs(0) - 1)
    def _():
        pooled_ref[...] = jnp.concatenate(
            [jnp.mean(x[b * T:(b + 1) * T], axis=0, keepdims=True) for b in range(B)],
            axis=0)                                              # (B, D)


def encoder_apply(h, params, *, num_heads):
    # h: ConvG output (B, T, C) bf16 -> pooled (B, D) f32
    B, T, C = h.shape
    enc = params["encoder"]
    cg = params["convg"]
    L = enc["wqkv"].shape[0]
    D = enc["wp"].shape[1]
    F = enc["w1"].shape[2]
    pos = enc["pos"][:T]

    const2 = lambda shape: pl.BlockSpec(shape, lambda l: (0, 0))
    per_layer = lambda shape: pl.BlockSpec((1,) + tuple(shape), lambda l: (l, 0, 0))

    def run(head_mode):
        out = pl.pallas_call(
            functools.partial(encoder_kernel, num_heads=num_heads, head_mode=head_mode),
            out_shape=jax.ShapeDtypeStruct((B, D), jnp.float32),
            grid=(L,),                                           # weights streamed once
            in_specs=[
                pl.BlockSpec((B, T, C), lambda l: (0, 0, 0)),    # ConvG output (resident)
                const2((1, C)), const2((1, C)),                  # BN gamma, beta
                const2((C, D)), const2((1, D)), const2((T, D)),  # wp, bp, pos
                per_layer((D, 3 * D)), per_layer((1, 3 * D)),    # fused QKV W, b
                per_layer((D, D)), per_layer((1, D)),            # wo, bo
                per_layer((1, D)), per_layer((1, D)),            # LN1 gamma, beta
                per_layer((D, F)), per_layer((1, F)),            # FFN W1, b1
                per_layer((F, D)), per_layer((1, D)),            # FFN W2, b2
                per_layer((1, D)), per_layer((1, D)),            # LN2 gamma, beta
            ],
            out_specs=pl.BlockSpec((B, D), lambda l: (0, 0)),
            scratch_shapes=[pltpu.VMEM((B * T, D), jnp.float32)],  # x resident across L
            compiler_params=pltpu.CompilerParams(
                dimension_semantics=("arbitrary",),
                # explicit scoped-VMEM budget (v5e default is only 16 MiB); leaves
                # headroom on v7x's 64 MiB physical VMEM.
                vmem_limit_bytes=48 * 1024 * 1024),
        )(h, cg["gamma"], cg["beta"], enc["wp"], enc["bp"], pos,
          enc["wqkv"], enc["bqkv"], enc["wo"], enc["bo"], enc["g1"], enc["be1"],
          enc["w1"], enc["bb1"], enc["w2"], enc["bb2"], enc["g2"], enc["be2"])
        return jax.block_until_ready(out)

    try:
        return run("einshape")
    except Exception:  # fall back to the proven slice+stack head relayout if the
        return run("stack")  # grouped einshape equation does not lower on this backend


# -------------------------------------------- output projection (V-tiled, not resident)
def out_proj_kernel(p_ref, w_ref, b_ref, o_ref):
    o_ref[...] = (jnp.dot(p_ref[...].astype(jnp.bfloat16), w_ref[...],
                          preferred_element_type=jnp.float32) + b_ref[...])


def out_proj_apply(pooled, w, b, *, tv=128):
    B, D = pooled.shape
    V = w.shape[1]
    return pl.pallas_call(
        out_proj_kernel,
        out_shape=jax.ShapeDtypeStruct((B, V), jnp.float32),
        grid=(pl.cdiv(V, tv),),
        in_specs=[pl.BlockSpec((B, D), lambda j: (0, 0)),
                  pl.BlockSpec((D, tv), lambda j: (0, j)),
                  pl.BlockSpec((1, tv), lambda j: (0, j))],
        out_specs=pl.BlockSpec((B, tv), lambda j: (0, j)),
        compiler_params=pltpu.CompilerParams(dimension_semantics=("parallel",)),
    )(pooled, w, b)


# ------------------------------------------------------------------------------- model
def whisper_forward(mel, params, *, num_heads):
    # mel: (B, 1, T, 128).  PyTorch squeezes + permutes to channels-first for Conv1d;
    # the Pallas conv kernel consumes the (B, T, C) layout directly (same math).
    x = jnp.squeeze(mel, axis=1)                                 # (B, T, C)
    h = convg_apply(x, params["convg"])                          # conv/GELU/conv/GELU (bf16)
    pooled = encoder_apply(h, params, num_heads=num_heads)       # BN + encoder + mean-pool
    return out_proj_apply(pooled, params["out"]["w"], params["out"]["b"])  # (B, V)


def init_params(key, *, mels, dim, dim_ff, layers, heads, vocab, max_seq_len):
    C = mels
    s = 0.02
    keys = iter(jax.random.split(key, 8 + 8 * layers))
    nrm = lambda shape: s * jax.random.normal(next(keys), shape, dtype=jnp.float32)

    def conv_w():
        w = nrm((C, C, 3))                                       # PyTorch Conv1d (Cout, Cin, 3)
        # im2col layout: rows ordered [x[t-1]; x[t]; x[t+1]] channels -> (3C, Cout)
        return jnp.transpose(w, (2, 1, 0)).reshape(3 * C, C).astype(jnp.bfloat16)

    convg = dict(
        w1=conv_w(), b1=jnp.zeros((1, C), jnp.float32),
        w2=conv_w(), b2=jnp.zeros((1, C), jnp.float32),
        gamma=jnp.ones((1, C), jnp.float32),                     # BatchNorm1d affine init
        beta=jnp.zeros((1, C), jnp.float32),
    )

    positions = jnp.arange(max_seq_len, dtype=jnp.float32)[:, None]
    div = jnp.exp(jnp.arange(0, dim, 2, dtype=jnp.float32) * (-math.log(10000.0) / dim))
    pe = jnp.zeros((max_seq_len, dim), jnp.float32)
    pe = pe.at[:, 0::2].set(jnp.sin(positions * div))
    pe = pe.at[:, 1::2].set(jnp.cos(positions * div))

    hd = dim // heads
    scale = 1.0 / math.sqrt(hd)
    wqkv, bqkv, wo, w1f, w2f = [], [], [], [], []
    for _ in range(layers):
        wq, wk, wv = nrm((dim, dim)), nrm((dim, dim)), nrm((dim, dim))
        bq = bk = bv = jnp.zeros((1, dim), jnp.float32)
        # fused QKV weight/bias with the attention scale folded into the Q columns
        wqkv.append(jnp.concatenate([wq * scale, wk, wv], axis=1))
        bqkv.append(jnp.concatenate([bq * scale, bk, bv], axis=1))
        wo.append(nrm((dim, dim)))
        w1f.append(nrm((dim, dim_ff)))
        w2f.append(nrm((dim_ff, dim)))

    bf16stack = lambda lst: jnp.stack(lst, 0).astype(jnp.bfloat16)
    f32stack = lambda lst: jnp.stack(lst, 0)
    zeros_l = lambda d: jnp.zeros((layers, 1, d), jnp.float32)
    ones_l = lambda d: jnp.ones((layers, 1, d), jnp.float32)

    encoder = dict(
        wp=nrm((C, dim)).astype(jnp.bfloat16), bp=jnp.zeros((1, dim), jnp.float32),
        pos=pe,
        wqkv=bf16stack(wqkv), bqkv=f32stack(bqkv),
        wo=bf16stack(wo), bo=zeros_l(dim),
        g1=ones_l(dim), be1=zeros_l(dim),
        w1=bf16stack(w1f), bb1=zeros_l(dim_ff),
        w2=bf16stack(w2f), bb2=zeros_l(dim),
        g2=ones_l(dim), be2=zeros_l(dim),
    )

    w_out = nrm((vocab, dim))                                    # nn.Linear(dim, vocab).weight
    out = dict(w=jnp.transpose(w_out).astype(jnp.bfloat16),
               b=jnp.zeros((1, vocab), jnp.float32))
    return dict(convg=convg, encoder=encoder, out=out)


if __name__ == "__main__":
    B, T, MELS = 2, 128, 128          # mel bins must be 128 (ConvG chan_num=128)
    DIM, FF, LAYERS, HEADS, VOCAB = 256, 512, 2, 4, 384

    key = jax.random.PRNGKey(0)
    pkey, mkey = jax.random.split(key)
    params = init_params(pkey, mels=MELS, dim=DIM, dim_ff=FF, layers=LAYERS,
                         heads=HEADS, vocab=VOCAB, max_seq_len=T)
    mel = jax.random.normal(mkey, (B, 1, T, MELS), dtype=jnp.float32)

    logits = whisper_forward(mel, params, num_heads=HEADS)
    logits = jax.block_until_ready(logits)
    assert logits.shape == (B, VOCAB) and logits.dtype == jnp.float32
    assert bool(jnp.all(jnp.isfinite(logits)))
    print("KERNEL_OK")
</pallas_src>

<mosaic_0001>
module attributes {stable_mosaic.version = 11 : i64} {
  func.func @convg_kernel(%arg0: i32, %arg1: memref<1x128x128xf32, #tpu.memory_space<vmem>>, %arg2: memref<384x128xbf16, #tpu.memory_space<vmem>>, %arg3: memref<1x128xf32, #tpu.memory_space<vmem>>, %arg4: memref<384x128xbf16, #tpu.memory_space<vmem>>, %arg5: memref<1x128xf32, #tpu.memory_space<vmem>>, %arg6: memref<1x128x128xbf16, #tpu.memory_space<vmem>>) attributes {dimension_semantics = [#tpu.dimension_semantics<parallel>], iteration_bounds = array<i64: 2>, scalar_prefetch = 0 : i64, scratch_operands = 0 : i64, tpu.core_type = #tpu.core_type<tc>, window_params = [{transform_indices = @transform_0, window_bounds = array<i64: 1, 128, 128>}, {pipeline_mode = #tpu.pipeline_mode<synchronous>, transform_indices = @transform_1, window_bounds = array<i64: 384, 128>}, {pipeline_mode = #tpu.pipeline_mode<synchronous>, transform_indices = @transform_2, window_bounds = array<i64: 1, 128>}, {pipeline_mode = #tpu.pipeline_mode<synchronous>, transform_indices = @transform_3, window_bounds = array<i64: 384, 128>}, {pipeline_mode = #tpu.pipeline_mode<synchronous>, transform_indices = @transform_4, window_bounds = array<i64: 1, 128>}, {transform_indices = @transform_5, window_bounds = array<i64: 1, 128, 128>}]} {
    %c0 = arith.constant 0 : index
    %c0_0 = arith.constant 0 : index
    %c0_1 = arith.constant 0 : index
    %0 = vector.load %arg1[%c0, %c0_0, %c0_1] : memref<1x128x128xf32, #tpu.memory_space<vmem>>, vector<1x128x128xf32>
    %1 = vector.shape_cast %0 : vector<1x128x128xf32> to vector<128x128xf32>
    %c0_2 = arith.constant 0 : index
    %c0_3 = arith.constant 0 : index
    %2 = vector.load %arg2[%c0_2, %c0_3] : memref<384x128xbf16, #tpu.memory_space<vmem>>, vector<384x128xbf16>
    %c0_4 = arith.constant 0 : index
    %c0_5 = arith.constant 0 : index
    %3 = vector.load %arg3[%c0_4, %c0_5] : memref<1x128xf32, #tpu.memory_space<vmem>>, vector<1x128xf32>
    %c0_6 = arith.constant 0 : index
    %c0_7 = arith.constant 0 : index
    %4 = vector.load %arg4[%c0_6, %c0_7] : memref<384x128xbf16, #tpu.memory_space<vmem>>, vector<384x128xbf16>
    %c0_8 = arith.constant 0 : index
    %c0_9 = arith.constant 0 : index
    %5 = vector.load %arg5[%c0_8, %c0_9] : memref<1x128xf32, #tpu.memory_space<vmem>>, vector<1x128xf32>
    %c1_i32 = arith.constant 1 : i32
    %6 = tpu.dynamic_rotate %1 by %c1_i32 dim 0 : vector<128x128xf32>, i32 -> vector<128x128xf32>
    %7 = tpu.iota {dimensions = array<i32: 0>} : vector<128x128xi32>
    %c1_i32_10 = arith.constant 1 : i32
    %8 = vector.broadcast %c1_i32_10 : i32 to vector<128x128xi32>
    %9 = arith.cmpi sge, %7, %8 : vector<128x128xi32>
    %cst = arith.constant 0.000000e+00 : f32
    %10 = vector.broadcast %cst : f32 to vector<128x128xf32>
    %11 = arith.select %9, %6, %10 : vector<128x128xi1>, vector<128x128xf32>
    %c127_i32 = arith.constant 127 : i32
    %12 = tpu.dynamic_rotate %1 by %c127_i32 dim 0 : vector<128x128xf32>, i32 -> vector<128x128xf32>
    %13 = tpu.iota {dimensions = array<i32: 0>} : vector<128x128xi32>
    %c127_i32_11 = arith.constant 127 : i32
    %14 = vector.broadcast %c127_i32_11 : i32 to vector<128x128xi32>
    %15 = arith.cmpi slt, %13, %14 : vector<128x128xi32>
    %cst_12 = arith.constant 0.000000e+00 : f32
    %16 = vector.broadcast %cst_12 : f32 to vector<128x128xf32>
    %17 = arith.select %15, %12, %16 : vector<128x128xi1>, vector<128x128xf32>
    %18 = arith.truncf %11 : vector<128x128xf32> to vector<128x128xbf16>
    %19 = arith.truncf %1 : vector<128x128xf32> to vector<128x128xbf16>
    %20 = arith.truncf %17 : vector<128x128xf32> to vector<128x128xbf16>
    %21 = tpu.concatenate %18, %19, %20 in 1 : vector<128x128xbf16>, vector<128x128xbf16>, vector<128x128xbf16> -> vector<128x384xbf16>
    %cst_13 = arith.constant dense<0.000000e+00> : vector<128x128xf32>
    %22 = tpu.matmul %21, %2, %cst_13 {dimension_numbers = #tpu.dot_dimension_numbers<[1], [0], [0], [1], [0, 0, 1, 1], [], []>} : vector<128x384xbf16>, vector<384x128xbf16>, vector<128x128xf32> -> vector<128x128xf32>
    %23 = vector.broadcast %3 : vector<1x128xf32> to vector<128x128xf32>
    %24 = arith.addf %22, %23 : vector<128x128xf32>
    %cst_14 = arith.constant 5.000000e-01 : f32
    %25 = vector.broadcast %cst_14 : f32 to vector<128x128xf32>
    %26 = arith.mulf %25, %24 : vector<128x128xf32>
    %cst_15 = arith.constant 0.707106769 : f32
    %27 = vector.broadcast %cst_15 : f32 to vector<128x128xf32>
    %28 = arith.mulf %24, %27 : vector<128x128xf32>
    %29 = math.absf %28 : vector<128x128xf32>
    %cst_16 = arith.constant 0.327591091 : f32
    %30 = vector.broadcast %cst_16 : f32 to vector<128x128xf32>
    %31 = arith.mulf %30, %29 : vector<128x128xf32>
    %cst_17 = arith.constant 1.000000e+00 : f32
    %32 = vector.broadcast %cst_17 : f32 to vector<128x128xf32>
    %33 = arith.addf %32, %31 : vector<128x128xf32>
    %cst_18 = arith.constant 1.000000e+00 : f32
    %34 = vector.broadcast %cst_18 : f32 to vector<128x128xf32>
    %35 = arith.divf %34, %33 : vector<128x128xf32>
    %cst_19 = arith.constant 1.06140542 : f32
    %36 = vector.broadcast %cst_19 : f32 to vector<128x128xf32>
    %37 = arith.mulf %36, %35 : vector<128x128xf32>
    %cst_20 = arith.constant -1.45315206 : f32
    %38 = vector.broadcast %cst_20 : f32 to vector<128x128xf32>
    %39 = arith.addf %37, %38 : vector<128x128xf32>
    %40 = arith.mulf %39, %35 : vector<128x128xf32>
    %cst_21 = arith.constant 1.42141378 : f32
    %41 = vector.broadcast %cst_21 : f32 to vector<128x128xf32>
    %42 = arith.addf %40, %41 : vector<128x128xf32>
    %43 = arith.mulf %42, %35 : vector<128x128xf32>
    %cst_22 = arith.constant -0.284496725 : f32
    %44 = vector.broadcast %cst_22 : f32 to vector<128x128xf32>
    %45 = arith.addf %43, %44 : vector<128x128xf32>
    %46 = arith.mulf %45, %35 : vector<128x128xf32>
    %cst_23 = arith.constant 0.254829586 : f32
    %47 = vector.broadcast %cst_23 : f32 to vector<128x128xf32>
    %48 = arith.addf %46, %47 : vector<128x128xf32>
    %49 = arith.mulf %48, %35 : vector<128x128xf32>
    %cst_24 = arith.constant 0.000000e+00 : f32
    %50 = vector.broadcast %cst_24 : f32 to vector<128x128xf32>
    %51 = arith.subf %50, %29 : vector<128x128xf32>
    %52 = arith.mulf %51, %29 : vector<128x128xf32>
    %53 = math.exp %52 : vector<128x128xf32>
    %54 = arith.mulf %49, %53 : vector<128x128xf32>
    %cst_25 = arith.constant 1.000000e+00 : f32
    %55 = vector.broadcast %cst_25 : f32 to vector<128x128xf32>
    %56 = arith.subf %55, %54 : vector<128x128xf32>
    %cst_26 = arith.constant 0.000000e+00 : f32
    %57 = vector.broadcast %cst_26 : f32 to vector<128x128xf32>
    %58 = arith.cmpf oge, %28, %57 : vector<128x128xf32>
    %cst_27 = arith.constant 0.000000e+00 : f32
    %59 = vector.broadcast %cst_27 : f32 to vector<128x128xf32>
    %60 = arith.subf %59, %56 : vector<128x128xf32>
    %61 = arith.select %58, %56, %60 : vector<128x128xi1>, vector<128x128xf32>
    %cst_28 = arith.constant 1.000000e+00 : f32
    %62 = vector.broadcast %cst_28 : f32 to vector<128x128xf32>
    %63 = arith.addf %62, %61 : vector<128x128xf32>
    %64 = arith.mulf %26, %63 : vector<128x128xf32>
    %c1_i32_29 = arith.constant 1 : i32
    %65 = tpu.dynamic_rotate %64 by %c1_i32_29 dim 0 : vector<128x128xf32>, i32 -> vector<128x128xf32>
    %66 = tpu.iota {dimensions = array<i32: 0>} : vector<128x128xi32>
    %c1_i32_30 = arith.constant 1 : i32
    %67 = vector.broadcast %c1_i32_30 : i32 to vector<128x128xi32>
    %68 = arith.cmpi sge, %66, %67 : vector<128x128xi32>
    %cst_31 = arith.constant 0.000000e+00 : f32
    %69 = vector.broadcast %cst_31 : f32 to vector<128x128xf32>
    %70 = arith.select %68, %65, %69 : vector<128x128xi1>, vector<128x128xf32>
    %c127_i32_32 = arith.constant 127 : i32
    %71 = tpu.dynamic_rotate %64 by %c127_i32_32 dim 0 : vector<128x128xf32>, i32 -> vector<128x128xf32>
    %72 = tpu.iota {dimensions = array<i32: 0>} : vector<128x128xi32>
    %c127_i32_33 = arith.constant 127 : i32
    %73 = vector.broadcast %c127_i32_33 : i32 to vector<128x128xi32>
    %74 = arith.cmpi slt, %72, %73 : vector<128x128xi32>
    %cst_34 = arith.constant 0.000000e+00 : f32
    %75 = vector.broadcast %cst_34 : f32 to vector<128x128xf32>
    %76 = arith.select %74, %71, %75 : vector<128x128xi1>, vector<128x128xf32>
    %77 = arith.truncf %70 : vector<128x128xf32> to vector<128x128xbf16>
    %78 = arith.truncf %64 : vector<128x128xf32> to vector<128x128xbf16>
    %79 = arith.truncf %76 : vector<128x128xf32> to vector<128x128xbf16>
    %80 = tpu.concatenate %77, %78, %79 in 1 : vector<128x128xbf16>, vector<128x128xbf16>, vector<128x128xbf16> -> vector<128x384xbf16>
    %cst_35 = arith.constant dense<0.000000e+00> : vector<128x128xf32>
    %81 = tpu.matmul %80, %4, %cst_35 {dimension_numbers = #tpu.dot_dimension_numbers<[1], [0], [0], [1], [0, 0, 1, 1], [], []>} : vector<128x384xbf16>, vector<384x128xbf16>, vector<128x128xf32> -> vector<128x128xf32>
    %82 = vector.broadcast %5 : vector<1x128xf32> to vector<128x128xf32>
    %83 = arith.addf %81, %82 : vector<128x128xf32>
    %cst_36 = arith.constant 5.000000e-01 : f32
    %84 = vector.broadcast %cst_36 : f32 to vector<128x128xf32>
    %85 = arith.mulf %84, %83 : vector<128x128xf32>
    %cst_37 = arith.constant 0.707106769 : f32
    %86 = vector.broadcast %cst_37 : f32 to vector<128x128xf32>
    %87 = arith.mulf %83, %86 : vector<128x128xf32>
    %88 = math.absf %87 : vector<128x128xf32>
    %cst_38 = arith.constant 0.327591091 : f32
    %89 = vector.broadcast %cst_38 : f32 to vector<128x128xf32>
    %90 = arith.mulf %89, %88 : vector<128x128xf32>
    %cst_39 = arith.constant 1.000000e+00 : f32
    %91 = vector.broadcast %cst_39 : f32 to vector<128x128xf32>
    %92 = arith.addf %91, %90 : vector<128x128xf32>
    %cst_40 = arith.constant 1.000000e+00 : f32
    %93 = vector.broadcast %cst_40 : f32 to vector<128x128xf32>
    %94 = arith.divf %93, %92 : vector<128x128xf32>
    %cst_41 = arith.constant 1.06140542 : f32
    %95 = vector.broadcast %cst_41 : f32 to vector<128x128xf32>
    %96 = arith.mulf %95, %94 : vector<128x128xf32>
    %cst_42 = arith.constant -1.45315206 : f32
    %97 = vector.broadcast %cst_42 : f32 to vector<128x128xf32>
    %98 = arith.addf %96, %97 : vector<128x128xf32>
    %99 = arith.mulf %98, %94 : vector<128x128xf32>
    %cst_43 = arith.constant 1.42141378 : f32
    %100 = vector.broadcast %cst_43 : f32 to vector<128x128xf32>
    %101 = arith.addf %99, %100 : vector<128x128xf32>
    %102 = arith.mulf %101, %94 : vector<128x128xf32>
    %cst_44 = arith.constant -0.284496725 : f32
    %103 = vector.broadcast %cst_44 : f32 to vector<128x128xf32>
    %104 = arith.addf %102, %103 : vector<128x128xf32>
    %105 = arith.mulf %104, %94 : vector<128x128xf32>
    %cst_45 = arith.constant 0.254829586 : f32
    %106 = vector.broadcast %cst_45 : f32 to vector<128x128xf32>
    %107 = arith.addf %105, %106 : vector<128x128xf32>
    %108 = arith.mulf %107, %94 : vector<128x128xf32>
    %cst_46 = arith.constant 0.000000e+00 : f32
    %109 = vector.broadcast %cst_46 : f32 to vector<128x128xf32>
    %110 = arith.subf %109, %88 : vector<128x128xf32>
    %111 = arith.mulf %110, %88 : vector<128x128xf32>
    %112 = math.exp %111 : vector<128x128xf32>
    %113 = arith.mulf %108, %112 : vector<128x128xf32>
    %cst_47 = arith.constant 1.000000e+00 : f32
    %114 = vector.broadcast %cst_47 : f32 to vector<128x128xf32>
    %115 = arith.subf %114, %113 : vector<128x128xf32>
    %cst_48 = arith.constant 0.000000e+00 : f32
    %116 = vector.broadcast %cst_48 : f32 to vector<128x128xf32>
    %117 = arith.cmpf oge, %87, %116 : vector<128x128xf32>
    %cst_49 = arith.constant 0.000000e+00 : f32
    %118 = vector.broadcast %cst_49 : f32 to vector<128x128xf32>
    %119 = arith.subf %118, %115 : vector<128x128xf32>
    %120 = arith.select %117, %115, %119 : vector<128x128xi1>, vector<128x128xf32>
    %cst_50 = arith.constant 1.000000e+00 : f32
    %121 = vector.broadcast %cst_50 : f32 to vector<128x128xf32>
    %122 = arith.addf %121, %120 : vector<128x128xf32>
    %123 = arith.mulf %85, %122 : vector<128x128xf32>
    %124 = arith.truncf %123 : vector<128x128xf32> to vector<128x128xbf16>
    %c0_51 = arith.constant 0 : index
    %c0_52 = arith.constant 0 : index
    %c0_53 = arith.constant 0 : index
    %125 = vector.load %arg6[%c0_51, %c0_52, %c0_53] : memref<1x128x128xbf16, #tpu.memory_space<vmem>>, vector<1x128x128xbf16>
    %126 = vector.shape_cast %125 : vector<1x128x128xbf16> to vector<128x128xbf16>
    %127 = vector.shape_cast %124 : vector<128x128xbf16> to vector<1x128x128xbf16>
    tpu.vector_store %arg6[%c0_51, %c0_52, %c0_53], %127 {strides = array<i32>} : memref<1x128x128xbf16, #tpu.memory_space<vmem>>, vector<1x128x128xbf16>,
    return
  }
  func.func @transform_0(%arg0: i32) -> (i32, i32, i32) {
    %c0_i32 = arith.constant 0 : i32
    %c0_i32_0 = arith.constant 0 : i32
    %c0_i32_1 = arith.constant 0 : i32
    return %arg0, %c0_i32, %c0_i32_0 : i32, i32, i32
  }
  func.func @transform_1(%arg0: i32) -> (i32, i32) {
    %c0_i32 = arith.constant 0 : i32
    %c0_i32_0 = arith.constant 0 : i32
    %c0_i32_1 = arith.constant 0 : i32
    return %c0_i32, %c0_i32_0 : i32, i32
  }
  func.func @transform_2(%arg0: i32) -> (i32, i32) {
    %c0_i32 = arith.constant 0 : i32
    %c0_i32_0 = arith.constant 0 : i32
    %c0_i32_1 = arith.constant 0 : i32
    return %c0_i32, %c0_i32_0 : i32, i32
  }
  func.func @transform_3(%arg0: i32) -> (i32, i32) {
    %c0_i32 = arith.constant 0 : i32
    %c0_i32_0 = arith.constant 0 : i32
    %c0_i32_1 = arith.constant 0 : i32
    return %c0_i32, %c0_i32_0 : i32, i32
  }
  func.func @transform_4(%arg0: i32) -> (i32, i32) {
    %c0_i32 = arith.constant 0 : i32
    %c0_i32_0 = arith.constant 0 : i32
    %c0_i32_1 = arith.constant 0 : i32
    return %c0_i32, %c0_i32_0 : i32, i32
  }
  func.func @transform_5(%arg0: i32) -> (i32, i32, i32) {
    %c0_i32 = arith.constant 0 : i32
    %c0_i32_0 = arith.constant 0 : i32
    %c0_i32_1 = arith.constant 0 : i32
    return %arg0, %c0_i32, %c0_i32_0 : i32, i32, i32
  }
}

</mosaic_0001>

<bundles_post_ra>
// kernel: tpu_custom_call.1
= control target key start
LH: loop header
LB: loop body
LE: loop exit
PB: predicated region body
PF: predicated region fallthrough
CT: control target
= control target key end

     0   :  { %10 = vsyncpa [#allocation3], 0  ;;  %s5289_s0 = inlined_call_operand.hbm [shape: f32[2,128,128], index: 0, kind: input, shape index: {}]   ;;  %s5290_s1 = inlined_call_operand.hbm [shape: bf16[384,128], index: 1, kind: input, shape index: {}]   ;;  %s5291_s2 = inlined_call_operand.vmem [shape: f32[1,128], index: 2, kind: input, shape index: {}]   ;;  %s5292_s3 = inlined_call_operand.hbm [shape: bf16[384,128], index: 3, kind: input, shape index: {}]   ;;  %s5293_s4 = inlined_call_operand.vmem [shape: f32[1,128], index: 4, kind: input, shape index: {}]   ;;  %s5294_s5 = inlined_call_operand.hbm [shape: bf16[2,128,128], index: 5, kind: output, shape index: {}]  }
   0x1   :  { %12 = vsyncpa [#allocation3 + $0x1], 0 }
   0x2   :  { %13 = vsyncpa [#allocation6], 0 }
   0x3   :  { %14 = vsyncpa [#allocation4], 0 }
   0x4   :  { %16 = vsyncpa [#allocation4 + $0x1], 0  ;;  %s3754_s18 = smov 0   ;;  %s3756_s19 = smov 0  }
   0x5   :  { %s3758_s20 = smov 0   ;;  %s3760_s21 = smov 0  }
   0x6 LB: > { %s3775_s22 = sadd.s32 4294967295, %s3714_s21   ;;  %s3027_s23 = sadd.s32 4294967294, %s3714_s21   ;;  %s3714_s21 = sphi %s3760_s21, %s5314_s21   ;;  %s3710_s20 = sphi %s3758_s20, %s5313_s20   ;;  %s3706_s19 = sphi %s3756_s19, %s5312_s19   ;;  %s3702_s18 = sphi %s3754_s18, %s5311_s18  }
   0x7   : > { %p42_p0 = scmp.ne.s32.totalorder %s3706_s19, %s3702_s18  ;;  %p43_p1 = scmp.eq.s32.totalorder %s3775_s22, 0 }
   0x8   : > { %p150_p2 = scmp.eq.s32.totalorder %s3775_s22, 1  ;;  %p156_p3 = scmp.eq.s32.totalorder %s3027_s23, 1 }
   0x9   : > { %p3784_p4 = por %p43_p1, %p42_p0  ;;  %p3028_p5 = scmp.ge.s32.totalorder %s3714_s21, 1 }
   0xa   : > { %p3789_p6 = por %p156_p3, %p42_p0  ;;  %p163_p7 = scmp.lt.s32.totalorder %s3714_s21, 3 }
   0xb   : > { %s174_s28 = sshll.u32 %s5290_s1, 4  ;;  %s3716_s30 = smov [#allocation5]   ;;  %s175_s28 = int_to_ptr.hbm [resolvable:$true] %s174_s28 }
   0xc   : > { %p3797_p8 = pnand %p3028_p5, %p163_p7  ;;  %s176_s6 = sshll.u32 %s3716_s30, 4  ;;  %s177_s6 = int_to_ptr.vmem [resolvable:$true] %s176_s6 }
   0xd   : > { %s191_s9 = sshll.u32 %s5292_s3, 4  ;;  %s3717_s10 = smov 64   ;;  %s192_s9 = int_to_ptr.hbm [resolvable:$true] %s191_s9 }
   0xe   : > { %p3362_p9 = pneg %p3797_p8  ;;  %s3718_s11 = smov 4  }
   0xf   : > { %s3719_s12 = smov [#allocation7]   ;;  %s3810_s14 = sadd.s32 1, %s3714_s21  }
  0x10   : > { %p3363_p10 = pnand %p3362_p9, %p43_p1  ;;  %s193_s13 = sshll.u32 %s3719_s12, 4  ;;  %s194_s13 = int_to_ptr.vmem [resolvable:$true] %s193_s13 }
  0x11   : > { %s29_s15 = sadd.s32 1, %s3710_s20  ;;  %s26_s16 = ssub.s32 %s3714_s21, %s3810_s14 }
  0x12   : > { %3365 = dma.hbm_to_vmem [thread:$0]  (!%p3363_p10), %s175_s28, 3072, %s177_s6, [#allocation6], %s3717_s10, %s3717_s10, %s3718_s11  }
  0x13   : > { %3368 = dma.hbm_to_vmem [thread:$0]  (!%p3363_p10), %s192_s9, 3072, %s194_s13, [#allocation6], %s3717_s10, %s3717_s10, %s3718_s11  }
  0x14   : > { %p36_p12 = scmp.ne.s32.totalorder %s3710_s20, %s3706_s19  ;;  %p27_p13 = scmp.eq.s32.totalorder %s26_s16, 0 }
  0x15   : > { %p37_p0 = scmp.eq.s32.totalorder %s3714_s21, 0  ;;  %p3379_p5 = scmp.lt.s32.totalorder %s3714_s21, 2 }
  0x16   : > { %p3820_p3 = por %p150_p2, %p36_p12  ;;  %s210_s26 = sand.u32 1, %s3710_s20  }
  0x17   : > { %s3826_s23 = scalar_select %p27_p13, %s3710_s20, %s29_s15  }
  0x18   : > { %p38_p7 = por %p37_p0, %p36_p12  ;;  %s3032_s27 = sshll.u32 %s210_s26, 7 }
  0x19   : > { %s3237_s28 = sshll.u32 %s3714_s21, 7  ;;  %s214_s8 = scalar_lea.vmem [#allocation2], %s3032_s27 }
  0x1a   : > { %s219_s7 = scalar_lea.hbm %s5289_s0, %s3237_s28  ;;  %s222_s9 = sshll.u32 %s214_s8, 4  ;;  %s223_s9 = int_to_ptr.vmem [resolvable:$true] %s222_s9 }
  0x1b   : > { %s220_s10 = sshll.u32 %s219_s7, 4  ;;  %p3833_p2 = pnand %p3379_p5, %p38_p7  ;;  %s221_s10 = int_to_ptr.hbm [resolvable:$true] %s220_s10 }
  0x1c   : > { %s211_s12 = scalar_lea.sflag [#allocation3], %s210_s26  ;;  %s3614_s13 = sshra.s32 %s221_s10, 4  ;;  %s3615_s13 = int_to_ptr.hbm [resolvable:$true] %s3614_s13 }
  0x1d   : > { %s3616_s15 = scalar_lea.hbm %s3615_s13, 128  ;;  %p3618_p10 = pneg %p3833_p2 }
  0x1e   : > { %p3617_p9 = scmp.ne.s32.totalorder %s3615_s13, %s3616_s15  ;;  %s3621_s28 = scalar_lea.hbm %s5289_s0, 256 }
  0x1f   : > { %p3622_p0 = scmp.lt.s32.totalorder %s3615_s13, %s5289_s0  ;;  %p3623_p5 = scmp.lt.s32.totalorder %s3621_s28, %s3616_s15 }
  0x20   : > { %p3619_p12 = pnand %p3618_p10, %p3617_p9 }
  0x21   : > { %p3624_p7 = por %p3623_p5, %p3622_p0 }
  0x22   : > { %p3620_p13 = pneg %p3619_p12 }
  0x24   : > { %p3625_p11 = pnand %p3624_p7, %p3620_p13 }
  0x26   : > { %3628 = shalt.err (!%p3625_p11)
}
  0x27   : > { %s3720_s26 = smov 128   ;;  %s3721_s7 = smov 8  }
  0x28   : > { %3372 = dma.hbm_to_vmem [thread:$0]  (!%p3833_p2), %s221_s10, 2048, %s223_s9, %s211_s12, %s3720_s26, %s3720_s26, %s3721_s7  }
  0x29   : > { %234 = sbr.rel (%p3797_p8) target bundleno = 854 (0x356), region = 40  ;;  %s3850_s8 = sand.u32 (!%p3797_p8), 1, %s3706_s19  }
  0x2a   : > { %s3036_s16 = sshll.u32 (!%p3797_p8), %s3850_s8, 7  ;;  %s237_s13 = scalar_lea.sflag (!%p3797_p8), [#allocation3], %s3850_s8 }
  0x2b   : > { %s3854_s15 = scalar_lea.vmem (!%p3797_p8), [#allocation2], %s3036_s16 }
  0x2e   : > { %3689 = dma.done.wait (%p3784_p4), %s237_s13, 2048  }
  0x2f   : > { %3691 = vsyncadd (%p3784_p4), %s237_s13, 4294965248 }
  0x30   : > { %3693 = dma.done.wait (%p43_p1), [#allocation6], 6144  }
  0x31   : > { %3695 = vsyncadd (%p43_p1), [#allocation6], 4294961152  ;;  %v3245_v0 = vld [vmem:[#allocation5 + $0x38] sm:$0xff]  ;;  %v3244_v2 = vld [vmem:[#allocation5 + $0x30] sm:$0xff]  ;;  %v408_v6 = vlaneseq  ;;  %s3039_s11 = sshll.u32 %s3850_s8, 6  ;;  %s3286_s30 = sshll.u32 %s3775_s22, 6 }
  0x32   : > { %v3253_v1 = vld [vmem:[#allocation5 + $0x78] sm:$0xff]  ;;  %3334 = vmatpush.bf16.msra.mxu2 %v3245_v0  ;;  %v3252_v3 = vld [vmem:[#allocation5 + $0x70] sm:$0xff]  ;;  %878 = vmatpush.bf16.msra.mxu0 %v3245_v0  ;;  %v3243_v4 = vld [vmem:[#allocation5 + $0x28] sm:$0xff]  ;;  %s4893_s12 = scalar_lea.vmem [#allocation8], %s3039_s11  ;;  %s2931_s7 = scalar_lea.hbm %s5294_s5, %s3286_s30 }
  0x33   : > { %3342 = vmatpush.bf16.msra.mxu3 %v3253_v1  ;;  %927 = vmatpush.bf16.msra.mxu1 %v3253_v1  ;;  %v3251_v5 = vld [vmem:[#allocation5 + $0x68] sm:$0xff]  ;;  %v3242_v7 = vld [vmem:[#allocation5 + $0x20] sm:$0xff]  ;;  %v3865_v9 = vld [vmem:[%s3854_s15 + $0x38] sm:$0xff]  ;;  %v3873_v12 = vshrl.u32 %v408_v6, 7  ;;  %s2932_s22 = sshll.u32 %s4893_s12, 4  ;;  %s2934_s16 = sshll.u32 %s2931_s7, 4  ;;  %s2933_s22 = int_to_ptr.vmem [resolvable:$true] %s2932_s22  ;;  %s2935_s16 = int_to_ptr.hbm [resolvable:$true] %s2934_s16 }
  0x34   : > { %v3250_v8 = vld [vmem:[#allocation5 + $0x60] sm:$0xff]  ;;  %v3871_v11 = vld [vmem:[%s3854_s15 + $0x48] sm:$0xff]  ;;  %v3241_v13 = vld [vmem:[#allocation5 + $0x18] sm:$0xff]  ;;  %v399_v15 = vrot.slane %v3865_v9, 7  ;;  %s2920_s13 = scalar_lea.sflag [#allocation4], %s3850_s8  ;;  %s3664_s10 = scalar_lea.hbm %s5294_s5, 128 }
  0x35   : > { %v3868_v10 = vld [vmem:[%s3854_s15 + $0x40] sm:$0xff]  ;;  %v3249_v14 = vld [vmem:[#allocation5 + $0x58] sm:$0xff]  ;;  %v401_v17 = vrot.slane %v3871_v11, 7  ;;  %vm410_vm0 = vcmp.lt.s32.totalorder %v3873_v12, 1  ;;  %v3240_v18 = vld [vmem:[#allocation5 + $0x10] sm:$0xff]  ;;  %v564_v25 = vpack.c.bf16 %v3871_v11, %v3871_v11  ;;  %vm442_vm1 = vcmp.ge.s32.totalorder %v3873_v12, 1 }
  0x36   : > { %3335 = vmatpush.bf16.msra.mxu2 %v3244_v2  ;;  %879 = vmatpush.bf16.msra.mxu0 %v3244_v2  ;;  %v400_v16 = vrot.slane %v3868_v10, 7  ;;  %v3248_v19 = vld [vmem:[#allocation5 + $0x50] sm:$0xff]  ;;  %v563_v24 = vpack.c.bf16 %v3868_v10, %v3868_v10  ;;  %v3239_v26 = vld [vmem:[#allocation5 + $0x8] sm:$0xff]  ;;  %v3238_v32 = vld [vmem:[#allocation5] sm:$0xff]  ;;  %vm490_vm2 = vcmp.lt.s32.totalorder %v3873_v12, 7 }
  0x37   : > { %3343 = vmatpush.bf16.msra.mxu3 %v3252_v3  ;;  %928 = vmatpush.bf16.msra.mxu1 %v3252_v3  ;;  %v3247_v27 = vld [vmem:[#allocation5 + $0x48] sm:$0xff]  ;;  %v660_v31 = vunpack.c.l.b16 %v564_v25  ;;  %v3246_v33 = vld [vmem:[#allocation5 + $0x40] sm:$0xff]  ;;  %v3261_v34 = vld [vmem:[#allocation5 + $0xb8] sm:$0xff] }
  0x38   : > { %v417_v20 = vsel %vm410_vm0, %v400_v16, %v401_v17  ;;  %v418_v21 = vsel %vm410_vm0, %v399_v15, %v400_v16  ;;  %v659_v30 = vunpack.c.l.b16 %v563_v24  ;;  %v3890_v35 = vld [vmem:[%s3854_s15 + $0x50] sm:$0xff]  ;;  %v3893_v36 = vld [vmem:[%s3854_s15 + $0x58] sm:$0xff]  ;;  %v3259_v44 = vld [vmem:[#allocation5 + $0xa8] sm:$0xff] }
  0x39   : > { %v547_v22 = vpack.c.bf16 %v418_v21, %v418_v21  ;;  %v548_v23 = vpack.c.bf16 %v417_v20, %v417_v20  ;;  %v402_v39 = vrot.slane %v3890_v35, 7  ;;  %v403_v40 = vrot.slane %v3893_v36, 7  ;;  %v3260_v41 = vld [vmem:[#allocation5 + $0xb0] sm:$0xff]  ;;  %v3258_v49 = vld [vmem:[#allocation5 + $0xa0] sm:$0xff]  ;;  %v3909_v55 = vld [vmem:[%s3854_s15 + $0x68] sm:$0xff] }
  0x3a   : > { %3336 = vmatpush.bf16.msra.mxu2 %v3243_v4  ;;  %880 = vmatpush.bf16.msra.mxu0 %v3243_v4  ;;  %v671_v38 = vpack.c.b16 %v660_v31, %v659_v30  ;;  %v565_v47 = vpack.c.bf16 %v3890_v35, %v3890_v35  ;;  %v566_v48 = vpack.c.bf16 %v3893_v36, %v3893_v36  ;;  %v3906_v54 = vld [vmem:[%s3854_s15 + $0x60] sm:$0xff]  ;;  %v3257_v56 = vld [vmem:[#allocation5 + $0x98] sm:$0xff]  ;;  %v405_v60 = vrot.slane %v3909_v55, 7  ;;  %v3256_v61 = vld [vmem:[#allocation5 + $0x90] sm:$0xff] }
  0x3b   : > { %3344 = vmatpush.bf16.msra.mxu3 %v3251_v5  ;;  %929 = vmatpush.bf16.msra.mxu1 %v3251_v5  ;;  %v611_v28 = vunpack.c.l.b16 %v547_v22  ;;  %v612_v29 = vunpack.c.l.b16 %v548_v23  ;;  %v415_v42 = vsel %vm410_vm0, %v402_v39, %v403_v40  ;;  %v416_v43 = vsel %vm410_vm0, %v401_v17, %v402_v39  ;;  %v3255_v0 = vld [vmem:[#allocation5 + $0x88] sm:$0xff]  ;;  %v3922_v5 = vld [vmem:[%s3854_s15 + $0x78] sm:$0xff]  ;;  %v3925_v6 = vld [vmem:[%s3854_s15] sm:$0xff] }
  0x3c   : > { %v549_v45 = vpack.c.bf16 %v416_v43, %v416_v43  ;;  %v550_v46 = vpack.c.bf16 %v415_v42, %v415_v42  ;;  %v661_v52 = vunpack.c.l.b16 %v565_v47  ;;  %v662_v53 = vunpack.c.l.b16 %v566_v48  ;;  %v3931_v21 = vld [vmem:[%s3854_s15 + $0x70] sm:$0xff] }
  0x3d   : > { %v623_v37 = vpack.c.b16 %v612_v29, %v611_v28  ;;  %v404_v59 = vrot.slane %v3906_v54, 7  ;;  %v567_v3 = vpack.c.bf16 %v3906_v54, %v3906_v54  ;;  %v568_v4 = vpack.c.bf16 %v3909_v55, %v3909_v55 }
  0x3e   : > { %3337 = vmatpush.bf16.msra.mxu2 %v3242_v7  ;;  %881 = vmatpush.bf16.msra.mxu0 %v3242_v7  ;;  %v613_v50 = vunpack.c.l.b16 %v549_v45  ;;  %v614_v51 = vunpack.c.l.b16 %v550_v46  ;;  %v672_v58 = vpack.c.b16 %v662_v53, %v661_v52  ;;  %v3254_v7 = vld [vmem:[#allocation5 + $0x80] sm:$0xff]  ;;  %v407_v17 = vrot.slane %v3922_v5, 7 }
  0x3f   : > { %3345 = vmatpush.bf16.msra.mxu3 %v3250_v8  ;;  %930 = vmatpush.bf16.msra.mxu1 %v3250_v8  ;;  %v413_v62 = vsel %vm410_vm0, %v404_v59, %v405_v60  ;;  %v414_v63 = vsel %vm410_vm0, %v403_v40, %v404_v59  ;;  %v664_v16 = vunpack.c.l.b16 %v568_v4  ;;  %v406_v29 = vrot.slane %v3931_v21, 7 }
  0x40   : > { %v624_v57 = vpack.c.b16 %v614_v51, %v613_v50  ;;  %v551_v1 = vpack.c.bf16 %v414_v63, %v414_v63  ;;  %v552_v2 = vpack.c.bf16 %v413_v62, %v413_v62  ;;  %v570_v45 = vpack.c.bf16 %v3922_v5, %v3922_v5  ;;  %v280_v50 = vld [vmem:[%s3854_s15 + $0x10] sm:$0xff]  ;;  %v281_v51 = vld [vmem:[%s3854_s15 + $0x18] sm:$0xff] }
  0x41   : > { %v411_v39 = vsel %vm410_vm0, %v406_v29, %v407_v17  ;;  %v412_v40 = vsel %vm410_vm0, %v405_v60, %v406_v29  ;;  %v394_v52 = vrot.slane %v280_v50, 7  ;;  %v395_v53 = vrot.slane %v281_v51, 7 }
  0x42   : > { %3338 = vmatpush.bf16.msra.mxu2 %v3241_v13  ;;  %882 = vmatpush.bf16.msra.mxu0 %v3241_v13  ;;  %v615_v8 = vunpack.c.l.b16 %v551_v1  ;;  %v616_v13 = vunpack.c.l.b16 %v552_v2  ;;  %v553_v42 = vpack.c.bf16 %v412_v40, %v412_v40  ;;  %v554_v43 = vpack.c.bf16 %v411_v39, %v411_v39 }
  0x43   : > { %3346 = vmatpush.bf16.msra.mxu3 %v3249_v14  ;;  %931 = vmatpush.bf16.msra.mxu1 %v3249_v14  ;;  %v663_v14 = vunpack.c.l.b16 %v567_v3  ;;  %v474_v62 = vrot.slane %v3925_v6, 1  ;;  %v557_v3 = vpack.c.bf16 %v280_v50, %v280_v50  ;;  %v558_v4 = vpack.c.bf16 %v281_v51, %v281_v51 }
  0x44   : > { %v625_v25 = vpack.c.b16 %v616_v13, %v615_v8  ;;  %v617_v46 = vunpack.c.l.b16 %v553_v42  ;;  %v618_v47 = vunpack.c.l.b16 %v554_v43 }
  0x45   : > { %v653_v8 = vunpack.c.l.b16 %v557_v3  ;;  %v654_v13 = vunpack.c.l.b16 %v558_v4 }
  0x46   : > { %3339 = vmatpush.bf16.msra.mxu2 %v3240_v18  ;;  %883 = vmatpush.bf16.msra.mxu0 %v3240_v18  ;;  %v279_v18 = vld [vmem:[%s3854_s15 + $0x8] sm:$0xff] }
  0x47   : > { %3347 = vmatpush.bf16.msra.mxu3 %v3248_v19  ;;  %932 = vmatpush.bf16.msra.mxu1 %v3248_v19  ;;  %v392_v19 = vrot.slane %v3925_v6, 7  ;;  %v393_v20 = vrot.slane %v279_v18, 7  ;;  %v475_v63 = vrot.slane %v279_v18, 1 }
  0x49   : > { %v426_v22 = vsel %vm410_vm0, %v407_v17, %v392_v19  ;;  %v425_v23 = vsel %vm410_vm0, %v392_v19, %v393_v20  ;;  %v668_v17 = vpack.c.b16 %v654_v13, %v653_v8 }
  0x4a   : > { %3340 = vmatpush.bf16.msra.mxu2 %v3239_v26  ;;  %884 = vmatpush.bf16.msra.mxu0 %v3239_v26  ;;  %v458_v24 = vsel %vm442_vm1, %v426_v22, 0.0  ;;  %v673_v26 = vpack.c.b16 %v664_v16, %v663_v14  ;;  %v540_v28 = vpack.c.bf16 %v425_v23, %v425_v23  ;;  %v505_v16 = vsel %vm490_vm2, %v474_v62, %v475_v63  ;;  %v282_v23 = vld [vmem:[%s3854_s15 + $0x20] sm:$0xff] }
  0x4b   : > { %3348 = vmatpush.bf16.msra.mxu3 %v3247_v27  ;;  %933 = vmatpush.bf16.msra.mxu1 %v3247_v27  ;;  %v539_v27 = vpack.c.bf16 %v458_v24, %v458_v24  ;;  %v283_v24 = vld [vmem:[%s3854_s15 + $0x28] sm:$0xff] }
  0x4c   : > { %v604_v31 = vunpack.c.l.b16 %v540_v28  ;;  %v560_v39 = vpack.c.bf16 %v283_v24, %v283_v24 }
  0x4d   : > { %v603_v30 = vunpack.c.l.b16 %v539_v27 }
  0x4e   : > { %3341 = vmatpush.bf16.msra.mxu2 %v3238_v32  ;;  %885 = vmatpush.bf16.msra.mxu0 %v3238_v32  ;;  %v555_v32 = vpack.c.bf16 %v3925_v6, %v3925_v6  ;;  %v656_v42 = vunpack.c.l.b16 %v560_v39  ;;  %v486_v39 = vrot.slane %v3906_v54, 1  ;;  %v488_v54 = vrot.slane %v3931_v21, 1 }
  0x4f   : > { %3349 = vmatpush.bf16.msra.mxu3 %v3246_v33  ;;  %934 = vmatpush.bf16.msra.mxu1 %v3246_v33  ;;  %v556_v33 = vpack.c.bf16 %v279_v18, %v279_v18  ;;  %v571_v18 = vpack.c.bf16 %v505_v16, %v505_v16 }
  0x51   : > { %906 = vmatmul.bf16.vlgmr.msra.gmra.mxu2 %v623_v37  ;;  %v651_v37 = vunpack.c.l.b16 %v555_v32  ;;  %v477_v32 = vrot.slane %v281_v51, 1 }
  0x52   : > { %976 = vmatpush.bf16.msrb.mxu2 %v3261_v34  ;;  %955 = vmatmul.bf16.vlgmr.msra.gmra.mxu3 %v671_v38  ;;  %v619_v34 = vpack.c.b16 %v604_v31, %v603_v30  ;;  %v652_v38 = vunpack.c.l.b16 %v556_v33  ;;  %v478_v33 = vrot.slane %v282_v23, 1 }
  0x54   : > { %886 = vmatmul.bf16.vlgmr.msra.gmra.mxu0 %v619_v34  ;;  %v502_v43 = vsel %vm490_vm2, %v477_v32, %v478_v33 }
  0x56   : > { %977 = vmatpush.bf16.msrb.mxu2 %v3260_v41  ;;  %v667_v41 = vpack.c.b16 %v652_v38, %v651_v37  ;;  %v559_v38 = vpack.c.bf16 %v282_v23, %v282_v23 }
  0x58   : > { %935 = vmatmul.bf16.vlgmr.msra.gmra.mxu1 %v667_v41  ;;  %v655_v41 = vunpack.c.l.b16 %v559_v38  ;;  %v485_v38 = vrot.slane %v3893_v36, 1  ;;  %v487_v36 = vrot.slane %v3909_v55, 1  ;;  %v489_v55 = vrot.slane %v3922_v5, 1 }
  0x5a   : > { %978 = vmatpush.bf16.msrb.mxu2 %v3259_v44  ;;  %v569_v44 = vpack.c.bf16 %v3931_v21, %v3931_v21 }
  0x5c   : > { %v665_v48 = vunpack.c.l.b16 %v569_v44 }
  0x5e   : > { %979 = vmatpush.bf16.msrb.mxu2 %v3258_v49  ;;  %v666_v49 = vunpack.c.l.b16 %v570_v45  ;;  %v669_v45 = vpack.c.b16 %v656_v42, %v655_v41 }
  0x60   : > { %v674_v59 = vpack.c.b16 %v666_v49, %v665_v48 }
  0x61   : > { %911 = vmatmul.bf16.gmra.mxu2 %v624_v57  ;;  %v424_v57 = vsel %vm410_vm0, %v393_v20, %v394_v52  ;;  %v699_v20 = vunpack.c.l.b16 %v571_v18 }
  0x62   : > { %980 = vmatpush.bf16.msrb.mxu2 %v3257_v56  ;;  %960 = vmatmul.bf16.gmra.mxu3 %v672_v58  ;;  %v423_v56 = vsel %vm410_vm0, %v394_v52, %v395_v53  ;;  %v626_v58 = vpack.c.b16 %v618_v47, %v617_v46  ;;  %v541_v60 = vpack.c.bf16 %v424_v57, %v424_v57 }
  0x63   : > { %v574_v47 = vpack.c.bf16 %v502_v43, %v502_v43 }
  0x64   : > { %v605_v1 = vunpack.c.l.b16 %v541_v60 }
  0x65   : > { %v702_v49 = vunpack.c.l.b16 %v574_v47  ;;  %v492_v47 = vsel %vm490_vm2, %v487_v36, %v488_v54 }
  0x66   : > { %981 = vmatpush.bf16.msrb.mxu2 %v3256_v61  ;;  %v542_v61 = vpack.c.bf16 %v423_v56, %v423_v56 }
  0x68   : > { %v606_v2 = vunpack.c.l.b16 %v542_v61  ;;  %940 = vmatmul.bf16.gmra.mxu1 %v668_v17 }
  0x6a   : > { %982 = vmatpush.bf16.msrb.mxu2 %v3255_v0  ;;  %v476_v0 = vrot.slane %v280_v50, 1  ;;  %v284_v50 = vld [vmem:[%s3854_s15 + $0x30] sm:$0xff]  ;;  %s3658_s15 = sshra.s32 %s2935_s16, 4  ;;  %s3659_s15 = int_to_ptr.hbm [resolvable:$true] %s3658_s15 }
  0x6b   : > { %v398_v51 = vrot.slane %v284_v50, 7  ;;  %v480_v60 = vrot.slane %v284_v50, 1  ;;  %s3660_s24 = scalar_lea.hbm %s3659_s15, 64  ;;  %p3665_p11 = scmp.lt.s32.totalorder %s3659_s15, %s5294_s5 }
  0x6c   : > { %v504_v14 = vsel %vm490_vm2, %v475_v63, %v476_v0  ;;  %v503_v44 = vsel %vm490_vm2, %v476_v0, %v477_v32  ;;  %v561_v0 = vpack.c.bf16 %v284_v50, %v284_v50  ;;  %p3661_p1 = scmp.ne.s32.totalorder %s3659_s15, %s3660_s24  ;;  %p3666_p2 = scmp.lt.s32.totalorder %s3664_s10, %s3660_s24 }
  0x6d   : > { %v572_v19 = vpack.c.bf16 %v504_v14, %v504_v14  ;;  %v573_v46 = vpack.c.bf16 %v503_v44, %v503_v44  ;;  %v419_v52 = vsel %vm410_vm0, %v398_v51, %v399_v15 }
  0x6e   : > { %983 = vmatpush.bf16.msrb.mxu2 %v3254_v7  ;;  %v620_v7 = vpack.c.b16 %v606_v2, %v605_v1  ;;  %v562_v1 = vpack.c.bf16 %v3865_v9, %v3865_v9  ;;  %v657_v3 = vunpack.c.l.b16 %v561_v0  ;;  %p3662_p4 = pnand %p3661_p1, %p3820_p3  ;;  %p3667_p9 = por %p3666_p2, %p3665_p11 }
  0x6f   : > { %v700_v22 = vunpack.c.l.b16 %v572_v19  ;;  %v701_v48 = vunpack.c.l.b16 %v573_v46  ;;  %v481_v19 = vrot.slane %v3865_v9, 1 }
  0x70   : > { %891 = vmatmul.bf16.gmra.mxu0 %v620_v7  ;;  %v658_v4 = vunpack.c.l.b16 %v562_v1  ;;  %p3663_p8 = pneg %p3662_p4 }
  0x71   : > { %916 = vmatmul.bf16.gmra.mxu2 %v625_v25  ;;  %v396_v25 = vrot.slane %v282_v23, 7  ;;  %v715_v29 = vpack.c.b16 %v700_v22, %v699_v20  ;;  %v716_v56 = vpack.c.b16 %v702_v49, %v701_v48  ;;  %v482_v20 = vrot.slane %v3868_v10, 1 }
  0x72   : > { %965 = vmatmul.bf16.gmra.mxu3 %v673_v26  ;;  %v397_v26 = vrot.slane %v283_v24, 7  ;;  %v670_v8 = vpack.c.b16 %v658_v4, %v657_v3  ;;  %v499_v23 = vsel %vm490_vm2, %v480_v60, %v481_v19  ;;  %v493_v48 = vsel %vm490_vm2, %v486_v39, %v487_v36  ;;  %p3668_p10 = pnand %p3667_p9, %p3663_p8 }
  0x73   : > { %v422_v28 = vsel %vm410_vm0, %v395_v53, %v396_v25  ;;  %v498_v22 = vsel %vm490_vm2, %v481_v19, %v482_v20  ;;  %v583_v50 = vpack.c.bf16 %v493_v48, %v493_v48 }
  0x74   : > { %v421_v27 = vsel %vm410_vm0, %v396_v25, %v397_v26  ;;  %v543_v30 = vpack.c.bf16 %v422_v28, %v422_v28  ;;  %v420_v53 = vsel %vm410_vm0, %v397_v26, %v398_v51  ;;  %v578_v25 = vpack.c.bf16 %v498_v22, %v498_v22 }
  0x75   : > { %v544_v31 = vpack.c.bf16 %v421_v27, %v421_v27  ;;  %v545_v57 = vpack.c.bf16 %v420_v53, %v420_v53  ;;  %v584_v51 = vpack.c.bf16 %v492_v47, %v492_v47 }
  0x76   : > { %v607_v34 = vunpack.c.l.b16 %v543_v30  ;;  %v706_v27 = vunpack.c.l.b16 %v578_v25  ;;  %v484_v30 = vrot.slane %v3890_v35, 1 }
  0x77   : > { %v608_v37 = vunpack.c.l.b16 %v544_v31  ;;  %v609_v61 = vunpack.c.l.b16 %v545_v57  ;;  %v712_v53 = vunpack.c.l.b16 %v584_v51 }
  0x78   : > { %945 = vmatmul.bf16.gmra.mxu1 %v669_v45  ;;  %v495_v35 = vsel %vm490_vm2, %v484_v30, %v485_v38 }
  0x79   : > { %v621_v40 = vpack.c.b16 %v608_v37, %v607_v34  ;;  %v581_v41 = vpack.c.bf16 %v495_v35, %v495_v35 }
  0x7b   : > { %v709_v43 = vunpack.c.l.b16 %v581_v41 }
  0x80   : > { %896 = vmatmul.bf16.gmra.mxu0 %v621_v40 }
  0x81   : > { %921 = vmatmul.bf16.gmra.mxu2 %v626_v58  ;;  %v546_v58 = vpack.c.bf16 %v419_v52, %v419_v52  ;;  %v711_v52 = vunpack.c.l.b16 %v583_v50 }
  0x82   : > { %970 = vmatmul.bf16.gmra.mxu3 %v674_v59  ;;  %v479_v59 = vrot.slane %v283_v24, 1  ;;  %v577_v24 = vpack.c.bf16 %v499_v23, %v499_v23 }
  0x83   : > { %v610_v63 = vunpack.c.l.b16 %v546_v58  ;;  %v721_v21 = vpack.c.b16 %v712_v53, %v711_v52  ;;  %v506_v58 = vsel %vm490_vm2, %v489_v55, %v474_v62  ;;  %v3276_v53 = vld [vmem:[#allocation7 + $0x70] sm:$0xff] }
  0x84   : > { %v500_v15 = vsel %vm490_vm2, %v479_v59, %v480_v60  ;;  %v501_v7 = vsel %vm490_vm2, %v478_v33, %v479_v59  ;;  %v705_v26 = vunpack.c.l.b16 %v577_v24  ;;  %v491_v60 = vsel %vm490_vm2, %v488_v54, %v489_v55 }
  0x85   : > { %v622_v2 = vpack.c.b16 %v610_v63, %v609_v61  ;;  %v575_v13 = vpack.c.bf16 %v501_v7, %v501_v7  ;;  %v576_v14 = vpack.c.bf16 %v500_v15, %v500_v15  ;;  %v585_v5 = vpack.c.bf16 %v491_v60, %v491_v60 }
  0x86   : > { %v718_v28 = vpack.c.b16 %v706_v27, %v705_v26 }
  0x87   : > { %v703_v16 = vunpack.c.l.b16 %v575_v13  ;;  %v704_v17 = vunpack.c.l.b16 %v576_v14  ;;  %v713_v1 = vunpack.c.l.b16 %v585_v5  ;;  %v4044_v14 = vld [vmem:[%s5291_s2] ss:$0 sm:$0xff] }
  0x88   : > { %950 = vmatmul.bf16.gmra.mxu1 %v670_v8 }
  0x89   : > { %v717_v18 = vpack.c.b16 %v704_v17, %v703_v16 }
  0x90   : > { %901 = vmatmul.bf16.gmra.mxu0 %v622_v2 }
  0x91   : > { %984 = vmatmul.bf16.vlgmr.msrb.gmra.mxu2 %v715_v29  ;;  %v483_v29 = vrot.slane %v3871_v11, 1  ;;  %v494_v11 = vsel %vm490_vm2, %v485_v38, %v486_v39 }
  0x92   : > { %v582_v42 = vpack.c.bf16 %v494_v11, %v494_v11 }
  0x93   : > { %v496_v9 = vsel %vm490_vm2, %v483_v29, %v484_v30  ;;  %v497_v10 = vsel %vm490_vm2, %v482_v20, %v483_v29 }
  0x94   : > { %v579_v31 = vpack.c.bf16 %v497_v10, %v497_v10  ;;  %v580_v32 = vpack.c.bf16 %v496_v9, %v496_v9  ;;  %v710_v44 = vunpack.c.l.b16 %v582_v42 }
  0x96   : > { %v707_v33 = vunpack.c.l.b16 %v579_v31  ;;  %v708_v34 = vunpack.c.l.b16 %v580_v32  ;;  %v720_v46 = vpack.c.b16 %v710_v44, %v709_v43  ;;  %v3277_v43 = vld [vmem:[#allocation7 + $0x78] sm:$0xff] }
  0x97   : > { %2149 = vmatpush.bf16.msrb.mxu0 %v3277_v43  ;;  %v3285_v43 = vld [vmem:[#allocation7 + $0xb8] sm:$0xff] }
  0x98   : > { %v719_v37 = vpack.c.b16 %v708_v34, %v707_v33  ;;  %2198 = vmatpush.bf16.msrb.mxu1 %v3285_v43 }
  0x9b   : > { %2150 = vmatpush.bf16.msrb.mxu0 %v3276_v53 }
  0xa1   : > { %989 = vmatmul.bf16.gmra.mxu2 %v716_v56  ;;  %v4019_v56 = vadd.s32 120, %v3873_v12 }
  0xa3   : > { %vm522_vm3 = vcmp.lt.s32.totalorder %v4019_v56, 127 }
  0xa4   : > { %v538_v61 = vsel %vm522_vm3, %v506_v58, 0.0 }
  0xa5   : > { %v586_v0 = vpack.c.bf16 %v538_v61, %v538_v61 }
  0xa7   : > { %v714_v2 = vunpack.c.l.b16 %v586_v0 }
  0xa9   : > { %v722_v62 = vpack.c.b16 %v714_v2, %v713_v1 }
  0xb1   : > { %994 = vmatmul.bf16.gmra.mxu2 %v717_v18 }
  0xc1   : > { %999 = vmatmul.bf16.gmra.mxu2 %v718_v28 }
  0xd1   : > { %1004 = vmatmul.bf16.gmra.mxu2 %v719_v37  ;;  %v887_v4 = vpop.f32.mrf.mxu0 }
  0xd2   : > { %v888_v17 = vadd.f32 %v4044_v14, %v887_v4 }
  0xd4   : > { %v4006_v40 = vpop.f32.mrf.mxu2 }
  0xd5   : > { %v956_v59 = vpop.f32.mrf.mxu3  ;;  %v936_v7 = vpop.f32.mrf.mxu1 }
  0xd6   : > { %v937_v20 = vadd.f32 %v936_v7, %v888_v17 }
  0xd9   : > { %v889_v13 = vpop.f32.mrf.mxu0 }
  0xda   : > { %v890_v25 = vadd.f32 %v4044_v14, %v889_v13 }
  0xdc   : > { %v4008_v45 = vpop.f32.mrf.mxu2 }
  0xdd   : > { %v4035_v6 = vpop.f32.mrf.mxu3  ;;  %v938_v18 = vpop.f32.mrf.mxu1  ;;  %v910_v60 = vadd.f32 %v4044_v14, %v4008_v45 }
  0xde   : > { %v939_v29 = vadd.f32 %v938_v18, %v890_v25 }
  0xe1   : > { %1009 = vmatmul.bf16.gmra.mxu2 %v720_v46  ;;  %v908_v46 = vadd.f32 %v4044_v14, %v4006_v40 }
  0xe3   : > { %v4084_v55 = vadd.f32 %v956_v59, %v908_v46 }
  0xe4   : > { %v4016_v49 = vpop.f32.mrf.mxu2 }
  0xe5   : > { %v4039_v8 = vpop.f32.mrf.mxu3  ;;  %v941_v27 = vpop.f32.mrf.mxu1  ;;  %v913_v0 = vadd.f32 %v4044_v14, %v4016_v49 }
  0xe7   : > { %v4111_v25 = vadd.f32 %v4039_v8, %v913_v0 }
  0xec   : > { %v4022_v57 = vpop.f32.mrf.mxu2 }
  0xed   : > { %v4049_v19 = vpop.f32.mrf.mxu3  ;;  %v892_v22 = vpop.f32.mrf.mxu0  ;;  %v915_v1 = vadd.f32 %v4044_v14, %v4022_v57 }
  0xee   : > { %v893_v34 = vadd.f32 %v4044_v14, %v892_v22  ;;  %v943_v11 = vpop.f32.mrf.mxu1 }
  0xf0   : > { %v942_v38 = vadd.f32 %v941_v27, %v893_v34 }
  0xf1   : > { %1014 = vmatmul.bf16.gmra.mxu2 %v721_v21 }
  0xf4   : > { %v4033_v63 = vpop.f32.mrf.mxu2 }
  0xf5   : > { %v4060_v30 = vpop.f32.mrf.mxu3  ;;  %v894_v10 = vpop.f32.mrf.mxu0  ;;  %v918_v59 = vadd.f32 %v4044_v14, %v4033_v63 }
  0xf6   : > { %v895_v54 = vadd.f32 %v4044_v14, %v894_v10  ;;  %v946_v13 = vpop.f32.mrf.mxu1  ;;  %v4118_v10 = vadd.f32 %v4049_v19, %v915_v1 }
  0xf8   : > { %v944_v58 = vadd.f32 %v943_v11, %v895_v54 }
  0xfc   : > { %v4037_v3 = vpop.f32.mrf.mxu2 }
  0xfd   : > { %v968_v35 = vpop.f32.mrf.mxu3  ;;  %v897_v47 = vpop.f32.mrf.mxu0 }
  0xfe   : > { %v898_v57 = vadd.f32 %v4044_v14, %v897_v47 }
 0x100   : > { %v947_v11 = vadd.f32 %v946_v13, %v898_v57 }
 0x101   : > { %1019 = vmatmul.bf16.gmra.mxu2 %v722_v62  ;;  %v920_v62 = vadd.f32 %v4044_v14, %v4037_v3 }
 0x104   : > { %v922_v15 = vpop.f32.mrf.mxu2 }
 0x105   : > { %v923_v45 = vadd.f32 %v4044_v14, %v922_v15  ;;  %v971_v22 = vpop.f32.mrf.mxu3 }
 0x107   : > { %v4126_v8 = vadd.f32 %v971_v22, %v923_v45 }
 0x10c   : > { %v4046_v16 = vpop.f32.mrf.mxu2 }
 0x10d   : > { %v4140_v47 = vadd.f32 %v4044_v14, %v4046_v16 }
 0x114   : > { %v985_v23 = vpop.f32.mrf.mxu2 }
 0x115   : > { %v4051_v24 = vadd.f32 %v985_v23, %v937_v20  ;;  %v4107_v20 = vadd.f32 %v4035_v6, %v910_v60  ;;  %v3275_v23 = vld [vmem:[#allocation7 + $0x68] sm:$0xff]  ;;  %v4121_v6 = vadd.f32 %v4060_v30, %v918_v59  ;;  %v948_v59 = vpop.f32.mrf.mxu1 }
 0x116   : > { %2151 = vmatpush.bf16.msrb.mxu0 %v3275_v23 }
 0x117   : > { %v4055_v26 = vmul.f32 0.70710677, %v4051_v24 }
 0x119   : > { %v4058_v28 = vand.u32 2147483647, %v4055_v26 }
 0x11b   : > { %v1073_v9 = vmul.f32 0.3275911, %v4058_v28  ;;  %v1489_v15 = vsub.f32 0.0, %v4058_v28 }
 0x11c   : > { %v987_v31 = vpop.f32.mrf.mxu2 }
 0x11d   : > { %v1089_v32 = vadd.f32 1.0, %v1073_v9  ;;  %v4063_v33 = vadd.f32 %v987_v31, %v939_v29  ;;  %v899_v9 = vpop.f32.mrf.mxu0  ;;  %v4123_v31 = vadd.f32 %v968_v35, %v920_v62  ;;  %v3274_v35 = vld [vmem:[#allocation7 + $0x60] sm:$0xff] }
 0x11e   : > { %2152 = vmatpush.bf16.msrb.mxu0 %v3274_v35 }
 0x11f   : > { %3425 = vrcp.f32 %v1089_v32  ;;  %v4067_v37 = vmul.f32 0.70710677, %v4063_v33  ;;  %v1116_v21 = vand.u32 2147483648, %v1089_v32  ;;  %v1114_v5 = vand.u32 2147483647, %v1089_v32 }
 0x120   : > { %vm1110_vm5 = vweird.f32 %v1089_v32 }
 0x121   : > { %v4070_v39 = vand.u32 2147483647, %v4067_v37  ;;  %v1117_v17 = vor.u32 1.1754944e-38, %v1116_v21  ;;  %vm1115_vm7 = vcmp.eq.f32.partialorder %v1114_v5, 8.507059e+37 }
 0x123   : > { %v1074_v41 = vmul.f32 0.3275911, %v4070_v39  ;;  %v1490_v30 = vsub.f32 0.0, %v4070_v39 }
 0x124   : > { %v990_v42 = vpop.f32.mrf.mxu2 }
 0x125   : > { %v3426_v44 = vpop.eup %3425  ;;  %v4075_v36 = vadd.f32 %v990_v42, %v942_v38  ;;  %v4078_v50 = vadd.f32 1.0, %v1074_v41  ;;  %v1505_v42 = vmul.f32 %v1489_v15, %v4058_v28  ;;  %v1506_v62 = vmul.f32 %v1490_v30, %v4070_v39  ;;  %v902_v39 = vpop.f32.mrf.mxu0  ;;  %v3272_v30 = vld [vmem:[#allocation7 + $0x50] sm:$0xff] }
 0x126   : > { %v1106_v48 = vmul.f32 %v3426_v44, %v1089_v32  ;;  %vm1111_vm4 = vweird.f32 %v3426_v44 }
 0x127   : > { %v4081_v51 = vmul.f32 0.70710677, %v4075_v36  ;;  %3427 = vrcp.f32 %v4078_v50  ;;  %vm1112_vm6 = vmor %vm1110_vm5, %vm1111_vm4  ;;  %v1131_v19 = vand.u32 2147483648, %v4078_v50  ;;  %v1129_v46 = vand.u32 2147483647, %v4078_v50 }
 0x128   : > { %v1107_v52 = vsub.f32 1.0, %v1106_v48  ;;  %vm1125_vm9 = vweird.f32 %v4078_v50  ;;  %v1521_v0 = vmul.f32 1.442695, %v1505_v42  ;;  %vm1585_vm5 = vcmp.ge.f32.partialorder %v4055_v26, 0.0 }
 0x129   : > { %v4087_v40 = vand.u32 2147483647, %v4081_v51  ;;  %v1132_v16 = vor.u32 1.1754944e-38, %v1131_v19  ;;  %vm1130_vm11 = vcmp.eq.f32.partialorder %v1129_v46, 8.507059e+37  ;;  %v3283_v19 = vld [vmem:[#allocation7 + $0xa8] sm:$0xff] }
 0x12a   : > { %v1108_v61 = vmul.f32 %v3426_v44, %v1107_v52  ;;  %v900_v52 = vadd.f32 %v4044_v14, %v899_v9 }
 0x12b   : > { %v1075_v2 = vmul.f32 0.3275911, %v4087_v40 }
 0x12c   : > { %v1109_v4 = vadd.f32 %v3426_v44, %v1108_v61  ;;  %v992_v7 = vpop.f32.mrf.mxu2  ;;  %v3284_v61 = vld [vmem:[#allocation7 + $0xb0] sm:$0xff] }
 0x12d   : > { %v4101_v49 = vadd.f32 1.0, %v1075_v2  ;;  %v4103_v18 = vadd.f32 %v992_v7, %v944_v58  ;;  %v3428_v63 = vpop.eup %3427  ;;  %2199 = vmatpush.bf16.msrb.mxu1 %v3284_v61  ;;  %v903_v61 = vadd.f32 %v4044_v14, %v902_v39  ;;  %v904_v39 = vpop.f32.mrf.mxu0 }
 0x12e   : > { %v1113_v3 = vsel %vm1112_vm6, %v3426_v44, %v1109_v4  ;;  %v1121_v29 = vmul.f32 %v3428_v63, %v4078_v50  ;;  %vm1126_vm8 = vweird.f32 %v3428_v63 }
 0x12f   : > { %v4113_v27 = vsel %vm1115_vm7, %v1117_v17, %v1113_v3  ;;  %3429 = vrcp.f32 %v4101_v49  ;;  %v4129_v38 = vmul.f32 0.70710677, %v4103_v18  ;;  %vm1127_vm10 = vmor %vm1125_vm9, %vm1126_vm8  ;;  %v3273_v17 = vld [vmem:[#allocation7 + $0x58] sm:$0xff]  ;;  %v1146_v22 = vand.u32 2147483648, %v4101_v49 }
 0x130   : > { %v1345_v32 = vmul.f32 1.0614054, %v4113_v27  ;;  %v1122_v34 = vsub.f32 1.0, %v1121_v29  ;;  %v1144_v23 = vand.u32 2147483647, %v4101_v49  ;;  %2153 = vmatpush.bf16.msrb.mxu0 %v3273_v17  ;;  %v4165_v29 = vmul.f32 0.5, %v4051_v24 }
 0x131   : > { %v4136_v54 = vand.u32 2147483647, %v4129_v38  ;;  %vm1140_vm13 = vweird.f32 %v4101_v49  ;;  %v1147_v24 = vor.u32 1.1754944e-38, %v1146_v22  ;;  %2200 = vmatpush.bf16.msrb.mxu1 %v3283_v19 }
 0x132   : > { %v1361_v41 = vadd.f32 -1.4531521, %v1345_v32  ;;  %v1123_v44 = vmul.f32 %v3428_v63, %v1122_v34  ;;  %v949_v34 = vadd.f32 %v948_v59, %v900_v52  ;;  %vm1145_vm15 = vcmp.eq.f32.partialorder %v1144_v23, 8.507059e+37 }
 0x133   : > { %v1076_v58 = vmul.f32 0.3275911, %v4136_v54 }
 0x134   : > { %v1377_v48 = vmul.f32 %v1361_v41, %v4113_v27  ;;  %v995_v28 = vpop.f32.mrf.mxu2  ;;  %v1124_v21 = vadd.f32 %v3428_v63, %v1123_v44  ;;  %2154 = vmatpush.bf16.msrb.mxu0 %v3272_v30  ;;  %v905_v30 = vadd.f32 %v4044_v14, %v904_v39  ;;  %v3270_v14 = vld [vmem:[#allocation7 + $0x40] sm:$0xff] }
 0x135   : > { %v3430_v53 = vpop.eup %3429  ;;  %v4146_v60 = vadd.f32 %v995_v28, %v947_v11  ;;  %v4151_v45 = vadd.f32 1.0, %v1076_v58 }
 0x136   : > { %v1393_v5 = vadd.f32 1.4214138, %v1377_v48  ;;  %v1136_v1 = vmul.f32 %v3430_v53, %v4101_v49  ;;  %v1128_v2 = vsel %vm1127_vm10, %v3428_v63, %v1124_v21  ;;  %v1491_v63 = vsub.f32 0.0, %v4087_v40 }
 0x137   : > { %v4154_v4 = vsel %vm1130_vm11, %v1132_v16, %v1128_v2  ;;  %v4157_v13 = vmul.f32 0.70710677, %v4146_v60  ;;  %3431 = vrcp.f32 %v4151_v45  ;;  %vm1141_vm12 = vweird.f32 %v3430_v53 }
 0x138   : > { %v1409_v50 = vmul.f32 %v1393_v5, %v4113_v27  ;;  %v1137_v7 = vsub.f32 1.0, %v1136_v1  ;;  %v1346_v57 = vmul.f32 1.0614054, %v4154_v4  ;;  %3433 = vpow2.f32 %v1521_v0  ;;  %vm1142_vm14 = vmor %vm1140_vm13, %vm1141_vm12  ;;  %v3282_v5 = vld [vmem:[#allocation7 + $0xa0] sm:$0xff]  ;;  %v951_v1 = vpop.f32.mrf.mxu1 }
 0x139   : > { %v4168_v32 = vand.u32 2147483647, %v4157_v13  ;;  %v1507_v35 = vmul.f32 %v1491_v63, %v4087_v40  ;;  %v1523_v48 = vmul.f32 1.442695, %v1506_v62  ;;  %v4183_v40 = vmul.f32 0.5, %v4063_v33  ;;  %2201 = vmatpush.bf16.msrb.mxu1 %v3282_v5 }
 0x13a   : > { %v1425_v3 = vadd.f32 -0.28449672, %v1409_v50  ;;  %v1138_v15 = vmul.f32 %v3430_v53, %v1137_v7  ;;  %v1362_v9 = vadd.f32 -1.4531521, %v1346_v57  ;;  %v4192_v7 = vmul.f32 0.5, %v4075_v36 }
 0x13b   : > { %v1077_v44 = vmul.f32 0.3275911, %v4168_v32  ;;  %v1525_v2 = vmul.f32 1.442695, %v1507_v35  ;;  %v1161_v22 = vand.u32 2147483648, %v4151_v45  ;;  %v952_v63 = vadd.f32 %v951_v1, %v903_v61 }
 0x13c   : > { %v1441_v11 = vmul.f32 %v1425_v3, %v4113_v27  ;;  %v1139_v41 = vadd.f32 %v3430_v53, %v1138_v15  ;;  %v997_v42 = vpop.f32.mrf.mxu2  ;;  %v1378_v43 = vmul.f32 %v1362_v9, %v4154_v4  ;;  %v1159_v23 = vand.u32 2147483647, %v4151_v45  ;;  %v3271_v9 = vld [vmem:[#allocation7 + $0x48] sm:$0xff] }
 0x13d   : > { %v3432_v52 = vpop.eup %3431  ;;  %v4178_v58 = vadd.f32 1.0, %v1077_v44  ;;  %v4189_v62 = vadd.f32 %v997_v42, %v949_v34  ;;  %v1492_v34 = vsub.f32 0.0, %v4136_v54  ;;  %vm1155_vm6 = vweird.f32 %v4151_v45  ;;  %2155 = vmatpush.bf16.msrb.mxu0 %v3271_v9 }
 0x13e   : > { %v1457_v46 = vadd.f32 0.2548296, %v1441_v11  ;;  %v1143_v28 = vsel %vm1142_vm14, %v3430_v53, %v1139_v41  ;;  %v1394_v49 = vadd.f32 1.4214138, %v1378_v43  ;;  %v1151_v53 = vmul.f32 %v3432_v52, %v4151_v45  ;;  %v3434_v50 = vpop.eup %3433  ;;  %v3281_v43 = vld [vmem:[#allocation7 + $0x98] sm:$0xff] }
 0x13f   : > { %v4176_v21 = vsel %vm1145_vm15, %v1147_v24, %v1143_v28  ;;  %3435 = vrcp.f32 %v4178_v58  ;;  %vm1156_vm4 = vweird.f32 %v3432_v52  ;;  %v4202_v11 = vmul.f32 0.70710677, %v4189_v62  ;;  %2202 = vmatpush.bf16.msrb.mxu1 %v3281_v43 }
 0x140   : > { %v1473_v0 = vmul.f32 %v1457_v46, %v4113_v27  ;;  %v1347_v16 = vmul.f32 1.0614054, %v4176_v21  ;;  %v1410_v59 = vmul.f32 %v1394_v49, %v4154_v4  ;;  %3437 = vpow2.f32 %v1523_v48  ;;  %vm1157_vm7 = vmor %vm1155_vm6, %vm1156_vm4 }
 0x141   : > { %v1152_v33 = vsub.f32 1.0, %v1151_v53  ;;  %3439 = vpow2.f32 %v1525_v2  ;;  %v1162_v46 = vor.u32 1.1754944e-38, %v1161_v22  ;;  %v4210_v48 = vand.u32 2147483647, %v4202_v11  ;;  %2156 = vmatpush.bf16.msrb.mxu0 %v3270_v14 }
 0x142   : > { %v1363_v27 = vadd.f32 -1.4531521, %v1347_v16  ;;  %v4194_v17 = vmul.f32 %v3434_v50, %v1473_v0  ;;  %v1426_v57 = vadd.f32 -0.28449672, %v1410_v59  ;;  %vm1160_vm8 = vcmp.eq.f32.partialorder %v1159_v23, 8.507059e+37 }
 0x143   : > { %v1153_v15 = vmul.f32 %v3432_v52, %v1152_v33  ;;  %v1508_v0 = vmul.f32 %v1492_v34, %v4136_v54  ;;  %v1174_v16 = vand.u32 2147483647, %v4178_v58  ;;  %v1493_v53 = vsub.f32 0.0, %v4168_v32 }
 0x144   : > { %v1379_v3 = vmul.f32 %v1363_v27, %v4176_v21  ;;  %v1442_v36 = vmul.f32 %v1426_v57, %v4154_v4  ;;  %v1000_v19 = vpop.f32.mrf.mxu2  ;;  %v1569_v35 = vsub.f32 1.0, %v4194_v17  ;;  %v1176_v50 = vand.u32 2147483648, %v4178_v58 }
 0x145   : > { %v1154_v42 = vadd.f32 %v3432_v52, %v1153_v15  ;;  %v3436_v24 = vpop.eup %3435  ;;  %v1078_v57 = vmul.f32 0.3275911, %v4210_v48  ;;  %v1001_v22 = vadd.f32 %v1000_v19, %v952_v63  ;;  %vm1170_vm10 = vweird.f32 %v4178_v58 }
 0x146   : > { %v1395_v41 = vadd.f32 1.4214138, %v1379_v3  ;;  %v1458_v44 = vadd.f32 0.2548296, %v1442_v36  ;;  %v3438_v28 = vpop.eup %3437  ;;  %v1166_v45 = vmul.f32 %v3436_v24, %v4178_v58  ;;  %v1601_v33 = vsub.f32 0.0, %v1569_v35 }
 0x147   : > { %v1158_v61 = vsel %vm1157_vm7, %v3432_v52, %v1154_v42  ;;  %v953_v52 = vpop.f32.mrf.mxu1  ;;  %v3440_v27 = vpop.eup %3439  ;;  %vm1171_vm9 = vweird.f32 %v3436_v24  ;;  %v1509_v15 = vmul.f32 %v1493_v53, %v4168_v32  ;;  %v4226_v23 = vadd.f32 1.0, %v1078_v57 }
 0x148   : > { %v1411_v49 = vmul.f32 %v1395_v41, %v4176_v21  ;;  %v4214_v5 = vsel %vm1160_vm8, %v1162_v46, %v1158_v61  ;;  %v1167_v2 = vsub.f32 1.0, %v1166_v45  ;;  %v1474_v17 = vmul.f32 %v1458_v44, %v4154_v4  ;;  %vm1172_vm12 = vmor %vm1170_vm10, %vm1171_vm9  ;;  %v3280_v44 = vld [vmem:[#allocation7 + $0x90] sm:$0xff]  ;;  %v973_v46 = vpop.f32.mrf.mxu3 }
 0x149   : > { %v1348_v59 = vmul.f32 1.0614054, %v4214_v5  ;;  %v954_v9 = vadd.f32 %v953_v52, %v905_v30  ;;  %vm1175_vm11 = vcmp.eq.f32.partialorder %v1174_v16, 8.507059e+37  ;;  %v1617_v4 = vsel %vm1585_vm5, %v1569_v35, %v1601_v33  ;;  %2203 = vmatpush.bf16.msrb.mxu1 %v3280_v44 }
 0x14a   : > { %v1427_v1 = vadd.f32 -0.28449672, %v1411_v49  ;;  %v1168_v3 = vmul.f32 %v3436_v24, %v1167_v2  ;;  %v1177_v63 = vor.u32 1.1754944e-38, %v1176_v50  ;;  %3441 = vrcp.f32 %v4226_v23  ;;  %v3279_v50 = vld [vmem:[#allocation7 + $0x88] sm:$0xff] }
 0x14b   : > { %v1364_v39 = vadd.f32 -1.4531521, %v1348_v59  ;;  %v4232_v42 = vmul.f32 0.70710677, %v1001_v22  ;;  %v4234_v58 = vmul.f32 %v3438_v28, %v1474_v17  ;;  %v4238_v49 = vmul.f32 0.5, %v4103_v18 }
 0x14c   : > { %v1443_v54 = vmul.f32 %v1427_v1, %v4176_v21  ;;  %v1169_v41 = vadd.f32 %v3436_v24, %v1168_v3  ;;  %v1002_v43 = vpop.f32.mrf.mxu2  ;;  %v1527_v26 = vmul.f32 1.442695, %v1508_v0  ;;  %v1529_v61 = vmul.f32 1.442695, %v1509_v15 }
 0x14d   : > { %v1380_v34 = vmul.f32 %v1364_v39, %v4214_v5  ;;  %v1633_v45 = vadd.f32 1.0, %v1617_v4  ;;  %vm1586_vm13 = vcmp.ge.f32.partialorder %v4067_v37, 0.0  ;;  %v1063_v18 = vand.u32 2147483647, %v4232_v42  ;;  %2204 = vmatpush.bf16.msrb.mxu1 %v3279_v50 }
 0x14e   : > { %v1459_v36 = vadd.f32 0.2548296, %v1443_v54  ;;  %v1173_v30 = vsel %vm1172_vm12, %v3436_v24, %v1169_v41  ;;  %v1494_v24 = vsub.f32 0.0, %v4210_v48  ;;  %v4250_v0 = vadd.f32 %v1002_v43, %v954_v9  ;;  %v3278_v41 = vld [vmem:[#allocation7 + $0x80] sm:$0xff] }
 0x14f   : > { %v1396_v19 = vadd.f32 1.4214138, %v1380_v34  ;;  %v4240_v35 = vsel %vm1175_vm11, %v1177_v63, %v1173_v30  ;;  %v4253_v53 = vadd.f32 %v973_v46, %v4140_v47  ;;  %v1570_v1 = vsub.f32 1.0, %v4234_v58 }
 0x150   : > { %v1475_v32 = vmul.f32 %v1459_v36, %v4176_v21  ;;  %v1349_v28 = vmul.f32 1.0614054, %v4240_v35  ;;  %v4246_v21 = vmul.f32 0.5, %v4146_v60  ;;  %vm1587_vm14 = vcmp.ge.f32.partialorder %v4081_v51, 0.0  ;;  %v3442_v52 = vpop.eup %3441 }
 0x151   : > { %v1412_v16 = vmul.f32 %v1396_v19, %v4214_v5  ;;  %3443 = vpow2.f32 %v1527_v26  ;;  %v1079_v60 = vmul.f32 0.3275911, %v1063_v18  ;;  %v4258_v33 = vmul.f32 0.70710677, %v4250_v0  ;;  %2205 = vmatpush.bf16.msrb.mxu1 %v3278_v41 }
 0x152   : > { %v1555_v14 = vmul.f32 %v3440_v27, %v1475_v32  ;;  %v1365_v2 = vadd.f32 -1.4531521, %v1349_v28  ;;  %v4261_v17 = vmul.f32 %v1633_v45, %v4165_v29  ;;  %3445 = vpow2.f32 %v1529_v61 }
 0x153   : > { %v1428_v59 = vadd.f32 -0.28449672, %v1412_v16  ;;  %v4265_v57 = vmul.f32 0.5, %v4189_v62  ;;  %v1181_v39 = vmul.f32 %v3442_v52, %v4226_v23  ;;  %v4269_v3 = vmul.f32 0.5, %v1001_v22 }
 0x154   : > { %v1571_v27 = vsub.f32 1.0, %v1555_v14  ;;  %v1381_v54 = vmul.f32 %v1365_v2, %v4240_v35  ;;  %v4271_v15 = vadd.f32 1.0, %v1079_v60  ;;  %v1602_v9 = vsub.f32 0.0, %v1570_v1  ;;  %v1005_v14 = vpop.f32.mrf.mxu2 }
 0x155   : > { %v1444_v47 = vmul.f32 %v1428_v59, %v4214_v5  ;;  %v1510_v29 = vmul.f32 %v1494_v24, %v4210_v48  ;;  %v4275_v34 = vand.u32 2147483647, %v4258_v33  ;;  %v1182_v63 = vsub.f32 1.0, %v1181_v39 }
 0x156   : > { %v1603_v4 = vsub.f32 0.0, %v1571_v27  ;;  %v1397_v62 = vadd.f32 1.4214138, %v1381_v54  ;;  %3447 = vrcp.f32 %v4271_v15  ;;  %v1665_v58 = vrot.slane %v4261_v17, 7 }
 0x157   : > { %v1460_v36 = vadd.f32 0.2548296, %v1444_v47  ;;  %v1189_v32 = vand.u32 2147483647, %v4226_v23  ;;  %v1191_v19 = vand.u32 2147483648, %v4226_v23  ;;  %v3444_v30 = vpop.eup %3443  ;;  %v1183_v43 = vmul.f32 %v3442_v52, %v1182_v63 }
 0x158   : > { %v1413_v48 = vmul.f32 %v1397_v62, %v4240_v35  ;;  %vm1186_vm15 = vweird.f32 %v3442_v52  ;;  %v1495_v44 = vsub.f32 0.0, %v1063_v18  ;;  %v3446_v46 = vpop.eup %3445  ;;  %v1713_v26 = vrot.slane %v4261_v17, 1 }
 0x159   : > { %v1476_v22 = vmul.f32 %v1460_v36, %v4214_v5  ;;  %v1618_v61 = vsel %vm1586_vm13, %v1570_v1, %v1602_v9  ;;  %v1080_v5 = vmul.f32 0.3275911, %v4275_v34  ;;  %v1619_v16 = vsel %vm1587_vm14, %v1571_v27, %v1603_v4 }
 0x15a   : > { %v1429_v28 = vadd.f32 -0.28449672, %v1413_v48  ;;  %v1184_v24 = vadd.f32 %v3442_v52, %v1183_v43  ;;  %vm1185_vm4 = vweird.f32 %v4226_v23  ;;  %vm1190_vm6 = vcmp.eq.f32.partialorder %v1189_v32, 8.507059e+37 }
 0x15b   : > { %v1556_v45 = vmul.f32 %v3444_v30, %v1476_v22  ;;  %vm1187_vm5 = vmor %vm1185_vm4, %vm1186_vm15  ;;  %v1192_v59 = vor.u32 1.1754944e-38, %v1191_v19  ;;  %v1531_v2 = vmul.f32 1.442695, %v1510_v29  ;;  %v4290_v50 = vadd.f32 1.0, %v1080_v5 }
 0x15c   : > { %v3448_v60 = vpop.eup %3447  ;;  %v1634_v37 = vadd.f32 1.0, %v1618_v61  ;;  %vm1588_vm7 = vcmp.ge.f32.partialorder %v4129_v38, 0.0  ;;  %v1445_v1 = vmul.f32 %v1429_v28, %v4240_v35  ;;  %v1188_v47 = vsel %vm1187_vm5, %v3442_v52, %v1184_v24 }
 0x15d   : > { %v1511_v54 = vmul.f32 %v1495_v44, %v1063_v18  ;;  %v1635_v51 = vadd.f32 1.0, %v1619_v16  ;;  %v1572_v27 = vsub.f32 1.0, %v1556_v45  ;;  %v4294_v39 = vsel %vm1190_vm6, %v1192_v59, %v1188_v47 }
 0x15e   : > { %v1196_v23 = vmul.f32 %v3448_v60, %v4271_v15  ;;  %v1461_v9 = vadd.f32 0.2548296, %v1445_v1  ;;  %v1350_v36 = vmul.f32 1.0614054, %v4294_v39  ;;  %v1204_v29 = vand.u32 2147483647, %v4271_v15 }
 0x15f   : > { %3449 = vrcp.f32 %v4290_v50  ;;  %v1206_v4 = vand.u32 2147483648, %v4271_v15  ;;  %v4302_v52 = vadd.f32 %v1005_v14, %v4084_v55  ;;  %v4305_v18 = vmul.f32 %v1634_v37, %v4183_v40 }
 0x160   : > { %3451 = vpow2.f32 %v1531_v2  ;;  %v1197_v41 = vsub.f32 1.0, %v1196_v23  ;;  %v1477_v62 = vmul.f32 %v1461_v9, %v4240_v35  ;;  %v1366_v63 = vadd.f32 -1.4531521, %v1350_v36 }
 0x161   : > { %v4309_v22 = vmul.f32 0.5, %v4250_v0  ;;  %v1604_v32 = vsub.f32 0.0, %v1572_v27  ;;  %vm1200_vm8 = vweird.f32 %v4271_v15  ;;  %vm1201_vm9 = vweird.f32 %v3448_v60  ;;  %v1007_v15 = vpop.f32.mrf.mxu2 }
 0x162   : > { %v1198_v19 = vmul.f32 %v3448_v60, %v1197_v41  ;;  %v4313_v30 = vmul.f32 %v1635_v51, %v4192_v7  ;;  %v1382_v55 = vmul.f32 %v1366_v63, %v4294_v39  ;;  %vm4316_vm10 = vcmp.eq.f32.partialorder %v1204_v29, 8.507059e+37  ;;  %vm1202_vm11 = vmor %vm1200_vm8, %vm1201_vm9 }
 0x163   : > { %v4320_v40 = vmul.f32 1.442695, %v1511_v54  ;;  %v1207_v43 = vor.u32 1.1754944e-38, %v1206_v4  ;;  %v1496_v0 = vsub.f32 0.0, %v4275_v34  ;;  %v4324_v44 = vmul.f32 0.70710677, %v4302_v52 }
 0x164   : > { %v1199_v35 = vadd.f32 %v3448_v60, %v1198_v19  ;;  %v1557_v45 = vmul.f32 %v3446_v46, %v1477_v62  ;;  %v1398_v7 = vadd.f32 1.4214138, %v1382_v55  ;;  %v1777_v5 = vpack.c.bf16 %v4261_v17, %v4261_v17 }
 0x165   : > { %v3450_v61 = vpop.eup %3449  ;;  %v1778_v14 = vpack.c.bf16 %v4305_v18, %v4305_v18  ;;  %v1620_v28 = vsel %vm1588_vm7, %v1572_v27, %v1604_v32  ;;  %v4336_v2 = vand.u32 2147483647, %v4324_v44  ;;  %v1219_v1 = vand.u32 2147483647, %v4290_v50 }
 0x166   : > { %v4330_v16 = vpop.eup %3451  ;;  %v1203_v24 = vsel %vm1202_vm11, %v3448_v60, %v1199_v35  ;;  %v1211_v59 = vmul.f32 %v3450_v61, %v4290_v50  ;;  %v1414_v46 = vmul.f32 %v1398_v7, %v4294_v39  ;;  %v1008_v47 = vadd.f32 %v1007_v15, %v4107_v20 }
 0x167   : > { %v4341_v37 = vsel %vm4316_vm10, %v1207_v43, %v1203_v24  ;;  %vm1589_vm12 = vcmp.ge.f32.partialorder %v4157_v13, 0.0  ;;  %v1221_v54 = vand.u32 2147483648, %v4290_v50  ;;  %v1081_v51 = vmul.f32 0.3275911, %v4336_v2 }
 0x168   : > { %v1351_v38 = vmul.f32 1.0614054, %v4341_v37  ;;  %v1212_v60 = vsub.f32 1.0, %v1211_v59  ;;  %v1573_v27 = vsub.f32 1.0, %v1557_v45  ;;  %v1430_v23 = vadd.f32 -0.28449672, %v1414_v46 }
 0x169   : > { %v1873_v9 = vunpack.c.l.b16 %v1777_v5  ;;  %v1874_v36 = vunpack.c.l.b16 %v1778_v14  ;;  %vm1216_vm13 = vweird.f32 %v3450_v61  ;;  %v4349_v4 = vadd.f32 1.0, %v1081_v51  ;;  %v1010_v24 = vpop.f32.mrf.mxu2 }
 0x16a   : > { %v1367_v29 = vadd.f32 -1.4531521, %v1351_v38  ;;  %v1213_v41 = vmul.f32 %v3450_v61, %v1212_v60  ;;  %v1446_v20 = vmul.f32 %v1430_v23, %v4294_v39  ;;  %v1512_v62 = vmul.f32 %v1496_v0, %v4275_v34 }
 0x16b   : > { %v1889_v63 = vpack.c.b16 %v1874_v36, %v1873_v9  ;;  %v4353_v32 = vmul.f32 0.70710677, %v1008_v47  ;;  %vm1215_vm14 = vweird.f32 %v4290_v50  ;;  %3453 = vrcp.f32 %v4349_v4 }
 0x16c   : > { %v1383_v19 = vmul.f32 %v1367_v29, %v4341_v37  ;;  %v1214_v55 = vadd.f32 %v3450_v61, %v1213_v41  ;;  %v1636_v48 = vadd.f32 1.0, %v1620_v28  ;;  %v1605_v35 = vsub.f32 0.0, %v1573_v27  ;;  %vm1217_vm15 = vmor %vm1215_vm14, %vm1216_vm13 }
 0x16d   : > { %v1462_v43 = vadd.f32 0.2548296, %v1446_v20  ;;  %v1222_v15 = vor.u32 1.1754944e-38, %v1221_v54  ;;  %2157 = vmatmul.bf16.vlgmr.msrb.gmra.mxu0 %v1889_v63  ;;  %vm1220_vm4 = vcmp.eq.f32.partialorder %v1219_v1, 8.507059e+37  ;;  %v1066_v34 = vand.u32 2147483647, %v4353_v32 }
 0x16e   : > { %v1399_v45 = vadd.f32 1.4214138, %v1383_v19  ;;  %v1218_v7 = vsel %vm1217_vm15, %v3450_v61, %v1214_v55  ;;  %v1666_v0 = vrot.slane %v4305_v18, 7  ;;  %v1714_v5 = vrot.slane %v4305_v18, 1 }
 0x16f   : > { %v4361_v14 = vsel %vm1220_vm4, %v1222_v15, %v1218_v7  ;;  %v1535_v50 = vmul.f32 1.442695, %v1512_v62  ;;  %v1715_v28 = vrot.slane %v4313_v30, 1  ;;  %v1082_v38 = vmul.f32 0.3275911, %v1066_v34 }
 0x170   : > { %v1415_v59 = vmul.f32 %v1399_v45, %v4341_v37  ;;  %v1352_v46 = vmul.f32 1.0614054, %v4361_v14  ;;  %v1621_v61 = vsel %vm1589_vm12, %v1573_v27, %v1605_v35  ;;  %v1478_v1 = vmul.f32 %v1462_v43, %v4294_v39 }
 0x171   : > { %3455 = vpow2.f32 %v4320_v40  ;;  %v4371_v60 = vmul.f32 0.5, %v4302_v52  ;;  %v3454_v54 = vpop.eup %3453  ;;  %v4374_v51 = vmul.f32 %v1636_v48, %v4238_v49  ;;  %v4376_v36 = vadd.f32 1.0, %v1082_v38 }
 0x172   : > { %v1431_v23 = vadd.f32 -0.28449672, %v1415_v59  ;;  %v1368_v9 = vadd.f32 -1.4531521, %v1352_v46  ;;  %3457 = vpow2.f32 %v1535_v50  ;;  %v1226_v29 = vmul.f32 %v3454_v54, %v4349_v4  ;;  %v1012_v46 = vpop.f32.mrf.mxu2 }
 0x173   : > { %v1497_v13 = vsub.f32 0.0, %v4336_v2  ;;  %v4380_v27 = vmul.f32 0.5, %v1008_v47  ;;  %v1637_v39 = vadd.f32 1.0, %v1621_v61  ;;  %3459 = vrcp.f32 %v4376_v36 }
 0x174   : > { %v1447_v40 = vmul.f32 %v1431_v23, %v4341_v37  ;;  %v1384_v52 = vmul.f32 %v1368_v9, %v4361_v14  ;;  %v1558_v49 = vmul.f32 %v4330_v16, %v1478_v1  ;;  %v1227_v41 = vsub.f32 1.0, %v1226_v29 }
 0x175   : > { %v1234_v20 = vand.u32 2147483647, %v4349_v4  ;;  %v4388_v62 = vadd.f32 %v1010_v24, %v4111_v25  ;;  %v1236_v47 = vand.u32 2147483648, %v4349_v4  ;;  %v1498_v55 = vsub.f32 0.0, %v1066_v34 }
 0x176   : > { %v1463_v63 = vadd.f32 0.2548296, %v1447_v40  ;;  %v1400_v19 = vadd.f32 1.4214138, %v1384_v52  ;;  %v1228_v35 = vmul.f32 %v3454_v54, %v1227_v41  ;;  %vm1231_vm5 = vweird.f32 %v3454_v54 }
 0x177   : > { %v3456_v48 = vpop.eup %3455  ;;  %v1742_v43 = vsel %vm490_vm2, %v1714_v5, %v1715_v28  ;;  %v1743_v16 = vsel %vm490_vm2, %v1713_v26, %v1714_v5  ;;  %vm1230_vm6 = vweird.f32 %v4349_v4  ;;  %v1513_v45 = vmul.f32 %v1497_v13, %v4336_v2 }
 0x178   : > { %v1479_v25 = vmul.f32 %v1463_v63, %v4341_v37  ;;  %v1416_v15 = vmul.f32 %v1400_v19, %v4361_v14  ;;  %v3458_v7 = vpop.eup %3457  ;;  %v1574_v50 = vsub.f32 1.0, %v1558_v49  ;;  %vm1590_vm7 = vcmp.ge.f32.partialorder %v4202_v11, 0.0  ;;  %vm1232_vm9 = vmor %vm1230_vm6, %vm1231_vm5 }
 0x179   : > { %v1229_v24 = vadd.f32 %v3454_v54, %v1228_v35  ;;  %vm1235_vm8 = vcmp.eq.f32.partialorder %v1234_v20, 8.507059e+37  ;;  %v4405_v59 = vmul.f32 0.70710677, %v4388_v62  ;;  %v3460_v38 = vpop.eup %3459  ;;  %v1237_v37 = vor.u32 1.1754944e-38, %v1236_v47 }
 0x17a   : > { %v1432_v5 = vadd.f32 -0.28449672, %v1416_v15  ;;  %v1793_v61 = vpack.c.bf16 %v1743_v16, %v1743_v16  ;;  %v1794_v1 = vpack.c.bf16 %v1742_v43, %v1742_v43  ;;  %v1241_v2 = vmul.f32 %v3460_v38, %v4376_v36 }
 0x17b   : > { %v1233_v4 = vsel %vm1232_vm9, %v3454_v54, %v1229_v24  ;;  %v1514_v23 = vmul.f32 %v1498_v55, %v1066_v34  ;;  %v1067_v9 = vand.u32 2147483647, %v4405_v59  ;;  %v1559_v29 = vmul.f32 %v3456_v48, %v1479_v25 }
 0x17c   : > { %v1448_v13 = vmul.f32 %v1432_v5, %v4361_v14  ;;  %v4411_v40 = vsel %vm1235_vm8, %v1237_v37, %v1233_v4  ;;  %v1249_v52 = vand.u32 2147483647, %v4376_v36  ;;  %v1606_v49 = vsub.f32 0.0, %v1574_v50 }
 0x17d   : > { %v1353_v41 = vmul.f32 1.0614054, %v4411_v40  ;;  %v1242_v20 = vsub.f32 1.0, %v1241_v2  ;;  %v1083_v63 = vmul.f32 0.3275911, %v1067_v9  ;;  %v1251_v54 = vand.u32 2147483648, %v4376_v36  ;;  %v1015_v2 = vpop.f32.mrf.mxu2 }
 0x17e   : > { %v1464_v19 = vadd.f32 0.2548296, %v1448_v13  ;;  %v1921_v47 = vunpack.c.l.b16 %v1793_v61  ;;  %v1922_v35 = vunpack.c.l.b16 %v1794_v1  ;;  %vm1591_vm10 = vcmp.ge.f32.partialorder %v4232_v42, 0.0 }
 0x17f   : > { %v1369_v34 = vadd.f32 -1.4531521, %v1353_v41  ;;  %v1243_v55 = vmul.f32 %v3460_v38, %v1242_v20  ;;  %vm1246_vm11 = vweird.f32 %v3460_v38  ;;  %v4417_v48 = vadd.f32 1.0, %v1083_v63 }
 0x180   : > { %v4420_v43 = vmul.f32 %v1637_v39, %v4246_v21  ;;  %v1575_v16 = vsub.f32 1.0, %v1559_v29  ;;  %v1537_v25 = vmul.f32 1.442695, %v1513_v45  ;;  %v1937_v15 = vpack.c.b16 %v1922_v35, %v1921_v47 }
 0x181   : > { %v1385_v24 = vmul.f32 %v1369_v34, %v4411_v40  ;;  %v1244_v5 = vadd.f32 %v3460_v38, %v1243_v55  ;;  %vm1245_vm12 = vweird.f32 %v4376_v36  ;;  %3461 = vrcp.f32 %v4417_v48 }
 0x182   : > { %v1622_v37 = vsel %vm1590_vm7, %v1574_v50, %v1606_v49  ;;  %v1480_v61 = vmul.f32 %v1464_v19, %v4361_v14  ;;  %vm1247_vm13 = vmor %vm1245_vm12, %vm1246_vm11  ;;  %v1252_v1 = vor.u32 1.1754944e-38, %v1251_v54  ;;  %v1539_v4 = vmul.f32 1.442695, %v1514_v23  ;;  %2206 = vmatmul.bf16.vlgmr.msrb.gmra.mxu1 %v1937_v15 }
 0x183   : > { %v1401_v21 = vadd.f32 1.4214138, %v1385_v24  ;;  %v1248_v39 = vsel %vm1247_vm13, %v3460_v38, %v1244_v5  ;;  %vm1250_vm14 = vcmp.eq.f32.partialorder %v1249_v52, 8.507059e+37  ;;  %v1779_v45 = vpack.c.bf16 %v4313_v30, %v4313_v30 }
 0x184   : > { %v1607_v29 = vsub.f32 0.0, %v1575_v16  ;;  %3463 = vpow2.f32 %v1537_v25  ;;  %v4430_v36 = vsel %vm1250_vm14, %v1252_v1, %v1248_v39  ;;  %v1499_v13 = vsub.f32 0.0, %v1067_v9 }
 0x185   : > { %v1638_v11 = vadd.f32 1.0, %v1622_v37  ;;  %v1417_v50 = vmul.f32 %v1401_v21, %v4411_v40  ;;  %v1354_v14 = vmul.f32 1.0614054, %v4430_v36  ;;  %v1780_v23 = vpack.c.bf16 %v4374_v51, %v4374_v51 }
 0x186   : > { %v1560_v49 = vmul.f32 %v3458_v7, %v1480_v61  ;;  %3465 = vpow2.f32 %v1539_v4  ;;  %v4437_v38 = vadd.f32 %v1012_v46, %v4118_v10  ;;  %v4440_v52 = vadd.f32 %v1015_v2, %v4121_v6 }
 0x187   : > { %v3462_v41 = vpop.eup %3461  ;;  %v1433_v20 = vadd.f32 -0.28449672, %v1417_v50  ;;  %v1370_v63 = vadd.f32 -1.4531521, %v1354_v14  ;;  %v1875_v19 = vunpack.c.l.b16 %v1779_v45  ;;  %v1876_v54 = vunpack.c.l.b16 %v1780_v23 }
 0x188   : > { %v1623_v47 = vsel %vm1591_vm10, %v1575_v16, %v1607_v29  ;;  %v4445_v35 = vmul.f32 0.5, %v4388_v62  ;;  %v1256_v7 = vmul.f32 %v3462_v41, %v4417_v48  ;;  %v1515_v34 = vmul.f32 %v1499_v13, %v1067_v9 }
 0x189   : > { %v1449_v10 = vmul.f32 %v1433_v20, %v4411_v40  ;;  %v1386_v46 = vmul.f32 %v1370_v63, %v4430_v36  ;;  %v1264_v6 = vand.u32 2147483647, %v4417_v48  ;;  %v1890_v55 = vpack.c.b16 %v1876_v54, %v1875_v19 }
 0x18a   : > { %v3464_v25 = vpop.eup %3463  ;;  %vm1592_vm15 = vcmp.ge.f32.partialorder %v4258_v33, 0.0  ;;  %v1257_v15 = vsub.f32 1.0, %v1256_v7  ;;  %v1266_v42 = vand.u32 2147483648, %v4417_v48  ;;  %v4454_v16 = vmul.f32 0.70710677, %v4437_v38 }
 0x18b   : > { %v4457_v62 = vmul.f32 0.70710677, %v4440_v52  ;;  %v1639_v9 = vadd.f32 1.0, %v1623_v47  ;;  %v1576_v24 = vsub.f32 1.0, %v1560_v49  ;;  %v1465_v5 = vadd.f32 0.2548296, %v1449_v10  ;;  %2162 = vmatmul.bf16.gmra.mxu0 %v1890_v55 }
 0x18c   : > { %v1402_v37 = vadd.f32 1.4214138, %v1386_v46  ;;  %v3466_v61 = vpop.eup %3465  ;;  %v1258_v1 = vmul.f32 %v3462_v41, %v1257_v15  ;;  %vm1261_vm4 = vweird.f32 %v3462_v41  ;;  %v1068_v4 = vand.u32 2147483647, %v4454_v16  ;;  %v1017_v46 = vpop.f32.mrf.mxu2 }
 0x18d   : > { %v1069_v21 = vand.u32 2147483647, %v4457_v62  ;;  %v1481_v39 = vmul.f32 %v1465_v5, %v4411_v40  ;;  %vm1260_vm5 = vweird.f32 %v4417_v48  ;;  %vm1265_vm6 = vcmp.eq.f32.partialorder %v1264_v6, 8.507059e+37 }
 0x18e   : > { %v1418_v45 = vmul.f32 %v1402_v37, %v4430_v36  ;;  %v1259_v2 = vadd.f32 %v3462_v41, %v1258_v1  ;;  %v1267_v29 = vor.u32 1.1754944e-38, %v1266_v42  ;;  %v1084_v13 = vmul.f32 0.3275911, %v1068_v4  ;;  %vm1262_vm7 = vmor %vm1260_vm5, %vm1261_vm4 }
 0x18f   : > { %v1085_v50 = vmul.f32 0.3275911, %v1069_v21  ;;  %v1608_v14 = vsub.f32 0.0, %v1576_v24  ;;  %v1716_v49 = vrot.slane %v4374_v51, 1  ;;  %v1717_v20 = vrot.slane %v4420_v43, 1 }
 0x190   : > { %v1434_v23 = vadd.f32 -0.28449672, %v1418_v45  ;;  %v4466_v63 = vmul.f32 %v3464_v25, %v1481_v39  ;;  %v1263_v19 = vsel %vm1262_vm7, %v3462_v41, %v1259_v2  ;;  %v4468_v40 = vadd.f32 1.0, %v1084_v13 }
 0x191   : > { %v4470_v54 = vadd.f32 1.0, %v1085_v50  ;;  %v4473_v47 = vsel %vm1265_vm6, %v1267_v29, %v1263_v19  ;;  %v1541_v7 = vmul.f32 1.442695, %v1515_v34  ;;  %v1500_v10 = vsub.f32 0.0, %v1068_v4 }
 0x192   : > { %v1450_v48 = vmul.f32 %v1434_v23, %v4430_v36  ;;  %v4476_v6 = vmul.f32 %v1638_v11, %v4265_v57  ;;  %v4479_v55 = vmul.f32 %v1639_v9, %v4269_v3  ;;  %v1355_v25 = vmul.f32 1.0614054, %v4473_v47 }
 0x193   : > { %3467 = vrcp.f32 %v4468_v40  ;;  %v1624_v41 = vsel %vm1592_vm15, %v1576_v24, %v1608_v14  ;;  %v1501_v42 = vsub.f32 0.0, %v1069_v21  ;;  %v1740_v34 = vsel %vm490_vm2, %v1716_v49, %v1717_v20 }
 0x194   : > { %v1466_v15 = vadd.f32 0.2548296, %v1450_v48  ;;  %v1577_v57 = vsub.f32 1.0, %v4466_v63  ;;  %v1371_v11 = vadd.f32 -1.4531521, %v1355_v25  ;;  %3469 = vrcp.f32 %v4470_v54 }
 0x195   : > { %v1741_v3 = vsel %vm490_vm2, %v1715_v28, %v1716_v49  ;;  %3471 = vpow2.f32 %v1541_v7  ;;  %v1279_v9 = vand.u32 2147483647, %v4468_v40  ;;  %v1516_v24 = vmul.f32 %v1500_v10, %v1068_v4 }
 0x196   : > { %v1482_v33 = vmul.f32 %v1466_v15, %v4430_v36  ;;  %v4497_v5 = vadd.f32 1.0, %v1624_v41  ;;  %v1387_v37 = vmul.f32 %v1371_v11, %v4473_v47  ;;  %v4501_v1 = vmul.f32 0.5, %v4437_v38  ;;  %v1020_v41 = vpop.f32.mrf.mxu2 }
 0x197   : > { %v4504_v39 = vmul.f32 0.5, %v4440_v52  ;;  %vm1593_vm8 = vcmp.ge.f32.partialorder %v4324_v44, 0.0  ;;  %vm1275_vm9 = vweird.f32 %v4468_v40  ;;  %v4508_v28 = vmul.f32 %v1501_v42, %v1069_v21 }
 0x198   : > { %v1795_v36 = vpack.c.bf16 %v1741_v3, %v1741_v3  ;;  %v1796_v45 = vpack.c.bf16 %v1740_v34, %v1740_v34  ;;  %v1609_v4 = vsub.f32 0.0, %v1577_v57  ;;  %v4510_v29 = vmul.f32 %v3466_v61, %v1482_v33 }
 0x199   : > { %v3468_v2 = vpop.eup %3467  ;;  %v1403_v13 = vadd.f32 1.4214138, %v1387_v37  ;;  %v1281_v50 = vand.u32 2147483648, %v4468_v40  ;;  %vm4514_vm10 = vcmp.eq.f32.partialorder %v1279_v9, 8.507059e+37  ;;  %v1543_v14 = vmul.f32 1.442695, %v1516_v24 }
 0x19a   : > { %v1271_v38 = vmul.f32 %v3468_v2, %v4468_v40  ;;  %vm1290_vm11 = vweird.f32 %v4470_v54  ;;  %v3470_v21 = vpop.eup %3469  ;;  %v1923_v49 = vunpack.c.l.b16 %v1795_v36  ;;  %v1924_v63 = vunpack.c.l.b16 %v1796_v45 }
 0x19b   : > { %v1419_v23 = vmul.f32 %v1403_v13, %v4473_v47  ;;  %v1781_v61 = vpack.c.bf16 %v4420_v43, %v4420_v43  ;;  %v3472_v19 = vpop.eup %3471  ;;  %v1286_v7 = vmul.f32 %v3470_v21, %v4470_v54  ;;  %v1294_v10 = vand.u32 2147483647, %v4470_v54 }
 0x19c   : > { %v1272_v48 = vsub.f32 1.0, %v1271_v38  ;;  %v1296_v25 = vand.u32 2147483648, %v4470_v54  ;;  %v1578_v15 = vsub.f32 1.0, %v4510_v29  ;;  %v1938_v34 = vpack.c.b16 %v1924_v63, %v1923_v49 }
 0x19d   : > { %v1435_v42 = vadd.f32 -0.28449672, %v1419_v23  ;;  %v1782_v11 = vpack.c.bf16 %v4476_v6, %v4476_v6  ;;  %vm1276_vm12 = vweird.f32 %v3468_v2  ;;  %v1287_v33 = vsub.f32 1.0, %v1286_v7 }
 0x19e   : > { %v1273_v3 = vmul.f32 %v3468_v2, %v1272_v48  ;;  %v4529_v9 = vadd.f32 %v1017_v46, %v4123_v31  ;;  %2211 = vmatmul.bf16.gmra.mxu1 %v1938_v34  ;;  %v1877_v37 = vunpack.c.l.b16 %v1781_v61  ;;  %v4533_v45 = vadd.f32 %v1020_v41, %v4126_v8  ;;  %vm1277_vm15 = vmor %vm1275_vm9, %vm1276_vm12 }
 0x19f   : > { %v1451_v24 = vmul.f32 %v1435_v42, %v4473_v47  ;;  %v1878_v36 = vunpack.c.l.b16 %v1782_v11  ;;  %vm1594_vm13 = vcmp.ge.f32.partialorder %v4353_v32, 0.0  ;;  %v1288_v13 = vmul.f32 %v3470_v21, %v1287_v33 }
 0x1a0   : > { %v1274_v29 = vadd.f32 %v3468_v2, %v1273_v3  ;;  %vm1291_vm14 = vweird.f32 %v3470_v21  ;;  %v4537_v38 = vmul.f32 0.70710677, %v4529_v9  ;;  %v1625_v31 = vsel %vm1593_vm8, %v1577_v57, %v1609_v4 }
 0x1a1   : > { %v1467_v46 = vadd.f32 0.2548296, %v1451_v24  ;;  %v1282_v23 = vor.u32 1.1754944e-38, %v1281_v50  ;;  %v1891_v49 = vpack.c.b16 %v1878_v36, %v1877_v37  ;;  %v1289_v63 = vadd.f32 %v3470_v21, %v1288_v13  ;;  %vm1292_vm6 = vmor %vm1290_vm11, %vm1291_vm14 }
 0x1a2   : > { %v1278_v8 = vsel %vm1277_vm15, %v3468_v2, %v1274_v29  ;;  %vm1295_vm4 = vcmp.eq.f32.partialorder %v1294_v10, 8.507059e+37  ;;  %v1070_v61 = vand.u32 2147483647, %v4537_v38  ;;  %vm1595_vm5 = vcmp.ge.f32.partialorder %v4405_v59, 0.0 }
 0x1a3   : > { %v1483_v48 = vmul.f32 %v1467_v46, %v4473_v47  ;;  %v4549_v44 = vsel %vm4514_vm10, %v1282_v23, %v1278_v8  ;;  %v1297_v40 = vor.u32 1.1754944e-38, %v1296_v25  ;;  %2167 = vmatmul.bf16.gmra.mxu0 %v1891_v49  ;;  %v4554_v57 = vmul.f32 0.70710677, %v4533_v45 }
 0x1a4   : > { %v1610_v2 = vsub.f32 0.0, %v1578_v15  ;;  %v1356_v4 = vmul.f32 1.0614054, %v4549_v44  ;;  %v1293_v50 = vsel %vm1292_vm6, %v3470_v21, %v1289_v63  ;;  %v1086_v7 = vmul.f32 0.3275911, %v1070_v61 }
 0x1a5   : > { %v1563_v47 = vmul.f32 %v3472_v19, %v1483_v48  ;;  %v4557_v10 = vsel %vm1295_vm4, %v1297_v40, %v1293_v50  ;;  %v1502_v41 = vsub.f32 0.0, %v1070_v61  ;;  %v1071_v52 = vand.u32 2147483647, %v4554_v57 }
 0x1a6   : > { %v4562_v54 = vmul.f32 %v4497_v5, %v4309_v22  ;;  %v1372_v25 = vadd.f32 -1.4531521, %v1356_v4  ;;  %v1357_v42 = vmul.f32 1.0614054, %v4557_v10  ;;  %v4565_v34 = vadd.f32 1.0, %v1086_v7 }
 0x1a7   : > { %v1641_v11 = vadd.f32 1.0, %v1625_v31  ;;  %v1579_v3 = vsub.f32 1.0, %v1563_v47  ;;  %3473 = vpow2.f32 %v1543_v14  ;;  %v1087_v21 = vmul.f32 0.3275911, %v1071_v52 }
 0x1a8   : > { %v1388_v19 = vmul.f32 %v1372_v25, %v4549_v44  ;;  %v1373_v33 = vadd.f32 -1.4531521, %v1357_v42  ;;  %v1545_v24 = vmul.f32 1.442695, %v4508_v28  ;;  %3475 = vrcp.f32 %v4565_v34  ;;  %v1022_v25 = vpop.f32.mrf.mxu2 }
 0x1a9   : > { %v1626_v22 = vsel %vm1594_vm13, %v1578_v15, %v1610_v2  ;;  %v1611_v5 = vsub.f32 0.0, %v1579_v3  ;;  %v1518_v37 = vmul.f32 %v1502_v41, %v1070_v61  ;;  %v1503_v36 = vsub.f32 0.0, %v1071_v52 }
 0x1aa   : > { %v1404_v29 = vadd.f32 1.4214138, %v1388_v19  ;;  %v1389_v13 = vmul.f32 %v1373_v33, %v4557_v10  ;;  %v4573_v31 = vadd.f32 1.0, %v1087_v21  ;;  %v1719_v14 = vrot.slane %v4479_v55, 1 }
 0x1ab   : > { %v4577_v46 = vmul.f32 %v1641_v11, %v4371_v60  ;;  %v1309_v28 = vand.u32 2147483647, %v4565_v34  ;;  %v1311_v23 = vand.u32 2147483648, %v4565_v34  ;;  %v1718_v32 = vrot.slane %v4476_v6, 1 }
 0x1ac   : > { %v1627_v15 = vsel %vm1595_vm5, %v1579_v3, %v1611_v5  ;;  %v1420_v49 = vmul.f32 %v1404_v29, %v4549_v44  ;;  %v1405_v8 = vadd.f32 1.4214138, %v1389_v13  ;;  %3477 = vrcp.f32 %v4573_v31 }
 0x1ad   : > { %v3474_v63 = vpop.eup %3473  ;;  %v4586_v61 = vadd.f32 1.0, %v1626_v22  ;;  %3479 = vpow2.f32 %v1545_v24  ;;  %vm1305_vm7 = vweird.f32 %v4565_v34  ;;  %v4589_v60 = vmul.f32 1.442695, %v1518_v37 }
 0x1ae   : > { %v3476_v48 = vpop.eup %3475  ;;  %v1436_v40 = vadd.f32 -0.28449672, %v1420_v49  ;;  %v1421_v2 = vmul.f32 %v1405_v8, %v4557_v10  ;;  %v4592_v4 = vmul.f32 %v1503_v36, %v1071_v52  ;;  %v1738_v59 = vsel %vm490_vm2, %v1718_v32, %v1719_v14 }
 0x1af   : > { %v4598_v50 = vadd.f32 1.0, %v1627_v15  ;;  %v1301_v7 = vmul.f32 %v3476_v48, %v4565_v34  ;;  %vm4601_vm8 = vcmp.eq.f32.partialorder %v1309_v28, 8.507059e+37  ;;  %v1312_v41 = vor.u32 1.1754944e-38, %v1311_v23 }
 0x1b0   : > { %v1452_v42 = vmul.f32 %v1436_v40, %v4549_v44  ;;  %v1437_v11 = vadd.f32 -0.28449672, %v1421_v2  ;;  %v1324_v52 = vand.u32 2147483647, %v4573_v31  ;;  %v1739_v3 = vsel %vm490_vm2, %v1717_v20, %v1718_v32 }
 0x1b1   : > { %v1302_v21 = vsub.f32 1.0, %v1301_v7  ;;  %vm1320_vm9 = vweird.f32 %v4573_v31  ;;  %v1797_v19 = vpack.c.bf16 %v1739_v3, %v1739_v3  ;;  %v1798_v33 = vpack.c.bf16 %v1738_v59, %v1738_v59 }
 0x1b2   : > { %v1783_v24 = vpack.c.bf16 %v4479_v55, %v4479_v55  ;;  %v3478_v22 = vpop.eup %3477  ;;  %v1468_v5 = vadd.f32 0.2548296, %v1452_v42  ;;  %v1453_v37 = vmul.f32 %v1437_v11, %v4557_v10  ;;  %v1784_v36 = vpack.c.bf16 %v4562_v54, %v4562_v54 }
 0x1b3   : > { %v4618_v29 = vadd.f32 %v1022_v25, %v4253_v53  ;;  %v3480_v13 = vpop.eup %3479  ;;  %vm1596_vm10 = vcmp.ge.f32.partialorder %v4454_v16, 0.0  ;;  %v1303_v20 = vmul.f32 %v3476_v48, %v1302_v21  ;;  %vm1306_vm11 = vweird.f32 %v3476_v48 }
 0x1b4   : > { %v1316_v28 = vmul.f32 %v3478_v22, %v4573_v31  ;;  %v1326_v23 = vand.u32 2147483648, %v4573_v31  ;;  %v1484_v32 = vmul.f32 %v1468_v5, %v4549_v44  ;;  %v1469_v15 = vadd.f32 0.2548296, %v1453_v37  ;;  %vm1307_vm13 = vmor %vm1305_vm7, %vm1306_vm11 }
 0x1b5   : > { %v1925_v49 = vunpack.c.l.b16 %v1797_v19  ;;  %v1926_v8 = vunpack.c.l.b16 %v1798_v33  ;;  %vm1597_vm12 = vcmp.ge.f32.partialorder %v4457_v62, 0.0  ;;  %v1304_v40 = vadd.f32 %v3476_v48, %v1303_v20 }
 0x1b6   : > { %v1317_v2 = vsub.f32 1.0, %v1316_v28  ;;  %v1879_v53 = vunpack.c.l.b16 %v1783_v24  ;;  %v1880_v59 = vunpack.c.l.b16 %v1784_v36  ;;  %v1564_v7 = vmul.f32 %v3474_v63, %v1484_v32 }
 0x1b7   : > { %v1485_v25 = vmul.f32 %v1469_v15, %v4557_v10  ;;  %v1939_v42 = vpack.c.b16 %v1926_v8, %v1925_v49  ;;  %v4629_v11 = vmul.f32 0.70710677, %v4618_v29  ;;  %v1308_v44 = vsel %vm1307_vm13, %v3476_v48, %v1304_v40 }
 0x1b8   : > { %v1318_v3 = vmul.f32 %v3478_v22, %v1317_v2  ;;  %vm1321_vm14 = vweird.f32 %v3478_v22  ;;  %v1892_v21 = vpack.c.b16 %v1880_v59, %v1879_v53  ;;  %v1580_v19 = vsub.f32 1.0, %v1564_v7 }
 0x1b9   : > { %v1565_v33 = vmul.f32 %v3480_v13, %v1485_v25  ;;  %v4633_v24 = vsel %vm4601_vm8, %v1312_v41, %v1308_v44  ;;  %2216 = vmatmul.bf16.gmra.mxu1 %v1939_v42  ;;  %v4636_v10 = vand.u32 2147483647, %v4629_v11  ;;  %v1327_v5 = vor.u32 1.1754944e-38, %v1326_v23  ;;  %vm1322_vm15 = vmor %vm1320_vm9, %vm1321_vm14 }
 0x1ba   : > { %v1358_v34 = vmul.f32 1.0614054, %v4633_v24  ;;  %v1319_v63 = vadd.f32 %v3478_v22, %v1318_v3  ;;  %2172 = vmatmul.bf16.gmra.mxu0 %v1892_v21  ;;  %v1720_v48 = vrot.slane %v4562_v54, 1  ;;  %v1612_v37 = vsub.f32 0.0, %v1580_v19 }
 0x1bb   : > { %v1581_v36 = vsub.f32 1.0, %v1565_v33  ;;  %v1088_v47 = vmul.f32 0.3275911, %v4636_v10  ;;  %v1721_v41 = vrot.slane %v4577_v46, 1  ;;  %vm1325_vm4 = vcmp.eq.f32.partialorder %v1324_v52, 8.507059e+37 }
 0x1bc   : > { %v1374_v13 = vadd.f32 -1.4531521, %v1358_v34  ;;  %v1323_v20 = vsel %vm1322_vm15, %v3478_v22, %v1319_v63  ;;  %v1549_v28 = vmul.f32 1.442695, %v4592_v4  ;;  %v1628_v23 = vsel %vm1596_vm10, %v1580_v19, %v1612_v37 }
 0x1bd   : > { %v1613_v32 = vsub.f32 0.0, %v1581_v36  ;;  %v4647_v15 = vsel %vm1325_vm4, %v1327_v5, %v1323_v20  ;;  %v4649_v49 = vadd.f32 1.0, %v1088_v47  ;;  %v1644_v8 = vadd.f32 1.0, %v1628_v23 }
 0x1be   : > { %v1390_v31 = vmul.f32 %v1374_v13, %v4633_v24  ;;  %v1359_v40 = vmul.f32 1.0614054, %v4647_v15  ;;  %v1737_v52 = vsel %vm490_vm2, %v1719_v14, %v1720_v48  ;;  %v4659_v4 = vmul.f32 %v4586_v61, %v4380_v27 }
 0x1bf   : > { %v1629_v16 = vsel %vm1597_vm12, %v1581_v36, %v1613_v32  ;;  %3481 = vrcp.f32 %v4649_v49  ;;  %v1736_v22 = vsel %vm490_vm2, %v1720_v48, %v1721_v41  ;;  %v4669_v14 = vmul.f32 %v4598_v50, %v4445_v35 }
 0x1c0   : > { %v1645_v2 = vadd.f32 1.0, %v1629_v16  ;;  %v1406_v53 = vadd.f32 1.4214138, %v1390_v31  ;;  %3483 = vpow2.f32 %v4589_v60  ;;  %v1375_v59 = vadd.f32 -1.4531521, %v1359_v40  ;;  %v3269_v16 = vld [vmem:[#allocation7 + $0x38] sm:$0xff] }
 0x1c1   : > { %3485 = vpow2.f32 %v1549_v28  ;;  %v1339_v27 = vand.u32 2147483647, %v4649_v49  ;;  %v1799_v61 = vpack.c.bf16 %v1737_v52, %v1737_v52  ;;  %v4673_v62 = vmul.f32 %v1644_v8, %v4501_v1  ;;  %2100 = vmatpush.bf16.msrb.mxu3 %v3269_v16 }
 0x1c2   : > { %v1422_v7 = vmul.f32 %v1406_v53, %v4633_v24  ;;  %v1391_v25 = vmul.f32 %v1375_v59, %v4647_v15  ;;  %v1800_v42 = vpack.c.bf16 %v1736_v22, %v1736_v22  ;;  %v4678_v44 = vmul.f32 %v1645_v2, %v4504_v39 }
 0x1c3   : > { %v1341_v60 = vand.u32 2147483648, %v4649_v49  ;;  %v1927_v3 = vunpack.c.l.b16 %v1799_v61  ;;  %v1785_v35 = vpack.c.bf16 %v4577_v46, %v4577_v46  ;;  %vm1335_vm5 = vweird.f32 %v4649_v49 }
 0x1c4   : > { %v1438_v50 = vadd.f32 -0.28449672, %v1422_v7  ;;  %v1407_v21 = vadd.f32 1.4214138, %v1391_v25  ;;  %v1928_v1 = vunpack.c.l.b16 %v1800_v42  ;;  %v1786_v19 = vpack.c.bf16 %v4659_v4, %v4659_v4 }
 0x1c5   : > { %v3482_v33 = vpop.eup %3481  ;;  %v1881_v34 = vunpack.c.l.b16 %v1785_v35  ;;  %v1722_v63 = vrot.slane %v4659_v4, 1  ;;  %v1723_v39 = vrot.slane %v4669_v14, 1  ;;  %v1787_v5 = vpack.c.bf16 %v4669_v14, %v4669_v14 }
 0x1c6   : > { %v3484_v48 = vpop.eup %3483  ;;  %v1454_v37 = vmul.f32 %v1438_v50, %v4633_v24  ;;  %v1423_v36 = vmul.f32 %v1407_v21, %v4647_v15  ;;  %v1331_v47 = vmul.f32 %v3482_v33, %v4649_v49  ;;  %vm1336_vm6 = vweird.f32 %v3482_v33 }
 0x1c7   : > { %vm4693_vm7 = vcmp.eq.f32.partialorder %v1339_v27, 8.507059e+37  ;;  %v3486_v20 = vpop.eup %3485  ;;  %v1940_v28 = vpack.c.b16 %v1928_v1, %v1927_v3  ;;  %v1882_v23 = vunpack.c.l.b16 %v1786_v19  ;;  %v1734_v32 = vsel %vm490_vm2, %v1722_v63, %v1723_v39  ;;  %vm1337_vm8 = vmor %vm1335_vm5, %vm1336_vm6 }
 0x1c8   : > { %v1735_v8 = vsel %vm490_vm2, %v1721_v41, %v1722_v63  ;;  %v1470_v31 = vadd.f32 0.2548296, %v1454_v37  ;;  %v1439_v40 = vadd.f32 -0.28449672, %v1423_v36  ;;  %v1332_v52 = vsub.f32 1.0, %v1331_v47  ;;  %v3268_v63 = vld [vmem:[#allocation7 + $0x30] sm:$0xff] }
 0x1c9   : > { %v1801_v22 = vpack.c.bf16 %v1735_v8, %v1735_v8  ;;  %2221 = vmatmul.bf16.gmra.mxu1 %v1940_v28  ;;  %v1893_v2 = vpack.c.b16 %v1882_v23, %v1881_v34  ;;  %v1802_v53 = vpack.c.bf16 %v1734_v32, %v1734_v32  ;;  %v1788_v59 = vpack.c.bf16 %v4673_v62, %v4673_v62 }
 0x1ca   : > { %v4703_v27 = vunpack.c.l.b16 %v1787_v5  ;;  %v1486_v61 = vmul.f32 %v1470_v31, %v4633_v24  ;;  %v1455_v7 = vmul.f32 %v1439_v40, %v4647_v15  ;;  %v1333_v25 = vmul.f32 %v3482_v33, %v1332_v52  ;;  %2101 = vmatpush.bf16.msrb.mxu3 %v3268_v63 }
 0x1cb   : > { %v1929_v41 = vunpack.c.l.b16 %v1801_v22  ;;  %2177 = vmatmul.bf16.gmra.mxu0 %v1893_v2  ;;  %v1930_v42 = vunpack.c.l.b16 %v1802_v53  ;;  %v4707_v3 = vunpack.c.l.b16 %v1788_v59  ;;  %v1724_v35 = vrot.slane %v4673_v62, 1  ;;  %v3266_v2 = vld [vmem:[#allocation7 + $0x20] sm:$0xff] }
 0x1cc   : > { %v1725_v50 = vrot.slane %v4678_v44, 1  ;;  %v1566_v21 = vmul.f32 %v3484_v48, %v1486_v61  ;;  %v1471_v1 = vadd.f32 0.2548296, %v1455_v7  ;;  %v1334_v19 = vadd.f32 %v3482_v33, %v1333_v25 }
 0x1cd   : > { %v1342_v34 = vor.u32 1.1754944e-38, %v1341_v60  ;;  %v1941_v24 = vpack.c.b16 %v1930_v42, %v1929_v41  ;;  %v1894_v5 = vpack.c.b16 %v4707_v3, %v4703_v27  ;;  %v1733_v36 = vsel %vm490_vm2, %v1723_v39, %v1724_v35  ;;  %v3267_v60 = vld [vmem:[#allocation7 + $0x28] sm:$0xff] }
 0x1ce   : > { %v1732_v37 = vsel %vm490_vm2, %v1724_v35, %v1725_v50  ;;  %v1582_v47 = vsub.f32 1.0, %v1566_v21  ;;  %v1487_v48 = vmul.f32 %v1471_v1, %v4647_v15  ;;  %v1338_v28 = vsel %vm1337_vm8, %v3482_v33, %v1334_v19  ;;  %2102 = vmatpush.bf16.msrb.mxu3 %v3267_v60 }
 0x1cf   : > { %v1803_v23 = vpack.c.bf16 %v1733_v36, %v1733_v36  ;;  %v1343_v49 = vsel %vm4693_vm7, %v1342_v34, %v1338_v28  ;;  %v1504_v32 = vsub.f32 0.0, %v4636_v10  ;;  %v1804_v8 = vpack.c.bf16 %v1732_v37, %v1732_v37 }
 0x1d0   : > { %v4730_v39 = vsel %vm410_vm0, %v1665_v58, %v1666_v0  ;;  %v1614_v31 = vsub.f32 0.0, %v1582_v47  ;;  %v1567_v15 = vmul.f32 %v3486_v20, %v1487_v48  ;;  %v1360_v33 = vmul.f32 1.0614054, %v1343_v49  ;;  %v3264_v48 = vld [vmem:[#allocation7 + $0x10] sm:$0xff] }
 0x1d1   : > { %vm1598_vm9 = vcmp.ge.f32.partialorder %v4537_v38, 0.0  ;;  %v4733_v40 = vunpack.c.l.b16 %v1803_v23  ;;  %v4735_v13 = vunpack.c.l.b16 %v1804_v8  ;;  %v1038_v53 = vmul.f32 0.5, %v4529_v9  ;;  %v3265_v9 = vld [vmem:[#allocation7 + $0x18] sm:$0xff] }
 0x1d2   : > { %v1630_v52 = vsel %vm1598_vm9, %v1582_v47, %v1614_v31  ;;  %v1583_v16 = vsub.f32 1.0, %v1567_v15  ;;  %v1376_v22 = vadd.f32 -1.4531521, %v1360_v33  ;;  %v1520_v27 = vmul.f32 %v1504_v32, %v4636_v10  ;;  %2103 = vmatpush.bf16.msrb.mxu3 %v3266_v2 }
 0x1d3   : > { %v1646_v59 = vadd.f32 1.0, %v1630_v52  ;;  %v1942_v20 = vpack.c.b16 %v4735_v13, %v4733_v40  ;;  %vm1599_vm10 = vcmp.ge.f32.partialorder %v4554_v57, 0.0  ;;  %v1789_v25 = vpack.c.bf16 %v4678_v44, %v4678_v44 }
 0x1d4   : > { %v1615_v61 = vsub.f32 0.0, %v1583_v16  ;;  %v1392_v7 = vmul.f32 %v1376_v22, %v1343_v49  ;;  %v1039_v41 = vmul.f32 0.5, %v4533_v45  ;;  %v1551_v10 = vmul.f32 1.442695, %v1520_v27 }
 0x1d5   : > { %v4741_v38 = vmul.f32 %v1646_v59, %v1038_v53  ;;  %v1670_v34 = vrot.slane %v4476_v6, 7  ;;  %v1671_v57 = vrot.slane %v4479_v55, 7  ;;  %v1885_v45 = vunpack.c.l.b16 %v1789_v25  ;;  %v3262_v59 = vld [vmem:[#allocation7] sm:$0xff] }
 0x1d6   : > { %v1631_v42 = vsel %vm1599_vm10, %v1583_v16, %v1615_v61  ;;  %v1408_v3 = vadd.f32 1.4214138, %v1392_v7  ;;  %2104 = vmatpush.bf16.msrb.mxu3 %v3265_v9  ;;  %3487 = vpow2.f32 %v1551_v10  ;;  %v1672_v15 = vrot.slane %v4562_v54, 7 }
 0x1d7   : > { %v1647_v35 = vadd.f32 1.0, %v1631_v42  ;;  %v1790_v21 = vpack.c.bf16 %v4741_v38, %v4741_v38  ;;  %v1726_v1 = vrot.slane %v4741_v38, 1  ;;  %v1690_v28 = vsel %vm410_vm0, %v1670_v34, %v1671_v57 }
 0x1d8   : > { %v1424_v19 = vmul.f32 %v1408_v3, %v1343_v49  ;;  %v1767_v33 = vpack.c.bf16 %v1690_v28, %v1690_v28  ;;  %v1673_v25 = vrot.slane %v4577_v46, 7  ;;  %vm1600_vm11 = vcmp.ge.f32.partialorder %v4629_v11, 0.0 }
 0x1d9   : > { %v4752_v63 = vmul.f32 %v1647_v35, %v1039_v41  ;;  %2226 = vmatmul.bf16.gmra.mxu1 %v1941_v24  ;;  %v1886_v37 = vunpack.c.l.b16 %v1790_v21  ;;  %v1731_v36 = vsel %vm490_vm2, %v1725_v50, %v1726_v1  ;;  %v3263_v50 = vld [vmem:[#allocation7 + $0x8] sm:$0xff]  ;;  %v1040_v3 = vmul.f32 0.5, %v4618_v29 }
 0x1da   : > { %v1440_v47 = vadd.f32 -0.28449672, %v1424_v19  ;;  %v1805_v24 = vpack.c.bf16 %v1731_v36, %v1731_v36  ;;  %2105 = vmatpush.bf16.msrb.mxu3 %v3264_v48  ;;  %v4766_v27 = vunpack.c.l.b16 %v1767_v33  ;;  %v1688_v42 = vsel %vm410_vm0, %v1672_v15, %v1673_v25 }
 0x1db   : > { %2182 = vmatmul.bf16.gmra.mxu0 %v1894_v5  ;;  %v1895_v60 = vpack.c.b16 %v1886_v37, %v1885_v45  ;;  %v1727_v55 = vrot.slane %v4752_v63, 1  ;;  %v1689_v5 = vsel %vm410_vm0, %v1671_v57, %v1672_v15  ;;  %v1791_v35 = vpack.c.bf16 %v4752_v63, %v4752_v63 }
 0x1dc   : > { %v1456_v23 = vmul.f32 %v1440_v47, %v1343_v49  ;;  %v1933_v13 = vunpack.c.l.b16 %v1805_v24  ;;  %v3488_v16 = vpop.eup %3487  ;;  %v1768_v22 = vpack.c.bf16 %v1689_v5, %v1689_v5  ;;  %v1762_v19 = vpack.c.bf16 %v4730_v39, %v4730_v39 }
 0x1dd   : > { %v1730_v32 = vsel %vm490_vm2, %v1726_v1, %v1727_v55  ;;  %v1887_v1 = vunpack.c.l.b16 %v1791_v35  ;;  %v1674_v29 = vrot.slane %v4659_v4, 7  ;;  %v1668_v56 = vrot.slane %v4374_v51, 7 }
 0x1de   : > { %v1472_v8 = vadd.f32 0.2548296, %v1456_v23  ;;  %v1806_v31 = vpack.c.bf16 %v1730_v32, %v1730_v32  ;;  %2106 = vmatpush.bf16.msrb.mxu3 %v3263_v50  ;;  %v4768_v61 = vunpack.c.l.b16 %v1768_v22  ;;  %v1675_v33 = vrot.slane %v4669_v14, 7 }
 0x1df   : > { %v1687_v48 = vsel %vm410_vm0, %v1673_v25, %v1674_v29  ;;  %v1676_v51 = vrot.slane %v4673_v62, 7  ;;  %v1677_v18 = vrot.slane %v4678_v44, 7  ;;  %v1678_v35 = vrot.slane %v4741_v38, 7 }
 0x1e0   : > { %v1488_v40 = vmul.f32 %v1472_v8, %v1343_v49  ;;  %v1934_v52 = vunpack.c.l.b16 %v1806_v31  ;;  %v1844_v54 = vpack.c.b16 %v4768_v61, %v4766_v27  ;;  %v1770_v23 = vpack.c.bf16 %v1687_v48, %v1687_v48 }
 0x1e1   : > { %v1684_v62 = vsel %vm410_vm0, %v1676_v51, %v1677_v18 }
 0x1e2   : > { %v1568_v2 = vmul.f32 %v3488_v16, %v1488_v40  ;;  %v1943_v53 = vpack.c.b16 %v1934_v52, %v1933_v13  ;;  %2107 = vmatpush.bf16.msrb.mxu3 %v3262_v59  ;;  %v1667_v40 = vrot.slane %v4313_v30, 7  ;;  %v1686_v13 = vsel %vm410_vm0, %v1674_v29, %v1675_v33 }
 0x1e3   : > { %v1771_v22 = vpack.c.bf16 %v1686_v13, %v1686_v13  ;;  %v1685_v30 = vsel %vm410_vm0, %v1675_v33, %v1676_v51  ;;  %v1773_v44 = vpack.c.bf16 %v1684_v62, %v1684_v62 }
 0x1e4   : > { %v1584_v7 = vsub.f32 1.0, %v1568_v2  ;;  %v1693_v52 = vsel %vm410_vm0, %v1667_v40, %v1668_v56  ;;  %v1694_v5 = vsel %vm410_vm0, %v1666_v0, %v1667_v40  ;;  %v1772_v59 = vpack.c.bf16 %v1685_v30, %v1685_v30 }
 0x1e5   : > { %v1764_v16 = vpack.c.bf16 %v1693_v52, %v1693_v52  ;;  %v1763_v14 = vpack.c.bf16 %v1694_v5, %v1694_v5  ;;  %v1669_v0 = vrot.slane %v4420_v43, 7  ;;  %v1683_v43 = vsel %vm410_vm0, %v1677_v18, %v1678_v35 }
 0x1e6   : > { %v1616_v49 = vsub.f32 0.0, %v1584_v7  ;;  %v1837_v29 = vunpack.c.l.b16 %v1773_v44 }
 0x1e7   : > { %v1828_v2 = vunpack.c.l.b16 %v1764_v16 }
 0x1e8   : > { %v1632_v41 = vsel %vm1600_vm11, %v1584_v7, %v1616_v49  ;;  %v1835_v7 = vunpack.c.l.b16 %v1771_v22  ;;  %v1836_v49 = vunpack.c.l.b16 %v1772_v59 }
 0x1e9   : > { %v1648_v9 = vadd.f32 1.0, %v1632_v41  ;;  %2231 = vmatmul.bf16.gmra.mxu1 %v1942_v20  ;;  %v1769_v20 = vpack.c.bf16 %v1688_v42, %v1688_v42  ;;  %v1691_v42 = vsel %vm410_vm0, %v1669_v0, %v1670_v34  ;;  %v1679_v34 = vrot.slane %v4752_v63, 7  ;;  %v4846_v63 = vld [vmem:[%s5293_s4] ss:$0 sm:$0xff] }
 0x1ea   : > { %v1846_v41 = vpack.c.b16 %v1836_v49, %v1835_v7 }
 0x1eb   : > { %v4779_v10 = vmul.f32 %v1648_v9, %v1040_v3  ;;  %2187 = vmatmul.bf16.gmra.mxu0 %v1895_v60  ;;  %v1833_v8 = vunpack.c.l.b16 %v1769_v20  ;;  %v1692_v3 = vsel %vm410_vm0, %v1668_v56, %v1669_v0  ;;  %v1766_v9 = vpack.c.bf16 %v1691_v42, %v1691_v42 }
 0x1ed   : > { %v1680_v21 = vrot.slane %v4779_v10, 7  ;;  %v1792_v46 = vpack.c.bf16 %v4779_v10, %v4779_v10  ;;  %v1728_v11 = vrot.slane %v4779_v10, 1 }
 0x1ef   : > { %v1888_v57 = vunpack.c.l.b16 %v1792_v46  ;;  %v1696_v45 = vsel %vm410_vm0, %v1680_v21, %v1665_v58  ;;  %v1729_v37 = vsel %vm490_vm2, %v1727_v55, %v1728_v11  ;;  %v1744_v36 = vsel %vm490_vm2, %v1728_v11, %v1713_v26 }
 0x1f0   : > { %v1697_v4 = vsel %vm442_vm1, %v1696_v45, 0.0  ;;  %v1760_v39 = vsel %vm522_vm3, %v1744_v36, 0.0  ;;  %v1807_v47 = vpack.c.bf16 %v1729_v37, %v1729_v37  ;;  %v1826_v55 = vunpack.c.l.b16 %v1762_v19 }
 0x1f1   : > { %v1896_v28 = vpack.c.b16 %v1888_v57, %v1887_v1  ;;  %v1761_v58 = vpack.c.bf16 %v1697_v4, %v1697_v4  ;;  %v1808_v60 = vpack.c.bf16 %v1760_v39, %v1760_v39  ;;  %v1834_v26 = vunpack.c.l.b16 %v1770_v23 }
 0x1f2   : > { %v1935_v24 = vunpack.c.l.b16 %v1807_v47  ;;  %v1765_v46 = vpack.c.bf16 %v1692_v3, %v1692_v3  ;;  %v1830_v11 = vunpack.c.l.b16 %v1766_v9  ;;  %v1774_v1 = vpack.c.bf16 %v1683_v43, %v1683_v43 }
 0x1f3   : > { %v1825_v17 = vunpack.c.l.b16 %v1761_v58  ;;  %v1936_v32 = vunpack.c.l.b16 %v1808_v60  ;;  %v1845_v15 = vpack.c.b16 %v1834_v26, %v1833_v8  ;;  %v1682_v45 = vsel %vm410_vm0, %v1678_v35, %v1679_v34 }
 0x1f4   : > { %v1829_v19 = vunpack.c.l.b16 %v1765_v46  ;;  %v1838_v20 = vunpack.c.l.b16 %v1774_v1  ;;  %v1775_v37 = vpack.c.bf16 %v1682_v45, %v1682_v45  ;;  %v1681_v38 = vsel %vm410_vm0, %v1679_v34, %v1680_v21  ;;  %v2158_v21 = vpop.f32.mrf.mxu0 }
 0x1f5   : > { %v1841_v50 = vpack.c.b16 %v1826_v55, %v1825_v17  ;;  %v1944_v31 = vpack.c.b16 %v1936_v32, %v1935_v24  ;;  %v1776_v36 = vpack.c.bf16 %v1681_v38, %v1681_v38 }
 0x1f6   : > { %v1843_v6 = vpack.c.b16 %v1830_v11, %v1829_v19  ;;  %v1847_v57 = vpack.c.b16 %v1838_v20, %v1837_v29  ;;  %v1839_v4 = vunpack.c.l.b16 %v1775_v37 }
 0x1f7   : > { %2108 = vmatmul.bf16.vlgmr.msrb.gmra.mxu3 %v1841_v50  ;;  %v1840_v39 = vunpack.c.l.b16 %v1776_v36 }
 0x1f9   : > { %2236 = vmatmul.bf16.gmra.mxu1 %v1943_v53  ;;  %v1827_v53 = vunpack.c.l.b16 %v1763_v14  ;;  %v1848_v47 = vpack.c.b16 %v1840_v39, %v1839_v4 }
 0x1fb   : > { %2192 = vmatmul.bf16.gmra.mxu0 %v1896_v28  ;;  %v1842_v25 = vpack.c.b16 %v1828_v2, %v1827_v53 }
 0x1ff   : > { %v2207_v28 = vpop.f32.mrf.mxu1 }
 0x207   : > { %2113 = vmatmul.bf16.gmra.mxu3 %v1842_v25  ;;  %v2209_v13 = vpop.f32.mrf.mxu1 }
 0x209   : > { %2241 = vmatmul.bf16.gmra.mxu1 %v1944_v31 }
 0x217   : > { %2118 = vmatmul.bf16.gmra.mxu3 %v1843_v6 }
 0x21b   : > { %v2212_v45 = vpop.f32.mrf.mxu1 }
 0x227   : > { %2123 = vmatmul.bf16.gmra.mxu3 %v1844_v54 }
 0x237   : > { %2128 = vmatmul.bf16.gmra.mxu3 %v1845_v15  ;;  %v2160_v15 = vpop.f32.mrf.mxu0 }
 0x23f   : > { %v2163_v11 = vpop.f32.mrf.mxu0 }
 0x247   : > { %2133 = vmatmul.bf16.gmra.mxu3 %v1846_v41 }
 0x257   : > { %2138 = vmatmul.bf16.gmra.mxu3 %v1847_v57 }
 0x267   : > { %2143 = vmatmul.bf16.gmra.mxu3 %v1848_v47 }
 0x27a   : > { %v2109_v10 = vpop.f32.mrf.mxu3 }
 0x27b   : > { %v2110_v12 = vadd.f32 %v4846_v63, %v2109_v10 }
 0x27d   : > { %v2159_v48 = vadd.f32 %v2158_v21, %v2110_v12 }
 0x27f   : > { %v4849_v58 = vadd.f32 %v2207_v28, %v2159_v48 }
 0x281   : > { %v4852_v27 = vmul.f32 0.70710677, %v4849_v58 }
 0x282   : > { %v2111_v26 = vpop.f32.mrf.mxu3 }
 0x283   : > { %v2279_v61 = vand.u32 2147483647, %v4852_v27  ;;  %v2112_v31 = vadd.f32 %v4846_v63, %v2111_v26  ;;  %vm2807_vm4 = vcmp.ge.f32.partialorder %v4852_v27, 0.0 }
 0x285   : > { %v2295_v54 = vmul.f32 0.3275911, %v2279_v61  ;;  %v2161_v40 = vadd.f32 %v2160_v15, %v2112_v31  ;;  %v2711_v49 = vsub.f32 0.0, %v2279_v61 }
 0x287   : > { %v2311_v60 = vadd.f32 1.0, %v2295_v54  ;;  %v4856_v16 = vadd.f32 %v2209_v13, %v2161_v40  ;;  %v2727_v0 = vmul.f32 %v2711_v49, %v2279_v61  ;;  %v2165_v61 = vpop.f32.mrf.mxu0 }
 0x289   : > { %3489 = vrcp.f32 %v2311_v60  ;;  %v2338_v17 = vand.u32 2147483648, %v2311_v60  ;;  %v2336_v8 = vand.u32 2147483647, %v2311_v60  ;;  %vm2332_vm1 = vweird.f32 %v2311_v60 }
 0x28a   : > { %v4859_v14 = vmul.f32 0.70710677, %v4856_v16  ;;  %v2743_v46 = vmul.f32 1.442695, %v2727_v0  ;;  %v2114_v6 = vpop.f32.mrf.mxu3 }
 0x28b   : > { %v2339_v56 = vor.u32 1.1754944e-38, %v2338_v17  ;;  %vm2337_vm3 = vcmp.eq.f32.partialorder %v2336_v8, 8.507059e+37  ;;  %v2115_v34 = vadd.f32 %v4846_v63, %v2114_v6  ;;  %v2214_v17 = vpop.f32.mrf.mxu1 }
 0x28c   : > { %v2280_v22 = vand.u32 2147483647, %v4859_v14  ;;  %vm2808_vm5 = vcmp.ge.f32.partialorder %v4859_v14, 0.0 }
 0x28d   : > { %v2164_v38 = vadd.f32 %v2163_v11, %v2115_v34 }
 0x28e   : > { %v2296_v2 = vmul.f32 0.3275911, %v2280_v22  ;;  %v2712_v20 = vsub.f32 0.0, %v2280_v22 }
 0x28f   : > { %v3490_v23 = vpop.eup %3489  ;;  %v4863_v47 = vadd.f32 %v2212_v45, %v2164_v38  ;;  %v2168_v13 = vpop.f32.mrf.mxu0 }
 0x290   : > { %v2328_v55 = vmul.f32 %v3490_v23, %v2311_v60  ;;  %vm2333_vm0 = vweird.f32 %v3490_v23  ;;  %v2312_v59 = vadd.f32 1.0, %v2296_v2  ;;  %v2728_v4 = vmul.f32 %v2712_v20, %v2280_v22 }
 0x291   : > { %vm2334_vm2 = vmor %vm2332_vm1, %vm2333_vm0  ;;  %v4866_v21 = vmul.f32 0.70710677, %v4863_v47 }
 0x292   : > { %v2329_v24 = vsub.f32 1.0, %v2328_v55  ;;  %3491 = vrcp.f32 %v2312_v59  ;;  %v2353_v42 = vand.u32 2147483648, %v2312_v59  ;;  %v2351_v9 = vand.u32 2147483647, %v2312_v59 }
 0x293   : > { %vm2347_vm13 = vweird.f32 %v2312_v59  ;;  %3493 = vpow2.f32 %v2743_v46  ;;  %v2745_v28 = vmul.f32 1.442695, %v2728_v4  ;;  %v4869_v60 = vand.u32 2147483647, %v4866_v21 }
 0x294   : > { %v2330_v32 = vmul.f32 %v3490_v23, %v2329_v24  ;;  %v2354_v43 = vor.u32 1.1754944e-38, %v2353_v42  ;;  %vm2352_vm15 = vcmp.eq.f32.partialorder %v2351_v9, 8.507059e+37 }
 0x295   : > { %v2297_v55 = vmul.f32 0.3275911, %v4869_v60  ;;  %3495 = vpow2.f32 %v2745_v28 }
 0x296   : > { %v2331_v50 = vadd.f32 %v3490_v23, %v2330_v32 }
 0x297   : > { %v2313_v8 = vadd.f32 1.0, %v2297_v55 }
 0x298   : > { %v2335_v33 = vsel %vm2334_vm2, %v3490_v23, %v2331_v50  ;;  %v3492_v25 = vpop.eup %3491  ;;  %v2116_v50 = vpop.f32.mrf.mxu3 }
 0x299   : > { %v2340_v52 = vsel %vm2337_vm3, %v2339_v56, %v2335_v33  ;;  %v2343_v41 = vmul.f32 %v3492_v25, %v2312_v59  ;;  %vm2348_vm12 = vweird.f32 %v3492_v25  ;;  %v3494_v10 = vpop.eup %3493  ;;  %3497 = vrcp.f32 %v2313_v8  ;;  %v2217_v59 = vpop.f32.mrf.mxu1 }
 0x29a   : > { %v2567_v5 = vmul.f32 1.0614054, %v2340_v52  ;;  %vm2349_vm14 = vmor %vm2347_vm13, %vm2348_vm12  ;;  %v2117_v15 = vadd.f32 %v4846_v63, %v2116_v50  ;;  %v2366_v42 = vand.u32 2147483647, %v2313_v8  ;;  %vm2362_vm7 = vweird.f32 %v2313_v8 }
 0x29b   : > { %v2344_v62 = vsub.f32 1.0, %v2343_v41  ;;  %v3496_v33 = vpop.eup %3495 }
 0x29c   : > { %v2583_v51 = vadd.f32 -1.4531521, %v2567_v5  ;;  %v2166_v40 = vadd.f32 %v2165_v61, %v2117_v15  ;;  %vm2367_vm9 = vcmp.eq.f32.partialorder %v2366_v42, 8.507059e+37 }
 0x29d   : > { %v2345_v3 = vmul.f32 %v3492_v25, %v2344_v62 }
 0x29e   : > { %v2599_v30 = vmul.f32 %v2583_v51, %v2340_v52  ;;  %v4874_v51 = vadd.f32 %v2214_v17, %v2166_v40 }
 0x29f   : > { %v2346_v44 = vadd.f32 %v3492_v25, %v2345_v3  ;;  %v3498_v22 = vpop.eup %3497  ;;  %v2368_v3 = vand.u32 2147483648, %v2313_v8 }
 0x2a0   : > { %v2615_v53 = vadd.f32 1.4214138, %v2599_v30  ;;  %v2358_v2 = vmul.f32 %v3498_v22, %v2313_v8  ;;  %v2119_v41 = vpop.f32.mrf.mxu3  ;;  %vm2363_vm6 = vweird.f32 %v3498_v22 }
 0x2a1   : > { %v2350_v1 = vsel %vm2349_vm14, %v3492_v25, %v2346_v44  ;;  %v4878_v25 = vmul.f32 0.70710677, %v4874_v51  ;;  %v2120_v0 = vadd.f32 %v4846_v63, %v2119_v41  ;;  %vm2364_vm8 = vmor %vm2362_vm7, %vm2363_vm6  ;;  %v2219_v38 = vpop.f32.mrf.mxu1  ;;  %vm2809_vm14 = vcmp.ge.f32.partialorder %v4866_v21, 0.0 }
 0x2a2   : > { %v2631_v7 = vmul.f32 %v2615_v53, %v2340_v52  ;;  %v2355_v29 = vsel %vm2352_vm15, %v2354_v43, %v2350_v1  ;;  %v2247_v53 = vmul.f32 0.5, %v4849_v58  ;;  %v2359_v27 = vsub.f32 1.0, %v2358_v2  ;;  %v2170_v1 = vpop.f32.mrf.mxu0 }
 0x2a3   : > { %v2568_v57 = vmul.f32 1.0614054, %v2355_v29  ;;  %v4884_v9 = vand.u32 2147483647, %v4878_v25  ;;  %v2169_v46 = vadd.f32 %v2168_v13, %v2120_v0 }
 0x2a4   : > { %v2647_v18 = vadd.f32 -0.28449672, %v2631_v7 }
 0x2a5   : > { %v2584_v37 = vadd.f32 -1.4531521, %v2568_v57  ;;  %v2298_v43 = vmul.f32 0.3275911, %v4884_v9  ;;  %v4888_v14 = vadd.f32 %v2217_v59, %v2169_v46 }
 0x2a6   : > { %v2663_v35 = vmul.f32 %v2647_v18, %v2340_v52  ;;  %v2248_v18 = vmul.f32 0.5, %v4856_v16 }
 0x2a7   : > { %v2600_v39 = vmul.f32 %v2584_v37, %v2355_v29  ;;  %v4891_v57 = vmul.f32 0.70710677, %v4888_v14 }
 0x2a8   : > { %v2679_v19 = vadd.f32 0.2548296, %v2663_v35  ;;  %v2360_v35 = vmul.f32 %v3498_v22, %v2359_v27  ;;  %v2121_v45 = vpop.f32.mrf.mxu3 }
 0x2a9   : > { %v2616_v12 = vadd.f32 1.4214138, %v2600_v39  ;;  %v4898_v4 = vand.u32 2147483647, %v4891_v57  ;;  %v2122_v39 = vadd.f32 %v4846_v63, %v2121_v45 }
 0x2aa   : > { %v2695_v36 = vmul.f32 %v2679_v19, %v2340_v52  ;;  %v2361_v11 = vadd.f32 %v3498_v22, %v2360_v35  ;;  %v2369_v19 = vor.u32 1.1754944e-38, %v2368_v3 }
 0x2ab   : > { %v2632_v54 = vmul.f32 %v2616_v12, %v2355_v29  ;;  %v2299_v12 = vmul.f32 0.3275911, %v4898_v4  ;;  %v2715_v46 = vsub.f32 0.0, %v4898_v4 }
 0x2ac   : > { %v2775_v48 = vmul.f32 %v3494_v10, %v2695_v36  ;;  %v2365_v6 = vsel %vm2364_vm8, %v3498_v22, %v2361_v11  ;;  %v2713_v36 = vsub.f32 0.0, %v4869_v60 }
 0x2ad   : > { %v2648_v23 = vadd.f32 -0.28449672, %v2632_v54  ;;  %v2370_v34 = vsel %vm2367_vm9, %v2369_v19, %v2365_v6 }
 0x2ae   : > { %v2791_v24 = vsub.f32 1.0, %v2775_v48  ;;  %v2569_v37 = vmul.f32 1.0614054, %v2370_v34  ;;  %v2171_v48 = vadd.f32 %v2170_v1, %v2122_v39  ;;  %v2729_v54 = vmul.f32 %v2713_v36, %v4869_v60 }
 0x2af   : > { %v2664_v32 = vmul.f32 %v2648_v23, %v2355_v29  ;;  %v4903_v23 = vadd.f32 1.0, %v2299_v12 }
 0x2b0   : > { %v2823_v31 = vsub.f32 0.0, %v2791_v24  ;;  %v2585_v10 = vadd.f32 -1.4531521, %v2569_v37  ;;  %v4905_v55 = vadd.f32 %v2219_v38, %v2171_v48  ;;  %v2124_v8 = vpop.f32.mrf.mxu3 }
 0x2b1   : > { %v2680_v26 = vadd.f32 0.2548296, %v2664_v32  ;;  %v2173_v32 = vpop.f32.mrf.mxu0  ;;  %v2398_v11 = vand.u32 2147483648, %v4903_v23  ;;  %vm2392_vm3 = vweird.f32 %v4903_v23 }
 0x2b2   : > { %v2839_v5 = vsel %vm2807_vm4, %v2791_v24, %v2823_v31  ;;  %v2601_v28 = vmul.f32 %v2585_v10, %v2370_v34  ;;  %v2747_v31 = vmul.f32 1.442695, %v2729_v54 }
 0x2b3   : > { %v2696_v56 = vmul.f32 %v2680_v26, %v2355_v29  ;;  %v2855_v7 = vadd.f32 1.0, %v2839_v5  ;;  %v2314_v29 = vadd.f32 1.0, %v2298_v43  ;;  %v2399_v10 = vor.u32 1.1754944e-38, %v2398_v11 }
 0x2b4   : > { %v2617_v24 = vadd.f32 1.4214138, %v2601_v28 }
 0x2b5   : > { %v2776_v52 = vmul.f32 %v3496_v33, %v2696_v56  ;;  %v2871_v44 = vmul.f32 %v2855_v7, %v2247_v53  ;;  %3499 = vrcp.f32 %v2314_v29  ;;  %v2383_v15 = vand.u32 2147483648, %v2314_v29 }
 0x2b6   : > { %3501 = vrcp.f32 %v4903_v23  ;;  %v2633_v26 = vmul.f32 %v2617_v24, %v2370_v34  ;;  %v4909_v56 = vmul.f32 0.70710677, %v4905_v55  ;;  %v2125_v33 = vadd.f32 %v4846_v63, %v2124_v8 }
 0x2b7   : > { %v2792_v30 = vsub.f32 1.0, %v2776_v52  ;;  %v2381_v13 = vand.u32 2147483647, %v2314_v29  ;;  %v2222_v52 = vpop.f32.mrf.mxu1  ;;  %vm2377_vm11 = vweird.f32 %v2314_v29  ;;  %3503 = vpow2.f32 %v2747_v31 }
 0x2b8   : > { %v2649_v60 = vadd.f32 -0.28449672, %v2633_v26  ;;  %v4913_v5 = vand.u32 2147483647, %v4909_v56  ;;  %v2174_v22 = vadd.f32 %v2173_v32, %v2125_v33  ;;  %v2384_v53 = vor.u32 1.1754944e-38, %v2383_v15  ;;  %v2126_v3 = vpop.f32.mrf.mxu3 }
 0x2b9   : > { %v2824_v49 = vsub.f32 0.0, %v2792_v30  ;;  %vm2382_vm1 = vcmp.eq.f32.partialorder %v2381_v13, 8.507059e+37  ;;  %v2175_v43 = vpop.f32.mrf.mxu0  ;;  %v2127_v48 = vadd.f32 %v4846_v63, %v2126_v3 }
 0x2ba   : > { %v2300_v7 = vmul.f32 0.3275911, %v4913_v5  ;;  %v2716_v33 = vsub.f32 0.0, %v4913_v5 }
 0x2bb   : > { %v2840_v62 = vsel %vm2808_vm5, %v2792_v30, %v2824_v49  ;;  %v3500_v61 = vpop.eup %3499  ;;  %v2665_v30 = vmul.f32 %v2649_v60, %v2370_v34  ;;  %v4916_v49 = vadd.f32 %v2222_v52, %v2174_v22  ;;  %vm2810_vm5 = vcmp.ge.f32.partialorder %v4878_v25, 0.0 }
 0x2bc   : > { %v2856_v58 = vadd.f32 1.0, %v2840_v62  ;;  %v2373_v17 = vmul.f32 %v3500_v61, %v2314_v29  ;;  %vm2378_vm10 = vweird.f32 %v3500_v61  ;;  %v3502_v59 = vpop.eup %3501  ;;  %v2714_v62 = vsub.f32 0.0, %v4884_v9 }
 0x2bd   : > { %vm2379_vm0 = vmor %vm2377_vm11, %vm2378_vm10  ;;  %v2681_v41 = vadd.f32 0.2548296, %v2665_v30  ;;  %v2388_v27 = vmul.f32 %v3502_v59, %v4903_v23  ;;  %v4922_v42 = vadd.f32 1.0, %v2300_v7  ;;  %vm2393_vm2 = vweird.f32 %v3502_v59 }
 0x2be   : > { %v2872_v16 = vmul.f32 %v2856_v58, %v2248_v18  ;;  %v2374_v50 = vsub.f32 1.0, %v2373_v17  ;;  %v2396_v29 = vand.u32 2147483647, %v4903_v23  ;;  %v2730_v6 = vmul.f32 %v2714_v62, %v4884_v9  ;;  %vm2394_vm12 = vmor %vm2392_vm3, %vm2393_vm2 }
 0x2bf   : > { %v2389_v35 = vsub.f32 1.0, %v2388_v27  ;;  %3505 = vrcp.f32 %v4922_v42  ;;  %v2224_v36 = vpop.f32.mrf.mxu1  ;;  %v2176_v23 = vadd.f32 %v2175_v43, %v2127_v48  ;;  %v2413_v22 = vand.u32 2147483648, %v4922_v42 }
 0x2c0   : > { %v3290_v20 = vpack.c.bf16 %v2872_v16, %v2871_v44  ;;  %v2375_v40 = vmul.f32 %v3500_v61, %v2374_v50  ;;  %v4927_v44 = vmul.f32 0.70710677, %v4916_v49  ;;  %v2697_v16 = vmul.f32 %v2681_v41, %v2370_v34  ;;  %v2129_v32 = vpop.f32.mrf.mxu3 }
 0x2c1   : > { %v2390_v19 = vmul.f32 %v3502_v59, %v2389_v35  ;;  %v2731_v34 = vmul.f32 %v2715_v46, %v4898_v4  ;;  %vm2397_vm13 = vcmp.eq.f32.partialorder %v2396_v29, 8.507059e+37  ;;  %v2749_v54 = vmul.f32 1.442695, %v2730_v6  ;;  %v2178_v52 = vpop.f32.mrf.mxu0 }
 0x2c2   : > { %3291 = vst [vmem:[%s4893_s12] sm:$0xff] %v3290_v20   ;;  %v2376_v2 = vadd.f32 %v3500_v61, %v2375_v40  ;;  %v3504_v20 = vpop.eup %3503  ;;  %v4934_v45 = vand.u32 2147483647, %v4927_v44  ;;  %v4946_v4 = vmul.f32 0.5, %v4863_v47  ;;  %v2411_v47 = vand.u32 2147483647, %v4922_v42 }
 0x2c3   : > { %v2391_v38 = vadd.f32 %v3502_v59, %v2390_v19  ;;  %v2777_v39 = vmul.f32 %v3504_v20, %v2697_v16  ;;  %v2751_v15 = vmul.f32 1.442695, %v2731_v34  ;;  %v4956_v30 = vadd.f32 %v2224_v36, %v2176_v23 }
 0x2c4   : > { %v2380_v18 = vsel %vm2379_vm0, %v3500_v61, %v2376_v2  ;;  %v2301_v12 = vmul.f32 0.3275911, %v4934_v45  ;;  %v2732_v41 = vmul.f32 %v2716_v33, %v4913_v5  ;;  %vm2407_vm4 = vweird.f32 %v4922_v42 }
 0x2c5   : > { %v4919_v0 = vsel %vm2382_vm1, %v2384_v53, %v2380_v18  ;;  %v2395_v9 = vsel %vm2394_vm12, %v3502_v59, %v2391_v38  ;;  %v3506_v61 = vpop.eup %3505  ;;  %v2793_v31 = vsub.f32 1.0, %v2777_v39  ;;  %v4962_v18 = vmul.f32 0.70710677, %v4956_v30 }
 0x2c6   : > { %v2570_v58 = vmul.f32 1.0614054, %v4919_v0  ;;  %v4941_v24 = vsel %vm2397_vm13, %v2399_v10, %v2395_v9  ;;  %v4943_v17 = vadd.f32 1.0, %v2301_v12  ;;  %v2403_v50 = vmul.f32 %v3506_v61, %v4922_v42 }
 0x2c7   : > { %v2571_v26 = vmul.f32 1.0614054, %v4941_v24  ;;  %vm2408_vm15 = vweird.f32 %v3506_v61  ;;  %v2825_v7 = vsub.f32 0.0, %v2793_v31  ;;  %v2227_v35 = vpop.f32.mrf.mxu1  ;;  %vm2412_vm7 = vcmp.eq.f32.partialorder %v2411_v47, 8.507059e+37 }
 0x2c8   : > { %v2586_v1 = vadd.f32 -1.4531521, %v2570_v58  ;;  %3507 = vrcp.f32 %v4943_v17  ;;  %v2404_v13 = vsub.f32 1.0, %v2403_v50  ;;  %vm2409_vm6 = vmor %vm2407_vm4, %vm2408_vm15  ;;  %v2414_v46 = vor.u32 1.1754944e-38, %v2413_v22  ;;  %v2131_v16 = vpop.f32.mrf.mxu3 }
 0x2c9   : > { %v2587_v40 = vadd.f32 -1.4531521, %v2571_v26  ;;  %3509 = vpow2.f32 %v2749_v54  ;;  %v4967_v43 = vand.u32 2147483647, %v4962_v18  ;;  %v2130_v5 = vadd.f32 %v4846_v63, %v2129_v32  ;;  %v2180_v23 = vpop.f32.mrf.mxu0 }
 0x2ca   : > { %v2602_v37 = vmul.f32 %v2586_v1, %v4919_v0  ;;  %v2405_v53 = vmul.f32 %v3506_v61, %v2404_v13  ;;  %3511 = vpow2.f32 %v2751_v15  ;;  %v2841_v20 = vsel %vm2809_vm14, %v2793_v31, %v2825_v7 }
 0x2cb   : > { %v2603_v59 = vmul.f32 %v2587_v40, %v4941_v24  ;;  %v2302_v38 = vmul.f32 0.3275911, %v4967_v43  ;;  %v2426_v12 = vand.u32 2147483647, %v4943_v17  ;;  %v2857_v32 = vadd.f32 1.0, %v2841_v20 }
 0x2cc   : > { %v2618_v28 = vadd.f32 1.4214138, %v2602_v37  ;;  %v2406_v3 = vadd.f32 %v3506_v61, %v2405_v53  ;;  %v2428_v37 = vand.u32 2147483648, %v4943_v17  ;;  %vm2422_vm9 = vweird.f32 %v4943_v17 }
 0x2cd   : > { %v2619_v62 = vadd.f32 1.4214138, %v2603_v59  ;;  %v4981_v48 = vadd.f32 1.0, %v2302_v38  ;;  %vm2427_vm11 = vcmp.eq.f32.partialorder %v2426_v12, 8.507059e+37  ;;  %v2132_v40 = vadd.f32 %v4846_v63, %v2131_v16 }
 0x2ce   : > { %v2634_v8 = vmul.f32 %v2618_v28, %v4919_v0  ;;  %v3508_v58 = vpop.eup %3507  ;;  %v2410_v19 = vsel %vm2409_vm6, %v3506_v61, %v2406_v3  ;;  %v2179_v28 = vadd.f32 %v2178_v52, %v2130_v5  ;;  %v2429_v33 = vor.u32 1.1754944e-38, %v2428_v37 }
 0x2cf   : > { %v2635_v1 = vmul.f32 %v2619_v62, %v4941_v24  ;;  %v2418_v42 = vmul.f32 %v3508_v58, %v4943_v17  ;;  %v3510_v29 = vpop.eup %3509  ;;  %v4975_v6 = vsel %vm2412_vm7, %v2414_v46, %v2410_v19  ;;  %vm2423_vm8 = vweird.f32 %v3508_v58  ;;  %v2229_v22 = vpop.f32.mrf.mxu1 }
 0x2d0   : > { %v2650_v60 = vadd.f32 -0.28449672, %v2634_v8  ;;  %v2572_v39 = vmul.f32 1.0614054, %v4975_v6  ;;  %v3512_v10 = vpop.eup %3511  ;;  %v2753_v8 = vmul.f32 1.442695, %v2732_v41  ;;  %3513 = vrcp.f32 %v4981_v48  ;;  %vm2424_vm10 = vmor %vm2422_vm9, %vm2423_vm8  ;;  %v2134_v41 = vpop.f32.mrf.mxu3 }
 0x2d1   : > { %v2651_v36 = vadd.f32 -0.28449672, %v2635_v1  ;;  %v2717_v7 = vsub.f32 0.0, %v4934_v45  ;;  %v2183_v38 = vpop.f32.mrf.mxu0  ;;  %vm2437_vm1 = vweird.f32 %v4981_v48  ;;  %vm2811_vm12 = vcmp.ge.f32.partialorder %v4891_v57, 0.0 }
 0x2d2   : > { %v2666_v2 = vmul.f32 %v2650_v60, %v4919_v0  ;;  %v2588_v61 = vadd.f32 -1.4531521, %v2572_v39  ;;  %v4988_v60 = vadd.f32 %v2227_v35, %v2179_v28  ;;  %3515 = vpow2.f32 %v2753_v8 }
 0x2d3   : > { %v2667_v9 = vmul.f32 %v2651_v36, %v4941_v24  ;;  %v2733_v19 = vmul.f32 %v2717_v7, %v4934_v45  ;;  %v2443_v36 = vand.u32 2147483648, %v4981_v48  ;;  %vm2812_vm13 = vcmp.ge.f32.partialorder %v4909_v56, 0.0 }
 0x2d4   : > { %v2682_v27 = vadd.f32 0.2548296, %v2666_v2  ;;  %v2604_v31 = vmul.f32 %v2588_v61, %v4975_v6  ;;  %v2250_v2 = vmul.f32 0.5, %v4874_v51  ;;  %v5001_v25 = vmul.f32 0.70710677, %v4988_v60 }
 0x2d5   : > { %v2683_v50 = vadd.f32 0.2548296, %v2667_v9  ;;  %v2181_v51 = vadd.f32 %v2180_v23, %v2132_v40  ;;  %v2755_v28 = vmul.f32 1.442695, %v2733_v19  ;;  %vm2813_vm14 = vcmp.ge.f32.partialorder %v4927_v44, 0.0 }
 0x2d6   : > { %v2698_v11 = vmul.f32 %v2682_v27, %v4919_v0  ;;  %v2419_v0 = vsub.f32 1.0, %v2418_v42  ;;  %v2620_v52 = vadd.f32 1.4214138, %v2604_v31  ;;  %v5007_v42 = vand.u32 2147483647, %v5001_v25 }
 0x2d7   : > { %v2699_v17 = vmul.f32 %v2683_v50, %v4941_v24  ;;  %v3514_v24 = vpop.eup %3513  ;;  %v5018_v45 = vadd.f32 %v2229_v22, %v2181_v51  ;;  %v2232_v8 = vpop.f32.mrf.mxu1  ;;  %v2718_v50 = vsub.f32 0.0, %v4967_v43  ;;  %v5047_v51 = vmul.f32 0.5, %v4956_v30 }
 0x2d8   : > { %v2778_v34 = vmul.f32 %v3510_v29, %v2698_v11  ;;  %v2420_v54 = vmul.f32 %v3508_v58, %v2419_v0  ;;  %v2636_v62 = vmul.f32 %v2620_v52, %v4975_v6  ;;  %v2433_v16 = vmul.f32 %v3514_v24, %v4981_v48  ;;  %v3516_v9 = vpop.eup %3515  ;;  %v2136_v31 = vpop.f32.mrf.mxu3 }
 0x2d9   : > { %v2779_v27 = vmul.f32 %v3512_v10, %v2699_v17  ;;  %v5010_v29 = vmul.f32 0.5, %v4888_v14  ;;  %v2303_v39 = vmul.f32 0.3275911, %v5007_v42  ;;  %vm2438_vm0 = vweird.f32 %v3514_v24 }
 0x2da   : > { %v2794_v21 = vsub.f32 1.0, %v2778_v34  ;;  %v2421_v15 = vadd.f32 %v3508_v58, %v2420_v54  ;;  %v2652_v46 = vadd.f32 -0.28449672, %v2636_v62  ;;  %v2434_v37 = vsub.f32 1.0, %v2433_v16  ;;  %vm2439_vm2 = vmor %vm2437_vm1, %vm2438_vm0 }
 0x2db   : > { %v2795_v1 = vsub.f32 1.0, %v2779_v27  ;;  %v2441_v34 = vand.u32 2147483647, %v4981_v48  ;;  %v2135_v48 = vadd.f32 %v4846_v63, %v2134_v41  ;;  %vm2814_vm8 = vcmp.ge.f32.partialorder %v4962_v18, 0.0 }
 0x2dc   : > { %v2826_v26 = vsub.f32 0.0, %v2794_v21  ;;  %v2425_v47 = vsel %vm2424_vm10, %v3508_v58, %v2421_v15  ;;  %v2873_v58 = vmul.f32 %v2857_v32, %v4946_v4  ;;  %v2668_v4 = vmul.f32 %v2652_v46, %v4975_v6 }
 0x2dd   : > { %v4995_v53 = vsel %vm2427_vm11, %v2429_v33, %v2425_v47  ;;  %v2435_v12 = vmul.f32 %v3514_v24, %v2434_v37  ;;  %v2827_v14 = vsub.f32 0.0, %v2795_v1  ;;  %v5026_v32 = vmul.f32 0.70710677, %v5018_v45 }
 0x2de   : > { %v2842_v13 = vsel %vm2810_vm5, %v2794_v21, %v2826_v26  ;;  %v2573_v3 = vmul.f32 1.0614054, %v4995_v53  ;;  %v2684_v0 = vadd.f32 0.2548296, %v2668_v4  ;;  %v5021_v21 = vadd.f32 1.0, %v2303_v39 }
 0x2df   : > { %v2858_v59 = vadd.f32 1.0, %v2842_v13  ;;  %v2436_v23 = vadd.f32 %v3514_v24, %v2435_v12  ;;  %v2444_v26 = vor.u32 1.1754944e-38, %v2443_v36  ;;  %vm2442_vm3 = vcmp.eq.f32.partialorder %v2441_v34, 8.507059e+37  ;;  %v2234_v37 = vpop.f32.mrf.mxu1 }
 0x2e0   : > { %v2589_v5 = vadd.f32 -1.4531521, %v2573_v3  ;;  %v2700_v61 = vmul.f32 %v2684_v0, %v4975_v6  ;;  %3517 = vrcp.f32 %v5021_v21  ;;  %v5035_v13 = vand.u32 2147483647, %v5026_v32  ;;  %v2139_v39 = vpop.f32.mrf.mxu3 }
 0x2e1   : > { %v2874_v35 = vmul.f32 %v2858_v59, %v2250_v2  ;;  %v2440_v40 = vsel %vm2439_vm2, %v3514_v24, %v2436_v23  ;;  %3519 = vpow2.f32 %v2755_v28  ;;  %v2843_v17 = vsel %vm2811_vm12, %v2795_v1, %v2827_v14  ;;  %v2185_v24 = vpop.f32.mrf.mxu0 }
 0x2e2   : > { %v2605_v20 = vmul.f32 %v2589_v5, %v4995_v53  ;;  %v2780_v15 = vmul.f32 %v3516_v9, %v2700_v61  ;;  %v5032_v6 = vsel %vm2442_vm3, %v2444_v26, %v2440_v40  ;;  %v2252_v2 = vmul.f32 0.5, %v4905_v55 }
 0x2e3   : > { %v3295_v11 = vpack.c.bf16 %v2874_v35, %v2873_v58  ;;  %v2574_v22 = vmul.f32 1.0614054, %v5032_v6  ;;  %v2734_v59 = vmul.f32 %v2718_v50, %v4967_v43  ;;  %v2304_v7 = vmul.f32 0.3275911, %v5035_v13 }
 0x2e4   : > { %v2621_v10 = vadd.f32 1.4214138, %v2605_v20  ;;  %v2796_v52 = vsub.f32 1.0, %v2780_v15  ;;  %v2184_v41 = vadd.f32 %v2183_v38, %v2135_v48  ;;  %v2859_v58 = vadd.f32 1.0, %v2843_v17 }
 0x2e5   : > { %3327 = vst [vmem:[%s4893_s12 + $0x8] sm:$0xff] %v3295_v11   ;;  %v2590_v62 = vadd.f32 -1.4531521, %v2574_v22  ;;  %v5044_v35 = vmul.f32 0.5, %v4916_v49  ;;  %v5049_v55 = vadd.f32 1.0, %v2304_v7  ;;  %v2719_v20 = vsub.f32 0.0, %v5007_v42 }
 0x2e6   : > { %v2637_v54 = vmul.f32 %v2621_v10, %v4995_v53  ;;  %v2828_v57 = vsub.f32 0.0, %v2796_v52  ;;  %v3518_v3 = vpop.eup %3517  ;;  %v2757_v1 = vmul.f32 1.442695, %v2734_v59  ;;  %v5055_v19 = vadd.f32 %v2232_v8, %v2184_v41 }
 0x2e7   : > { %v2606_v5 = vmul.f32 %v2590_v62, %v5032_v6  ;;  %v2448_v56 = vmul.f32 %v3518_v3, %v5021_v21  ;;  %v3520_v16 = vpop.eup %3519  ;;  %3521 = vrcp.f32 %v5049_v55  ;;  %v2875_v38 = vmul.f32 %v2859_v58, %v5010_v29 }
 0x2e8   : > { %v2653_v33 = vadd.f32 -0.28449672, %v2637_v54  ;;  %v2844_v43 = vsel %vm2812_vm13, %v2796_v52, %v2828_v57  ;;  %v2458_v34 = vand.u32 2147483648, %v5021_v21  ;;  %v2137_v36 = vadd.f32 %v4846_v63, %v2136_v31 }
 0x2e9   : > { %v2860_v11 = vadd.f32 1.0, %v2844_v43  ;;  %v2622_v4 = vadd.f32 1.4214138, %v2606_v5  ;;  %v2449_v30 = vsub.f32 1.0, %v2448_v56  ;;  %vm2453_vm15 = vweird.f32 %v3518_v3  ;;  %v2188_v40 = vpop.f32.mrf.mxu0  ;;  %v2237_v43 = vpop.f32.mrf.mxu1 }
 0x2ea   : > { %v2669_v47 = vmul.f32 %v2653_v33, %v4995_v53  ;;  %v2456_v12 = vand.u32 2147483647, %v5021_v21  ;;  %3523 = vpow2.f32 %v2757_v1  ;;  %v5065_v29 = vmul.f32 0.70710677, %v5055_v19 }
 0x2eb   : > { %v2638_v0 = vmul.f32 %v2622_v4, %v5032_v6  ;;  %v2450_v10 = vmul.f32 %v3518_v3, %v2449_v30  ;;  %vm2452_vm4 = vweird.f32 %v5021_v21  ;;  %v2140_v54 = vadd.f32 %v4846_v63, %v2139_v39 }
 0x2ec   : > { %v2685_v27 = vadd.f32 0.2548296, %v2669_v47  ;;  %vm2454_vm5 = vmor %vm2452_vm4, %vm2453_vm15  ;;  %v2459_v8 = vor.u32 1.1754944e-38, %v2458_v34  ;;  %v2735_v26 = vmul.f32 %v2719_v20, %v5007_v42  ;;  %v2289_v50 = vand.u32 2147483647, %v5065_v29 }
 0x2ed   : > { %v2654_v9 = vadd.f32 -0.28449672, %v2638_v0  ;;  %v2451_v61 = vadd.f32 %v3518_v3, %v2450_v10  ;;  %v3522_v23 = vpop.eup %3521  ;;  %v2186_v48 = vadd.f32 %v2185_v24, %v2137_v36  ;;  %vm2457_vm6 = vcmp.eq.f32.partialorder %v2456_v12, 8.507059e+37 }
 0x2ee   : > { %v2701_v46 = vmul.f32 %v2685_v27, %v4995_v53  ;;  %v2876_v53 = vmul.f32 %v2860_v11, %v2252_v2  ;;  %v2463_v33 = vmul.f32 %v3522_v23, %v5049_v55  ;;  %v2720_v52 = vsub.f32 0.0, %v5035_v13 }
 0x2ef   : > { %v2670_v31 = vmul.f32 %v2654_v9, %v5032_v6  ;;  %v2455_v15 = vsel %vm2454_vm5, %v3518_v3, %v2451_v61  ;;  %v2305_v47 = vmul.f32 0.3275911, %v2289_v50  ;;  %v2189_v59 = vadd.f32 %v2188_v40, %v2140_v54 }
 0x2f0   : > { %v2781_v49 = vmul.f32 %v3520_v16, %v2701_v46  ;;  %v3300_v14 = vpack.c.bf16 %v2876_v53, %v2875_v38  ;;  %v5074_v21 = vsel %vm2457_vm6, %v2459_v8, %v2455_v15  ;;  %v2464_v42 = vsub.f32 1.0, %v2463_v33  ;;  %v3524_v7 = vpop.eup %3523 }
 0x2f1   : > { %v2686_v22 = vadd.f32 0.2548296, %v2670_v31  ;;  %v2575_v2 = vmul.f32 1.0614054, %v5074_v21  ;;  %v2471_v41 = vand.u32 2147483647, %v5049_v55  ;;  %v5082_v62 = vadd.f32 %v2234_v37, %v2186_v48 }
 0x2f2   : > { %v2797_v28 = vsub.f32 1.0, %v2781_v49  ;;  %3328 = vst [vmem:[%s4893_s12 + $0x10] sm:$0xff] %v3300_v14   ;;  %v2473_v57 = vand.u32 2147483648, %v5049_v55  ;;  %v5080_v27 = vadd.f32 1.0, %v2305_v47  ;;  %v2465_v58 = vmul.f32 %v3522_v23, %v2464_v42 }
 0x2f3   : > { %v2702_v3 = vmul.f32 %v2686_v22, %v5032_v6  ;;  %v2591_v24 = vadd.f32 -1.4531521, %v2575_v2  ;;  %vm2468_vm7 = vweird.f32 %v3522_v23  ;;  %vm2467_vm9 = vweird.f32 %v5049_v55  ;;  %v2141_v55 = vpop.f32.mrf.mxu3 }
 0x2f4   : > { %v2829_v17 = vsub.f32 0.0, %v2797_v28  ;;  %3525 = vrcp.f32 %v5080_v27  ;;  %v2466_v16 = vadd.f32 %v3522_v23, %v2465_v58  ;;  %v5091_v11 = vadd.f32 %v2237_v43, %v2189_v59  ;;  %vm2469_vm10 = vmor %vm2467_vm9, %vm2468_vm7 }
 0x2f5   : > { %v2782_v5 = vmul.f32 %v3524_v7, %v2702_v3  ;;  %v2607_v56 = vmul.f32 %v2591_v24, %v5074_v21  ;;  %v2759_v6 = vmul.f32 1.442695, %v2735_v26  ;;  %v2474_v1 = vor.u32 1.1754944e-38, %v2473_v57 }
 0x2f6   : > { %v2845_v46 = vsel %vm2813_vm14, %v2797_v28, %v2829_v17  ;;  %v2736_v49 = vmul.f32 %v2720_v52, %v5035_v13  ;;  %v5095_v44 = vmul.f32 0.70710677, %v5082_v62  ;;  %v2470_v20 = vsel %vm2469_vm10, %v3522_v23, %v2466_v16 }
 0x2f7   : > { %v2798_v4 = vsub.f32 1.0, %v2782_v5  ;;  %v2623_v30 = vadd.f32 1.4214138, %v2607_v56  ;;  %vm2472_vm11 = vcmp.eq.f32.partialorder %v2471_v41, 8.507059e+37  ;;  %v2861_v37 = vadd.f32 1.0, %v2845_v46  ;;  %v2239_v46 = vpop.f32.mrf.mxu1 }
 0x2f8   : > { %v5097_v38 = vsel %vm2472_vm11, %v2474_v1, %v2470_v20  ;;  %v2721_v53 = vsub.f32 0.0, %v2289_v50  ;;  %v5100_v34 = vand.u32 2147483647, %v5095_v44  ;;  %v5105_v0 = vmul.f32 0.70710677, %v5091_v11 }
 0x2f9   : > { %v2830_v36 = vsub.f32 0.0, %v2798_v4  ;;  %v2639_v39 = vmul.f32 %v2623_v30, %v5074_v21  ;;  %v2576_v13 = vmul.f32 1.0614054, %v5097_v38  ;;  %3527 = vpow2.f32 %v2759_v6 }
 0x2fa   : > { %v3526_v10 = vpop.eup %3525  ;;  %v2761_v12 = vmul.f32 1.442695, %v2736_v49  ;;  %v2306_v14 = vmul.f32 0.3275911, %v5100_v34  ;;  %v2142_v28 = vadd.f32 %v4846_v63, %v2141_v55  ;;  %v2877_v8 = vmul.f32 %v2861_v37, %v5044_v35  ;;  %v2190_v35 = vpop.f32.mrf.mxu0 }
 0x2fb   : > { %v2846_v9 = vsel %vm2814_vm8, %v2798_v4, %v2830_v36  ;;  %v2655_v61 = vadd.f32 -0.28449672, %v2639_v39  ;;  %v2592_v54 = vadd.f32 -1.4531521, %v2576_v13  ;;  %v2478_v23 = vmul.f32 %v3526_v10, %v5080_v27  ;;  %v2144_v20 = vpop.f32.mrf.mxu3 }
 0x2fc   : > { %v2862_v26 = vadd.f32 1.0, %v2846_v9  ;;  %v2737_v48 = vmul.f32 %v2721_v53, %v2289_v50  ;;  %v5113_v31 = vadd.f32 1.0, %v2306_v14  ;;  %v5118_v63 = vand.u32 2147483647, %v5105_v0 }
 0x2fd   : > { %v2671_v15 = vmul.f32 %v2655_v61, %v5074_v21  ;;  %v2608_v33 = vmul.f32 %v2592_v54, %v5097_v38  ;;  %v2479_v40 = vsub.f32 1.0, %v2478_v23  ;;  %v2486_v17 = vand.u32 2147483647, %v5080_v27 }
 0x2fe   : > { %v2878_v18 = vmul.f32 %v2862_v26, %v5047_v51  ;;  %v2488_v52 = vand.u32 2147483648, %v5080_v27  ;;  %3529 = vrcp.f32 %v5113_v31  ;;  %vm2483_vm0 = vweird.f32 %v3526_v10 }
 0x2ff   : > { %v2687_v50 = vadd.f32 0.2548296, %v2671_v15  ;;  %v2624_v47 = vadd.f32 1.4214138, %v2608_v33  ;;  %v2480_v22 = vmul.f32 %v3526_v10, %v2479_v40  ;;  %v3528_v2 = vpop.eup %3527  ;;  %v5125_v59 = vmul.f32 0.5, %v4988_v60 }
 0x300   : > { %v3305_v42 = vpack.c.bf16 %v2878_v18, %v2877_v8  ;;  %v2307_v7 = vmul.f32 0.3275911, %v5118_v63  ;;  %v2191_v51 = vadd.f32 %v2190_v35, %v2142_v28  ;;  %vm2482_vm1 = vweird.f32 %v5080_v27 }
 0x301   : > { %v2703_v41 = vmul.f32 %v2687_v50, %v5074_v21  ;;  %v2640_v57 = vmul.f32 %v2624_v47, %v5097_v38  ;;  %v2481_v3 = vadd.f32 %v3526_v10, %v2480_v22  ;;  %3531 = vpow2.f32 %v2761_v12  ;;  %vm2484_vm2 = vmor %vm2482_vm1, %vm2483_vm0  ;;  %v2242_v47 = vpop.f32.mrf.mxu1 }
 0x302   : > { %3329 = vst [vmem:[%s4893_s12 + $0x18] sm:$0xff] %v3305_v42   ;;  %v2489_v24 = vor.u32 1.1754944e-38, %v2488_v52  ;;  %v2763_v58 = vmul.f32 1.442695, %v2737_v48  ;;  %v5132_v43 = vadd.f32 1.0, %v2307_v7  ;;  %vm2487_vm3 = vcmp.eq.f32.partialorder %v2486_v17, 8.507059e+37  ;;  %v2193_v15 = vpop.f32.mrf.mxu0 }
 0x303   : > { %v2783_v60 = vmul.f32 %v3528_v2, %v2703_v41  ;;  %v2656_v5 = vadd.f32 -0.28449672, %v2640_v57  ;;  %v2485_v56 = vsel %vm2484_vm2, %v3526_v10, %v2481_v3  ;;  %v2722_v21 = vsub.f32 0.0, %v5100_v34 }
 0x304   : > { %v3530_v16 = vpop.eup %3529  ;;  %v5134_v6 = vsel %vm2487_vm3, %v2489_v24, %v2485_v56  ;;  %3533 = vrcp.f32 %v5132_v43  ;;  %v5138_v27 = vadd.f32 %v2239_v46, %v2191_v51  ;;  %vm2815_vm12 = vcmp.ge.f32.partialorder %v5001_v25, 0.0 }
 0x305   : > { %v2799_v1 = vsub.f32 1.0, %v2783_v60  ;;  %v2672_v49 = vmul.f32 %v2656_v5, %v5097_v38  ;;  %v2577_v4 = vmul.f32 1.0614054, %v5134_v6  ;;  %v2493_v30 = vmul.f32 %v3530_v16, %v5113_v31 }
 0x306   : > { %v5145_v55 = vmul.f32 0.5, %v5018_v45  ;;  %v2501_v37 = vand.u32 2147483647, %v5113_v31  ;;  %v2503_v53 = vand.u32 2147483648, %v5113_v31  ;;  %3535 = vpow2.f32 %v2763_v58  ;;  %v3553_v45 = vld [vmem:[%s5293_s4] ss:$0 sm:$0xff] }
 0x307   : > { %v2688_v36 = vadd.f32 0.2548296, %v2672_v49  ;;  %v2593_v39 = vadd.f32 -1.4531521, %v2577_v4  ;;  %v2494_v13 = vsub.f32 1.0, %v2493_v30  ;;  %v3532_v10 = vpop.eup %3531  ;;  %v2831_v12 = vsub.f32 0.0, %v2799_v1 }
 0x308   : > { %vm2816_vm13 = vcmp.ge.f32.partialorder %v5026_v32, 0.0  ;;  %v2738_v14 = vmul.f32 %v2722_v21, %v5100_v34  ;;  %v5152_v28 = vmul.f32 0.70710677, %v5138_v27  ;;  %v2145_v9 = vadd.f32 %v3553_v45, %v2144_v20 }
 0x309   : > { %v2704_v61 = vmul.f32 %v2688_v36, %v5097_v38  ;;  %v2609_v54 = vmul.f32 %v2593_v39, %v5134_v6  ;;  %v2495_v23 = vmul.f32 %v3530_v16, %v2494_v13  ;;  %vm2498_vm14 = vweird.f32 %v3530_v16  ;;  %v2244_v26 = vpop.f32.mrf.mxu1 }
 0x30a   : > { %v3534_v8 = vpop.eup %3533  ;;  %vm2497_vm15 = vweird.f32 %v5113_v31  ;;  %vm5160_vm4 = vcmp.eq.f32.partialorder %v2501_v37, 8.507059e+37  ;;  %v2504_v34 = vor.u32 1.1754944e-38, %v2503_v53  ;;  %v5165_v48 = vand.u32 2147483647, %v5152_v28 }
 0x30b   : > { %v2784_v33 = vmul.f32 %v3532_v10, %v2704_v61  ;;  %v2625_v40 = vadd.f32 1.4214138, %v2609_v54  ;;  %v2496_v18 = vadd.f32 %v3530_v16, %v2495_v23  ;;  %v2508_v38 = vmul.f32 %v3534_v8, %v5132_v43  ;;  %vm2499_vm5 = vmor %vm2497_vm15, %vm2498_vm14  ;;  %v2195_v10 = vpop.f32.mrf.mxu0 }
 0x30c   : > { %v2847_v17 = vsel %vm2815_vm12, %v2799_v1, %v2831_v12  ;;  %v2516_v31 = vand.u32 2147483647, %v5132_v43  ;;  %v2518_v52 = vand.u32 2147483648, %v5132_v43  ;;  %v2308_v35 = vmul.f32 0.3275911, %v5165_v48  ;;  %v3536_v50 = vpop.eup %3535  ;;  %v2146_v1 = vpop.f32.mrf.mxu3 }
 0x30d   : > { %v2800_v22 = vsub.f32 1.0, %v2784_v33  ;;  %v2641_v2 = vmul.f32 %v2625_v40, %v5134_v6  ;;  %v2500_v42 = vsel %vm2499_vm5, %v3530_v16, %v2496_v18  ;;  %v2509_v7 = vsub.f32 1.0, %v2508_v38 }
 0x30e   : > { %v5176_v51 = vsel %vm5160_vm4, %v2504_v34, %v2500_v42  ;;  %vm2513_vm6 = vweird.f32 %v3534_v8  ;;  %v5178_v25 = vadd.f32 1.0, %v2308_v35  ;;  %v2194_v41 = vadd.f32 %v2193_v15, %v2145_v9 }
 0x30f   : > { %v2832_v57 = vsub.f32 0.0, %v2800_v22  ;;  %v2657_v3 = vadd.f32 -0.28449672, %v2641_v2  ;;  %v2578_v24 = vmul.f32 1.0614054, %v5176_v51  ;;  %v2510_v58 = vmul.f32 %v3534_v8, %v2509_v7 }
 0x310   : > { %v2863_v46 = vadd.f32 1.0, %v2847_v17  ;;  %v2765_v60 = vmul.f32 1.442695, %v2738_v14  ;;  %vm2512_vm7 = vweird.f32 %v5132_v43  ;;  %3537 = vrcp.f32 %v5178_v25 }
 0x311   : > { %v2848_v5 = vsel %vm2816_vm13, %v2800_v22, %v2832_v57  ;;  %v2673_v56 = vmul.f32 %v2657_v3, %v5134_v6  ;;  %v2594_v16 = vadd.f32 -1.4531521, %v2578_v24  ;;  %v2511_v21 = vadd.f32 %v3534_v8, %v2510_v58  ;;  %vm2514_vm8 = vmor %vm2512_vm7, %vm2513_vm6 }
 0x312   : > { %v2864_v49 = vadd.f32 1.0, %v2848_v5  ;;  %vm2517_vm9 = vcmp.eq.f32.partialorder %v2516_v31, 8.507059e+37  ;;  %v2519_v4 = vor.u32 1.1754944e-38, %v2518_v52  ;;  %v2723_v30 = vsub.f32 0.0, %v5118_v63 }
 0x313   : > { %v2689_v20 = vadd.f32 0.2548296, %v2673_v56  ;;  %v2610_v43 = vmul.f32 %v2594_v16, %v5176_v51  ;;  %v2515_v37 = vsel %vm2514_vm8, %v3534_v8, %v2511_v21  ;;  %v5189_v53 = vadd.f32 %v2242_v47, %v2194_v41 }
 0x314   : > { %v2879_v32 = vmul.f32 %v2863_v46, %v5125_v59  ;;  %v2880_v36 = vmul.f32 %v2864_v49, %v5145_v55  ;;  %v5193_v39 = vsel %vm2517_vm9, %v2519_v4, %v2515_v37  ;;  %v2147_v13 = vadd.f32 %v3553_v45, %v2146_v1 }
 0x315   : > { %v2705_v12 = vmul.f32 %v2689_v20, %v5134_v6  ;;  %v2626_v14 = vadd.f32 1.4214138, %v2610_v43  ;;  %v2579_v9 = vmul.f32 1.0614054, %v5193_v39  ;;  %v5198_v23 = vmul.f32 0.70710677, %v5189_v53 }
 0x316   : > { %v3538_v61 = vpop.eup %3537  ;;  %v3310_v54 = vpack.c.bf16 %v2880_v36, %v2879_v32  ;;  %v2196_v8 = vadd.f32 %v2195_v10, %v2147_v13  ;;  %3539 = vpow2.f32 %v2765_v60  ;;  %v2739_v6 = vmul.f32 %v2723_v30, %v5118_v63 }
 0x317   : > { %v2785_v59 = vmul.f32 %v3536_v50, %v2705_v12  ;;  %v2642_v55 = vmul.f32 %v2626_v14, %v5176_v51  ;;  %v2595_v34 = vadd.f32 -1.4531521, %v2579_v9  ;;  %v2523_v15 = vmul.f32 %v3538_v61, %v5178_v25 }
 0x318   : > { %3330 = vst [vmem:[%s4893_s12 + $0x20] sm:$0xff] %v3310_v54   ;;  %v5205_v45 = vand.u32 2147483647, %v5198_v23  ;;  %v5207_v33 = vadd.f32 %v2244_v26, %v2196_v8  ;;  %v2531_v17 = vand.u32 2147483647, %v5178_v25  ;;  %vm2528_vm10 = vweird.f32 %v3538_v61 }
 0x319   : > { %v2658_v40 = vadd.f32 -0.28449672, %v2642_v55  ;;  %v2611_v18 = vmul.f32 %v2595_v34, %v5193_v39  ;;  %v2524_v38 = vsub.f32 1.0, %v2523_v15  ;;  %v2533_v31 = vand.u32 2147483648, %v5178_v25 }
 0x31a   : > { %v2309_v52 = vmul.f32 0.3275911, %v5205_v45  ;;  %v5214_v35 = vmul.f32 0.70710677, %v5207_v33  ;;  %v2801_v63 = vsub.f32 1.0, %v2785_v59  ;;  %vm2527_vm11 = vweird.f32 %v5178_v25 }
 0x31b   : > { %v2674_v50 = vmul.f32 %v2658_v40, %v5176_v51  ;;  %v2627_v47 = vadd.f32 1.4214138, %v2611_v18  ;;  %v2525_v22 = vmul.f32 %v3538_v61, %v2524_v38  ;;  %v2767_v2 = vmul.f32 1.442695, %v2739_v6  ;;  %vm2529_vm0 = vmor %vm2527_vm11, %vm2528_vm10 }
 0x31c   : > { %v5217_v42 = vadd.f32 1.0, %v2309_v52  ;;  %v3540_v3 = vpop.eup %3539  ;;  %vm2532_vm1 = vcmp.eq.f32.partialorder %v2531_v17, 8.507059e+37  ;;  %v2534_v24 = vor.u32 1.1754944e-38, %v2533_v31  ;;  %v5224_v58 = vand.u32 2147483647, %v5214_v35 }
 0x31d   : > { %v2690_v7 = vadd.f32 0.2548296, %v2674_v50  ;;  %v2643_v41 = vmul.f32 %v2627_v47, %v5193_v39  ;;  %v2526_v57 = vadd.f32 %v3538_v61, %v2525_v22  ;;  %v2833_v46 = vsub.f32 0.0, %v2801_v63 }
 0x31e   : > { %3541 = vrcp.f32 %v5217_v42  ;;  %v2724_v21 = vsub.f32 0.0, %v5165_v48  ;;  %vm2817_vm2 = vcmp.ge.f32.partialorder %v5065_v29, 0.0  ;;  %v2310_v4 = vmul.f32 0.3275911, %v5224_v58 }
 0x31f   : > { %v2706_v60 = vmul.f32 %v2690_v7, %v5176_v51  ;;  %v2659_v5 = vadd.f32 -0.28449672, %v2643_v41  ;;  %v2530_v56 = vsel %vm2529_vm0, %v3538_v61, %v2526_v57  ;;  %3543 = vpow2.f32 %v2767_v2 }
 0x320   : > { %v2535_v16 = vsel %vm2532_vm1, %v2534_v24, %v2530_v56  ;;  %v2849_v30 = vsel %vm2817_vm2, %v2801_v63, %v2833_v46  ;;  %v2740_v51 = vmul.f32 %v2724_v21, %v5165_v48  ;;  %v2326_v36 = vadd.f32 1.0, %v2310_v4 }
 0x321   : > { %v2786_v1 = vmul.f32 %v3540_v3, %v2706_v60  ;;  %v2675_v25 = vmul.f32 %v2659_v5, %v5193_v39  ;;  %v2580_v49 = vmul.f32 1.0614054, %v2535_v16  ;;  %v2257_v9 = vmul.f32 0.5, %v5055_v19 }
 0x322   : > { %v2865_v61 = vadd.f32 1.0, %v2849_v30  ;;  %vm2818_vm3 = vcmp.ge.f32.partialorder %v5095_v44, 0.0  ;;  %3545 = vrcp.f32 %v2326_v36  ;;  %v2258_v54 = vmul.f32 0.5, %v5082_v62 }
 0x323   : > { %v2802_v20 = vsub.f32 1.0, %v2786_v1  ;;  %v2691_v43 = vadd.f32 0.2548296, %v2675_v25  ;;  %v2596_v37 = vadd.f32 -1.4531521, %v2580_v49  ;;  %vm2542_vm13 = vweird.f32 %v5217_v42 }
 0x324   : > { %v3542_v32 = vpop.eup %3541  ;;  %v2769_v34 = vmul.f32 1.442695, %v2740_v51  ;;  %v2546_v19 = vand.u32 2147483647, %v5217_v42  ;;  %v2881_v40 = vmul.f32 %v2865_v61, %v2257_v9  ;;  %v2725_v2 = vsub.f32 0.0, %v5205_v45 }
 0x325   : > { %v2834_v13 = vsub.f32 0.0, %v2802_v20  ;;  %v2707_v10 = vmul.f32 %v2691_v43, %v5193_v39  ;;  %v2612_v12 = vmul.f32 %v2596_v37, %v2535_v16  ;;  %v2538_v14 = vmul.f32 %v3542_v32, %v5217_v42  ;;  %v3544_v29 = vpop.eup %3543 }
 0x326   : > { %v2548_v39 = vand.u32 2147483648, %v5217_v42  ;;  %vm2543_vm12 = vweird.f32 %v3542_v32  ;;  %3547 = vpow2.f32 %v2769_v34  ;;  %vm2547_vm15 = vcmp.eq.f32.partialorder %v2546_v19, 8.507059e+37 }
 0x327   : > { %v2850_v8 = vsel %vm2818_vm3, %v2802_v20, %v2834_v13  ;;  %v2628_v26 = vadd.f32 1.4214138, %v2612_v12  ;;  %v2539_v59 = vsub.f32 1.0, %v2538_v14  ;;  %v2787_v55 = vmul.f32 %v3544_v29, %v2707_v10  ;;  %vm2544_vm14 = vmor %vm2542_vm13, %vm2543_vm12 }
 0x328   : > { %v2866_v48 = vadd.f32 1.0, %v2850_v8  ;;  %v3546_v62 = vpop.eup %3545  ;;  %v2549_v52 = vor.u32 1.1754944e-38, %v2548_v39  ;;  %v2561_v24 = vand.u32 2147483647, %v2326_v36  ;;  %v2563_v42 = vand.u32 2147483648, %v2326_v36 }
 0x329   : > { %v2644_v15 = vmul.f32 %v2628_v26, %v2535_v16  ;;  %v2540_v6 = vmul.f32 %v3542_v32, %v2539_v59  ;;  %v2803_v31 = vsub.f32 1.0, %v2787_v55  ;;  %v2553_v47 = vmul.f32 %v3546_v62, %v2326_v36 }
 0x32a   : > { %v2882_v44 = vmul.f32 %v2866_v48, %v2258_v54  ;;  %vm2558_vm4 = vweird.f32 %v3546_v62  ;;  %v2741_v21 = vmul.f32 %v2725_v2, %v5205_v45  ;;  %vm2557_vm5 = vweird.f32 %v2326_v36 }
 0x32b   : > { %v2660_v18 = vadd.f32 -0.28449672, %v2644_v15  ;;  %v2541_v38 = vadd.f32 %v3542_v32, %v2540_v6  ;;  %v2554_v57 = vsub.f32 1.0, %v2553_v47  ;;  %v2835_v3 = vsub.f32 0.0, %v2803_v31  ;;  %vm2559_vm7 = vmor %vm2557_vm5, %vm2558_vm4 }
 0x32c   : > { %v3315_v17 = vpack.c.bf16 %v2882_v44, %v2881_v40  ;;  %v3548_v56 = vpop.eup %3547  ;;  %vm2819_vm6 = vcmp.ge.f32.partialorder %v5105_v0, 0.0  ;;  %vm2562_vm8 = vcmp.eq.f32.partialorder %v2561_v24, 8.507059e+37  ;;  %v2564_v4 = vor.u32 1.1754944e-38, %v2563_v42 }
 0x32d   : > { %v2676_v63 = vmul.f32 %v2660_v18, %v2535_v16  ;;  %v2545_v50 = vsel %vm2544_vm14, %v3542_v32, %v2541_v38  ;;  %v2555_v5 = vmul.f32 %v3546_v62, %v2554_v57  ;;  %v2851_v30 = vsel %vm2819_vm6, %v2803_v31, %v2835_v3 }
 0x32e   : > { %3331 = vst [vmem:[%s4893_s12 + $0x28] sm:$0xff] %v3315_v17   ;;  %v2550_v22 = vsel %vm2547_vm15, %v2549_v52, %v2545_v50  ;;  %v2726_v51 = vsub.f32 0.0, %v5224_v58  ;;  %v2867_v12 = vadd.f32 1.0, %v2851_v30  ;;  %vm2820_vm9 = vcmp.ge.f32.partialorder %v5152_v28, 0.0 }
 0x32f   : > { %v2692_v7 = vadd.f32 0.2548296, %v2676_v63  ;;  %v2581_v41 = vmul.f32 1.0614054, %v2550_v22  ;;  %v2556_v49 = vadd.f32 %v3546_v62, %v2555_v5  ;;  %v2259_v36 = vmul.f32 0.5, %v5091_v11 }
 0x330   : > { %v2260_v61 = vmul.f32 0.5, %v5138_v27  ;;  %v2742_v54 = vmul.f32 %v2726_v51, %v5224_v58  ;;  %vm2821_vm10 = vcmp.ge.f32.partialorder %v5198_v23, 0.0  ;;  %vm2822_vm11 = vcmp.ge.f32.partialorder %v5214_v35, 0.0 }
 0x331   : > { %v2708_v46 = vmul.f32 %v2692_v7, %v2535_v16  ;;  %v2597_v60 = vadd.f32 -1.4531521, %v2581_v41  ;;  %v2560_v37 = vsel %vm2559_vm7, %v3546_v62, %v2556_v49  ;;  %v2771_v16 = vmul.f32 1.442695, %v2741_v21 }
 0x332   : > { %v2565_v32 = vsel %vm2562_vm8, %v2564_v4, %v2560_v37  ;;  %v2883_v59 = vmul.f32 %v2867_v12, %v2259_v36  ;;  %v2773_v28 = vmul.f32 1.442695, %v2742_v54  ;;  %v2262_v2 = vmul.f32 0.5, %v5207_v33 }
 0x333   : > { %v2788_v1 = vmul.f32 %v3548_v56, %v2708_v46  ;;  %v2613_v25 = vmul.f32 %v2597_v60, %v2550_v22  ;;  %v2582_v45 = vmul.f32 1.0614054, %v2565_v32  ;;  %3549 = vpow2.f32 %v2771_v16 }
 0x334   : > { %3551 = vpow2.f32 %v2773_v28 }
 0x335   : > { %v2804_v20 = vsub.f32 1.0, %v2788_v1  ;;  %v2629_v43 = vadd.f32 1.4214138, %v2613_v25  ;;  %v2598_v9 = vadd.f32 -1.4531521, %v2582_v45 }
 0x337   : > { %v2836_v13 = vsub.f32 0.0, %v2804_v20  ;;  %v2645_v10 = vmul.f32 %v2629_v43, %v2550_v22  ;;  %v2614_v26 = vmul.f32 %v2598_v9, %v2565_v32 }
 0x339   : > { %v2852_v0 = vsel %vm2820_vm9, %v2804_v20, %v2836_v13  ;;  %v2661_v14 = vadd.f32 -0.28449672, %v2645_v10  ;;  %v2630_v34 = vadd.f32 1.4214138, %v2614_v26  ;;  %v3550_v6 = vpop.eup %3549 }
 0x33a   : > { %v2868_v29 = vadd.f32 1.0, %v2852_v0  ;;  %v3552_v62 = vpop.eup %3551 }
 0x33b   : > { %v2677_v8 = vmul.f32 %v2661_v14, %v2550_v22  ;;  %v2646_v15 = vmul.f32 %v2630_v34, %v2565_v32 }
 0x33c   : > { %v2884_v48 = vmul.f32 %v2868_v29, %v2260_v61 }
 0x33d   : > { %v2693_v55 = vadd.f32 0.2548296, %v2677_v8  ;;  %v2662_v40 = vadd.f32 -0.28449672, %v2646_v15 }
 0x33e   : > { %v3320_v39 = vpack.c.bf16 %v2884_v48, %v2883_v59 }
 0x33f   : > { %v2709_v11 = vmul.f32 %v2693_v55, %v2550_v22  ;;  %v2678_v44 = vmul.f32 %v2662_v40, %v2565_v32  ;;  %v2261_v22 = vmul.f32 0.5, %v5189_v53 }
 0x340   : > { %3332 = vst [vmem:[%s4893_s12 + $0x30] sm:$0xff] %v3320_v39  }
 0x341   : > { %v2789_v19 = vmul.f32 %v3550_v6, %v2709_v11  ;;  %v2694_v18 = vadd.f32 0.2548296, %v2678_v44 }
 0x343   : > { %v2805_v27 = vsub.f32 1.0, %v2789_v19  ;;  %v2710_v38 = vmul.f32 %v2694_v18, %v2565_v32 }
 0x345   : > { %v2837_v58 = vsub.f32 0.0, %v2805_v27  ;;  %v2790_v17 = vmul.f32 %v3552_v62, %v2710_v38 }
 0x347   : > { %v2853_v31 = vsel %vm2821_vm10, %v2805_v27, %v2837_v58  ;;  %v2806_v52 = vsub.f32 1.0, %v2790_v17 }
 0x348   : > { %v2869_v50 = vadd.f32 1.0, %v2853_v31 }
 0x349   : > { %v2838_v63 = vsub.f32 0.0, %v2806_v52 }
 0x34a   : > { %v2885_v7 = vmul.f32 %v2869_v50, %v2261_v22 }
 0x34b   : > { %v2854_v47 = vsel %vm2822_vm11, %v2806_v52, %v2838_v63 }
 0x34c   : > { %v2870_v23 = vadd.f32 1.0, %v2854_v47 }
 0x34e   : > { %v2886_v41 = vmul.f32 %v2870_v23, %v2262_v2 }
 0x350   : > { %v3325_v57 = vpack.c.bf16 %v2886_v41, %v2885_v7 }
 0x352   : > { %3333 = vst [vmem:[%s4893_s12 + $0x38] sm:$0xff] %v3325_v57  }
 0x353   : > { %3671 = shalt.err (!%p3668_p10)
}
 0x354   : > { %s3722_s8 = smov 64   ;;  %s3723_s12 = smov 4  }
 0x355   : > { %3360 = dma.vmem_to_hbm [thread:$0]  (%p3820_p3), %s2933_s22, 1024, %s2935_s16, %s2920_s13, %s3722_s8, %s3722_s8, %s3723_s12  }
 0x356 PF: > { %s2949_s28 = sand.u32 1, %s3702_s18   ;;  %p5310_p12 = scmp.ge.s32.totalorder %s3714_s21, 2 }
 0x357   : > { %s2950_s30 = scalar_lea.sflag [#allocation4], %s2949_s28 }
 0x358   : > { %p3374_p13 = pnand %p5310_p12, %p3789_p6 }
 0x35a   : > { %p3375_p0 = pneg %p3374_p13 }
 0x35c   : > { %3697 = dma.done.wait (%p3375_p0), %s2950_s30, 1024  }
 0x35d   : > { %3699 = vsyncadd (%p3375_p0), %s2950_s30, 4294966272  ;;  %p19_p5 = scmp.ge.s32.totalorder %s3810_s14, 4   ;;  %s5311_s18 = smov %s3706_s19 }
 0x35e   : > { %s5312_s19 = smov %s3710_s20  ;;  %s5313_s20 = smov %s3826_s23 }
 0x35f   : > { %s5314_s21 = smov %s3810_s14  ;;  %21 = sbr.rel (!%p19_p5) target bundleno = 6 (0x6), region = 93 }
 0x364   :  { %2956 = vsyncpa [#allocation3], 1 }
 0x365   :  { %2958 = vsyncpa [#allocation3 + $0x1], 1 }
 0x366   :  { %2959 = vsyncpa [#allocation6], 1 }
 0x367   :  { %2960 = vsyncpa [#allocation4], 1 }
 0x368   :  { %2962 = vsyncpa [#allocation4 + $0x1], 1 }

</bundles_post_ra>
